<compile_context>
chip_gen: v6e
topology: v6e:2x2x1
jax: 0.10.0
libtpu: 0.0.40
codegen_flags: <defaults>
</compile_context>

<pallas_src>
import functools

import jax
import jax.numpy as jnp
from jax import lax
from jax.experimental import pallas as pl
from jax.experimental.pallas import tpu as pltpu

EPS = 1e-12          # torch.nn.functional.normalize default eps
EPS_SQ = EPS * EPS
NEG_BIG = -1e30      # softmax mask value for padded proxy columns


def _round_up(x, m):
    return ((x + m - 1) // m) * m


def _pad2(x, rows, cols):
    r, c = x.shape
    if r == rows and c == cols:
        return x
    return jnp.pad(x, ((0, rows - r), (0, cols - c)))


def _compiler_params():
    return pltpu.CompilerParams(
        dimension_semantics=("parallel",),
        vmem_limit_bytes=32 * 1024 * 1024,
    )


# ----------------------------- edge kernel -----------------------------------
# Per edge: rels_sum = normalize(rels); refl = neighs - 2<neighs,rels_sum>rels_sum;
#           att1 = <rels_sum, attention_kernel>   (VPU mul + lane reduce, no MXU).

def _edge_kernel(neighs_ref, rels_ref, attn_ref, refl_ref, att1_ref):
    neighs = neighs_ref[...]
    rels = rels_ref[...]
    inv_norm = lax.rsqrt(jnp.maximum(
        jnp.sum(rels * rels, axis=-1, keepdims=True), EPS_SQ))
    rels_sum = rels * inv_norm
    dotp = jnp.sum(neighs * rels_sum, axis=-1, keepdims=True)
    refl_ref[...] = neighs - 2.0 * dotp * rels_sum
    # attention logit on VPU/XLU: broadcast (1,F) vector, reduce over lanes
    att1_ref[...] = jnp.sum(rels_sum * attn_ref[...], axis=-1, keepdims=True)


def edge_compute(neighs, rels_raw, attn_kernel, *, tile_e=512):
    E, F = neighs.shape
    tile_e = min(tile_e, _round_up(E, 8))
    e_pad = _round_up(E, tile_e)
    neighs_p = _pad2(neighs, e_pad, F)
    rels_p = _pad2(rels_raw, e_pad, F)
    attn_row = attn_kernel.reshape(1, F)

    refl, att1 = pl.pallas_call(
        _edge_kernel,
        grid=(e_pad // tile_e,),
        in_specs=[
            pl.BlockSpec((tile_e, F), lambda i: (i, 0)),
            pl.BlockSpec((tile_e, F), lambda i: (i, 0)),
            pl.BlockSpec((1, F), lambda i: (0, 0)),        # resident in VMEM
        ],
        out_specs=(
            pl.BlockSpec((tile_e, F), lambda i: (i, 0)),
            pl.BlockSpec((tile_e, 1), lambda i: (i, 0)),
        ),
        out_shape=(
            jax.ShapeDtypeStruct((e_pad, F), jnp.float32),
            jax.ShapeDtypeStruct((e_pad, 1), jnp.float32),
        ),
        compiler_params=_compiler_params(),
    )(neighs_p, rels_p, attn_row)
    return refl[:E], att1[:E]


# --------------------------- proxy / gate kernel ------------------------------

def _make_proxy_kernel(p_real, p_pad):
    def kernel(out_ref, proxy_ref, gate_ref, bias_ref, res_ref):
        outputs = out_ref[...]
        proxy = proxy_ref[...]
        # L2 normalize rows (rsqrt -> EUP slot, no f32 divides)
        out_n = outputs * lax.rsqrt(jnp.maximum(
            jnp.sum(outputs * outputs, axis=-1, keepdims=True), EPS_SQ))
        pr_n = proxy * lax.rsqrt(jnp.maximum(
            jnp.sum(proxy * proxy, axis=-1, keepdims=True), EPS_SQ))
        # out_n @ pr_n.T without an explicit transpose: contract last dims
        logits = lax.dot_general(
            out_n, pr_n, (((1,), (1,)), ((), ())),
            preferred_element_type=jnp.float32)
        if p_pad != p_real:
            col = lax.broadcasted_iota(jnp.int32, (1, p_pad), 1)
            logits = jnp.where(col < p_real, logits, NEG_BIG)
        m = jnp.max(logits, axis=-1, keepdims=True)
        e = jnp.exp(logits - m)
        denom = jnp.sum(e, axis=-1, keepdims=True)
        proxy_att = e * pl.reciprocal(denom, approx=True)
        proxy_feature = outputs - jnp.dot(
            proxy_att, proxy, preferred_element_type=jnp.float32)
        pre = jnp.dot(proxy_feature, gate_ref[...],
                      preferred_element_type=jnp.float32) + bias_ref[...]
        gate_rate = jax.nn.sigmoid(pre)
        res_ref[...] = gate_rate * outputs + (1.0 - gate_rate) * proxy_feature
    return kernel


def proxy_gate(outputs, proxy, gate_kernel, bias, *, tile_n=128):
    N, D = outputs.shape
    P = proxy.shape[0]
    d_pad = _round_up(D, 128)      # lane-dense output + full MXU width
    p_pad = _round_up(P, 128)
    tile_n = min(tile_n, _round_up(N, 8))
    n_pad = _round_up(N, tile_n)

    outputs_p = _pad2(outputs, n_pad, d_pad)
    proxy_p = _pad2(proxy, p_pad, d_pad)
    gate_p = _pad2(gate_kernel, d_pad, d_pad)
    bias_p = _pad2(bias, 1, d_pad)

    res = pl.pallas_call(
        _make_proxy_kernel(P, p_pad),
        grid=(n_pad // tile_n,),
        in_specs=[
            pl.BlockSpec((tile_n, d_pad), lambda i: (i, 0)),
            pl.BlockSpec((p_pad, d_pad), lambda i: (0, 0)),   # resident
            pl.BlockSpec((d_pad, d_pad), lambda i: (0, 0)),   # resident
            pl.BlockSpec((1, d_pad), lambda i: (0, 0)),       # resident
        ],
        out_specs=pl.BlockSpec((tile_n, d_pad), lambda i: (i, 0)),
        out_shape=jax.ShapeDtypeStruct((n_pad, d_pad), jnp.float32),
        compiler_params=_compiler_params(),
    )(outputs_p, proxy_p, gate_p, bias_p)
    return res[:N, :D]


# ------------------------------ JAX glue --------------------------------------

def segment_softmax(logits, segment_ids, num_segments):
    # torch.sparse.softmax(att, dim=0): normalize edge logits over edges sharing
    # the same destination node.  Only indexed back per-edge, so empty segments
    # (seg_max=-inf / seg_sum=0) are never dereferenced.
    seg_max = jax.ops.segment_max(logits, segment_ids, num_segments=num_segments)
    exp = jnp.exp(logits - seg_max[segment_ids])
    seg_sum = jax.ops.segment_sum(exp, segment_ids, num_segments=num_segments)
    return exp / seg_sum[segment_ids]


@functools.partial(jax.jit, static_argnames=("num_nodes", "depth"))
def dual_forward(src, dst, edge_rel, features, rel_emb, params, *, num_nodes, depth):
    """Dual.forward.  g: edges (src -> dst); g_r: one relation id per edge."""
    outputs = []
    features = jnp.tanh(features)           # fused by XLA with downstream gather
    outputs.append(features)
    for l in range(depth):
        # g_r['in'].update_all(copy_u, mean): one relation in-neighbor per edge-index
        # node in this synthetic graph, so the mean is a gather.
        rels_raw = rel_emb[edge_rel]        # [E, F]
        # g.apply_edges(copy_u('features', 'neighs'))
        neighs = features[src]              # [E, F]
        refl, att1 = edge_compute(neighs, rels_raw, params['attn'][l])
        att = segment_softmax(att1[:, 0], dst, num_nodes)     # sparse softmax dim=0
        # g.update_all(copy_e('feat', 'm'), sum) — multiply fuses into the scatter-add
        agg = jax.ops.segment_sum(refl * att[:, None], dst, num_segments=num_nodes)
        features = jnp.tanh(agg)            # fused by XLA with the segment_sum
        outputs.append(features)
    outputs = jnp.concatenate(outputs, axis=1)                # [N, F*(depth+1)]
    return proxy_gate(outputs, params['proxy'], params['gate_kernel'], params['bias'])


def xavier_normal(key, shape):
    fan_in, fan_out = shape
    std = (2.0 / (fan_in + fan_out)) ** 0.5
    return std * jax.random.normal(key, shape, dtype=jnp.float32)


# ------------------------------ demo ------------------------------------------

if __name__ == "__main__":
    N, E, R, F, depth = 256, 1024, 32, 32, 2   # nodes, edges, relations, hidden, depth
    D = F * (depth + 1)                         # 96
    P = 64                                      # number of proxy vectors (fixed in module)

    key = jax.random.PRNGKey(0)
    keys = jax.random.split(key, 12)

    # inputs (features / rel_emb come from 'uniform' init in overAll)
    features = jax.random.uniform(keys[0], (N, F), jnp.float32, -0.05, 0.05)
    rel_emb = jax.random.uniform(keys[1], (R, F), jnp.float32, -0.05, 0.05)
    src = jax.random.randint(keys[2], (E,), 0, N)
    dst = jax.random.randint(keys[3], (E,), 0, N)
    edge_rel = jax.random.randint(keys[4], (E,), 0, R)

    # Dual parameters (deterministic synthetic init, same shapes as the module)
    params = {
        'attn': [xavier_normal(keys[5 + l], (F, 1)) for l in range(depth)],
        'proxy': xavier_normal(keys[8], (P, D)),
        'gate_kernel': xavier_normal(keys[9], (D, D)),
        'bias': jnp.zeros((1, D), jnp.float32),
    }

    out = dual_forward(src, dst, edge_rel, features, rel_emb, params,
                       num_nodes=N, depth=depth)
    out = jax.block_until_ready(out)
    assert out.shape == (N, D) and out.dtype == jnp.float32
    assert bool(jnp.all(jnp.isfinite(out)))
    print("KERNEL_OK")
</pallas_src>

<mosaic_0001>
module attributes {stable_mosaic.version = 11 : i64} {
  func.func private @main(%arg0: i32) attributes {dimension_semantics = [#tpu.dimension_semantics<core_parallel>], iteration_bounds = array<i64: 2>, tpu.core_type = #tpu.core_type<sc_scalar_subcore>, window_params = []} {
    return
  }
}

module attributes {stable_mosaic.version = 11 : i64} {
  func.func private @main(%arg0: i32) attributes {dimension_semantics = [#tpu.dimension_semantics<core_parallel>], iteration_bounds = array<i64: 2>, tpu.core_type = #tpu.core_type<sc_scalar_subcore>, window_params = []} {
    return
  }
}

module attributes {stable_mosaic.version = 11 : i64} {
  func.func @_edge_kernel(%arg0: i32, %arg1: memref<512x32xf32, #tpu.memory_space<vmem>>, %arg2: memref<512x32xf32, #tpu.memory_space<vmem>>, %arg3: memref<1x32xf32, #tpu.memory_space<vmem>>, %arg4: memref<512x32xf32, #tpu.memory_space<vmem>>, %arg5: memref<512x1xf32, #tpu.memory_space<vmem>>) attributes {dimension_semantics = [#tpu.dimension_semantics<parallel>], iteration_bounds = array<i64: 2>, scalar_prefetch = 0 : i64, scratch_operands = 0 : i64, tpu.core_type = #tpu.core_type<tc>, window_params = [{transform_indices = @transform_0, window_bounds = array<i64: 512, 32>}, {transform_indices = @transform_1, window_bounds = array<i64: 512, 32>}, {pipeline_mode = #tpu.pipeline_mode<synchronous>, transform_indices = @transform_2, window_bounds = array<i64: 1, 32>}, {transform_indices = @transform_3, window_bounds = array<i64: 512, 32>}, {transform_indices = @transform_4, window_bounds = array<i64: 512, 1>}]} {
    %c0 = arith.constant 0 : index
    %c0_0 = arith.constant 0 : index
    %0 = vector.load %arg1[%c0, %c0_0] : memref<512x32xf32, #tpu.memory_space<vmem>>, vector<512x32xf32>
    %c0_1 = arith.constant 0 : index
    %c0_2 = arith.constant 0 : index
    %1 = vector.load %arg2[%c0_1, %c0_2] : memref<512x32xf32, #tpu.memory_space<vmem>>, vector<512x32xf32>
    %2 = arith.mulf %1, %1 : vector<512x32xf32>
    %cst = arith.constant dense<0.000000e+00> : vector<512xf32>
    %3 = vector.multi_reduction <add>, %2, %cst [1] : vector<512x32xf32> to vector<512xf32>
    %4 = vector.shape_cast %3 : vector<512xf32> to vector<512x1xf32>
    %cst_3 = arith.constant 1.000000e-24 : f32
    %5 = vector.broadcast %cst_3 : f32 to vector<512x1xf32>
    %6 = arith.maximumf %4, %5 : vector<512x1xf32>
    %7 = math.rsqrt %6 : vector<512x1xf32>
    %8 = vector.broadcast %7 : vector<512x1xf32> to vector<512x32xf32>
    %9 = arith.mulf %1, %8 : vector<512x32xf32>
    %10 = arith.mulf %0, %9 : vector<512x32xf32>
    %cst_4 = arith.constant dense<0.000000e+00> : vector<512xf32>
    %11 = vector.multi_reduction <add>, %10, %cst_4 [1] : vector<512x32xf32> to vector<512xf32>
    %12 = vector.shape_cast %11 : vector<512xf32> to vector<512x1xf32>
    %cst_5 = arith.constant 2.000000e+00 : f32
    %13 = vector.broadcast %cst_5 : f32 to vector<512x1xf32>
    %14 = arith.mulf %13, %12 : vector<512x1xf32>
    %15 = vector.broadcast %14 : vector<512x1xf32> to vector<512x32xf32>
    %16 = arith.mulf %15, %9 : vector<512x32xf32>
    %17 = arith.subf %0, %16 : vector<512x32xf32>
    %c0_6 = arith.constant 0 : index
    %c0_7 = arith.constant 0 : index
    %18 = vector.load %arg4[%c0_6, %c0_7] : memref<512x32xf32, #tpu.memory_space<vmem>>, vector<512x32xf32>
    tpu.vector_store %arg4[%c0_6, %c0_7], %17 {strides = array<i32>} : memref<512x32xf32, #tpu.memory_space<vmem>>, vector<512x32xf32>,
    %c0_8 = arith.constant 0 : index
    %c0_9 = arith.constant 0 : index
    %19 = vector.load %arg3[%c0_8, %c0_9] : memref<1x32xf32, #tpu.memory_space<vmem>>, vector<1x32xf32>
    %20 = vector.broadcast %19 : vector<1x32xf32> to vector<512x32xf32>
    %21 = arith.mulf %9, %20 : vector<512x32xf32>
    %cst_10 = arith.constant dense<0.000000e+00> : vector<512xf32>
    %22 = vector.multi_reduction <add>, %21, %cst_10 [1] : vector<512x32xf32> to vector<512xf32>
    %23 = vector.shape_cast %22 : vector<512xf32> to vector<512x1xf32>
    %c0_11 = arith.constant 0 : index
    %c0_12 = arith.constant 0 : index
    %24 = vector.load %arg5[%c0_11, %c0_12] : memref<512x1xf32, #tpu.memory_space<vmem>>, vector<512x1xf32>
    tpu.vector_store %arg5[%c0_11, %c0_12], %23 {strides = array<i32>} : memref<512x1xf32, #tpu.memory_space<vmem>>, vector<512x1xf32>,
    return
  }
  func.func @transform_0(%arg0: i32) -> (i32, i32) {
    %c0_i32 = arith.constant 0 : i32
    %c0_i32_0 = arith.constant 0 : i32
    return %arg0, %c0_i32 : i32, i32
  }
  func.func @transform_1(%arg0: i32) -> (i32, i32) {
    %c0_i32 = arith.constant 0 : i32
    %c0_i32_0 = arith.constant 0 : i32
    return %arg0, %c0_i32 : i32, i32
  }
  func.func @transform_2(%arg0: i32) -> (i32, i32) {
    %c0_i32 = arith.constant 0 : i32
    %c0_i32_0 = arith.constant 0 : i32
    %c0_i32_1 = arith.constant 0 : i32
    return %c0_i32, %c0_i32_0 : i32, i32
  }
  func.func @transform_3(%arg0: i32) -> (i32, i32) {
    %c0_i32 = arith.constant 0 : i32
    %c0_i32_0 = arith.constant 0 : i32
    return %arg0, %c0_i32 : i32, i32
  }
  func.func @transform_4(%arg0: i32) -> (i32, i32) {
    %c0_i32 = arith.constant 0 : i32
    %c0_i32_0 = arith.constant 0 : i32
    return %arg0, %c0_i32 : i32, i32
  }
}

module attributes {stable_mosaic.version = 11 : i64} {
  func.func @kernel(%arg0: i32, %arg1: memref<128x128xf32, #tpu.memory_space<vmem>>, %arg2: memref<128x128xf32, #tpu.memory_space<vmem>>, %arg3: memref<128x128xf32, #tpu.memory_space<vmem>>, %arg4: memref<1x128xf32, #tpu.memory_space<vmem>>, %arg5: memref<128x128xf32, #tpu.memory_space<vmem>>) attributes {dimension_semantics = [#tpu.dimension_semantics<parallel>], iteration_bounds = array<i64: 2>, scalar_prefetch = 0 : i64, scratch_operands = 0 : i64, tpu.core_type = #tpu.core_type<tc>, window_params = [{transform_indices = @transform_0, window_bounds = array<i64: 128, 128>}, {pipeline_mode = #tpu.pipeline_mode<synchronous>, transform_indices = @transform_1, window_bounds = array<i64: 128, 128>}, {pipeline_mode = #tpu.pipeline_mode<synchronous>, transform_indices = @transform_2, window_bounds = array<i64: 128, 128>}, {pipeline_mode = #tpu.pipeline_mode<synchronous>, transform_indices = @transform_3, window_bounds = array<i64: 1, 128>}, {transform_indices = @transform_4, window_bounds = array<i64: 128, 128>}]} {
    %c0 = arith.constant 0 : index
    %c0_0 = arith.constant 0 : index
    %0 = vector.load %arg1[%c0, %c0_0] : memref<128x128xf32, #tpu.memory_space<vmem>>, vector<128x128xf32>
    %c0_1 = arith.constant 0 : index
    %c0_2 = arith.constant 0 : index
    %1 = vector.load %arg2[%c0_1, %c0_2] : memref<128x128xf32, #tpu.memory_space<vmem>>, vector<128x128xf32>
    %2 = arith.mulf %0, %0 : vector<128x128xf32>
    %cst = arith.constant dense<0.000000e+00> : vector<128xf32>
    %3 = vector.multi_reduction <add>, %2, %cst [1] : vector<128x128xf32> to vector<128xf32>
    %4 = vector.shape_cast %3 : vector<128xf32> to vector<128x1xf32>
    %cst_3 = arith.constant 1.000000e-24 : f32
    %5 = vector.broadcast %cst_3 : f32 to vector<128x1xf32>
    %6 = arith.maximumf %4, %5 : vector<128x1xf32>
    %7 = math.rsqrt %6 : vector<128x1xf32>
    %8 = vector.broadcast %7 : vector<128x1xf32> to vector<128x128xf32>
    %9 = arith.mulf %0, %8 : vector<128x128xf32>
    %10 = arith.mulf %1, %1 : vector<128x128xf32>
    %cst_4 = arith.constant dense<0.000000e+00> : vector<128xf32>
    %11 = vector.multi_reduction <add>, %10, %cst_4 [1] : vector<128x128xf32> to vector<128xf32>
    %12 = vector.shape_cast %11 : vector<128xf32> to vector<128x1xf32>
    %cst_5 = arith.constant 1.000000e-24 : f32
    %13 = vector.broadcast %cst_5 : f32 to vector<128x1xf32>
    %14 = arith.maximumf %12, %13 : vector<128x1xf32>
    %15 = math.rsqrt %14 : vector<128x1xf32>
    %16 = vector.broadcast %15 : vector<128x1xf32> to vector<128x128xf32>
    %17 = arith.mulf %1, %16 : vector<128x128xf32>
    %cst_6 = arith.constant dense<0.000000e+00> : vector<128x128xf32>
    %18 = tpu.matmul %9, %17, %cst_6 {dimension_numbers = #tpu.dot_dimension_numbers<[1], [1], [0], [0], [0, 0, 1, 0], [], []>} : vector<128x128xf32>, vector<128x128xf32>, vector<128x128xf32> -> vector<128x128xf32>
    %19 = tpu.iota {dimensions = array<i32: 1>} : vector<1x128xi32>
    %c64_i32 = arith.constant 64 : i32
    %20 = vector.broadcast %c64_i32 : i32 to vector<1x128xi32>
    %21 = arith.cmpi slt, %19, %20 : vector<1x128xi32>
    %cst_7 = arith.constant -1.000000e+30 : f32
    %22 = vector.shape_cast %21 : vector<1x128xi1> to vector<1x128xi1>
    %23 = vector.broadcast %22 : vector<1x128xi1> to vector<128x128xi1>
    %24 = vector.broadcast %cst_7 : f32 to vector<128x128xf32>
    %25 = arith.select %23, %18, %24 : vector<128x128xi1>, vector<128x128xf32>
    %cst_8 = arith.constant dense<0xFF800000> : vector<128xf32>
    %26 = vector.multi_reduction <maximumf>, %25, %cst_8 [1] : vector<128x128xf32> to vector<128xf32>
    %27 = vector.shape_cast %26 : vector<128xf32> to vector<128x1xf32>
    %28 = vector.broadcast %27 : vector<128x1xf32> to vector<128x128xf32>
    %29 = arith.subf %25, %28 : vector<128x128xf32>
    %30 = math.exp %29 : vector<128x128xf32>
    %cst_9 = arith.constant dense<0.000000e+00> : vector<128xf32>
    %31 = vector.multi_reduction <add>, %30, %cst_9 [1] : vector<128x128xf32> to vector<128xf32>
    %32 = vector.shape_cast %31 : vector<128xf32> to vector<128x1xf32>
    %33 = tpu.reciprocal %32 {approx = true} : vector<128x1xf32> -> vector<128x1xf32>
    %34 = vector.broadcast %33 : vector<128x1xf32> to vector<128x128xf32>
    %35 = arith.mulf %30, %34 : vector<128x128xf32>
    %cst_10 = arith.constant dense<0.000000e+00> : vector<128x128xf32>
    %36 = tpu.matmul %35, %1, %cst_10 {dimension_numbers = #tpu.dot_dimension_numbers<[1], [0], [0], [1], [0, 0, 1, 1], [], []>} : vector<128x128xf32>, vector<128x128xf32>, vector<128x128xf32> -> vector<128x128xf32>
    %37 = arith.subf %0, %36 : vector<128x128xf32>
    %c0_11 = arith.constant 0 : index
    %c0_12 = arith.constant 0 : index
    %38 = vector.load %arg3[%c0_11, %c0_12] : memref<128x128xf32, #tpu.memory_space<vmem>>, vector<128x128xf32>
    %cst_13 = arith.constant dense<0.000000e+00> : vector<128x128xf32>
    %39 = tpu.matmul %37, %38, %cst_13 {dimension_numbers = #tpu.dot_dimension_numbers<[1], [0], [0], [1], [0, 0, 1, 1], [], []>} : vector<128x128xf32>, vector<128x128xf32>, vector<128x128xf32> -> vector<128x128xf32>
    %c0_14 = arith.constant 0 : index
    %c0_15 = arith.constant 0 : index
    %40 = vector.load %arg4[%c0_14, %c0_15] : memref<1x128xf32, #tpu.memory_space<vmem>>, vector<1x128xf32>
    %41 = vector.broadcast %40 : vector<1x128xf32> to vector<128x128xf32>
    %42 = arith.addf %39, %41 : vector<128x128xf32>
    %43 = arith.negf %42 : vector<128x128xf32>
    %44 = math.exp %43 : vector<128x128xf32>
    %cst_16 = arith.constant 1.000000e+00 : f32
    %45 = vector.broadcast %cst_16 : f32 to vector<128x128xf32>
    %46 = arith.addf %45, %44 : vector<128x128xf32>
    %47 = arith.divf %45, %46 : vector<128x128xf32>
    %48 = arith.mulf %47, %0 : vector<128x128xf32>
    %cst_17 = arith.constant 1.000000e+00 : f32
    %49 = vector.broadcast %cst_17 : f32 to vector<128x128xf32>
    %50 = arith.subf %49, %47 : vector<128x128xf32>
    %51 = arith.mulf %50, %37 : vector<128x128xf32>
    %52 = arith.addf %48, %51 : vector<128x128xf32>
    %c0_18 = arith.constant 0 : index
    %c0_19 = arith.constant 0 : index
    %53 = vector.load %arg5[%c0_18, %c0_19] : memref<128x128xf32, #tpu.memory_space<vmem>>, vector<128x128xf32>
    tpu.vector_store %arg5[%c0_18, %c0_19], %52 {strides = array<i32>} : memref<128x128xf32, #tpu.memory_space<vmem>>, vector<128x128xf32>,
    return
  }
  func.func @transform_0(%arg0: i32) -> (i32, i32) {
    %c0_i32 = arith.constant 0 : i32
    %c0_i32_0 = arith.constant 0 : i32
    return %arg0, %c0_i32 : i32, i32
  }
  func.func @transform_1(%arg0: i32) -> (i32, i32) {
    %c0_i32 = arith.constant 0 : i32
    %c0_i32_0 = arith.constant 0 : i32
    %c0_i32_1 = arith.constant 0 : i32
    return %c0_i32, %c0_i32_0 : i32, i32
  }
  func.func @transform_2(%arg0: i32) -> (i32, i32) {
    %c0_i32 = arith.constant 0 : i32
    %c0_i32_0 = arith.constant 0 : i32
    %c0_i32_1 = arith.constant 0 : i32
    return %c0_i32, %c0_i32_0 : i32, i32
  }
  func.func @transform_3(%arg0: i32) -> (i32, i32) {
    %c0_i32 = arith.constant 0 : i32
    %c0_i32_0 = arith.constant 0 : i32
    %c0_i32_1 = arith.constant 0 : i32
    return %c0_i32, %c0_i32_0 : i32, i32
  }
  func.func @transform_4(%arg0: i32) -> (i32, i32) {
    %c0_i32 = arith.constant 0 : i32
    %c0_i32_0 = arith.constant 0 : i32
    return %arg0, %c0_i32 : i32, i32
  }
}

</mosaic_0001>

<bundles_post_ra>
// kernel: dual_forward.3
= control target key start
LH: loop header
LB: loop body
LE: loop exit
PB: predicated region body
PF: predicated region fallthrough
CT: control target
= control target key end

     0   :  { %s2024_s15 = smov 0   ;;  %s3334_s0 = inlined_call_operand.vmem [shape: f32[1024,32], index: 0, kind: input, shape index: {}]   ;;  %s3335_s1 = inlined_call_operand.vmem [shape: f32[1024,32], index: 1, kind: input, shape index: {}]   ;;  %s3336_s2 = inlined_call_operand.vmem [shape: f32[1,32], index: 2, kind: input, shape index: {}]   ;;  %s3337_s3 = inlined_call_operand.vmem [shape: f32[1024,32], index: 3, kind: output, shape index: {0}]   ;;  %s3338_s4 = inlined_call_operand.vmem [shape: f32[1024,1], index: 4, kind: output, shape index: {1}]  }
   0x1 LB: > { %s1756_s16 = sadd.s32 4294967295, %s1997_s15   ;;  %p1760_p0 = scmp.ge.s32.totalorder %s1997_s15, 1  ;;  %s1997_s15 = sphi %s2024_s15, %s15_s15  }
   0x2   : > { %p177_p1 = scmp.lt.s32.totalorder %s1997_s15, 3 }
   0x4   : > { %p178_p2 = pnand %p1760_p0, %p177_p1 }
   0x6   : > { %181 = sbr.rel (%p178_p2) target bundleno = 575 (0x23f), region = 32 }
   0xb   : > { %s1761_s17 = sshll.u32 %s1756_s16, 6  ;;  %vm429_vm0 = vcmask 261120   ;;  %vm1589_vm1 = vcmask 7168  }
   0xc   : > { %p214_p3 = scmp.lt.s32.totalorder %s1761_s17, 127 }
   0xe   : > { %s3408_s17 = smov (!%p214_p3, %s1761_s17), 127 }
   0xf   : > { %s2032_s18 = sshll.u32 %s3408_s17, 3 }
  0x10   : > { %s2038_s21 = scalar_lea.vmem %s3335_s1, %s2032_s18  ;;  %s2352_s24 = scalar_lea.vmem %s3334_s0, %s2032_s18 }
  0x11   : > { %v2041_v0 = vld [vmem:[%s2038_s21] sm:$0xff]  ;;  %v2044_v1 = vld [vmem:[%s2038_s21 + $0x10] sm:$0xff]  ;;  %v2047_v2 = vld [vmem:[%s2038_s21 + $0x8] sm:$0xff]  ;;  %s2773_s29 = scalar_lea.vmem %s3337_s3, %s2032_s18  ;;  %s3185_s6 = scalar_lea.vmem %s3338_s4, %s2032_s18 }
  0x12   : > { %v365_v3 = vmul.f32 %v2041_v0, %v2041_v0  ;;  %v367_v4 = vmul.f32 %v2044_v1, %v2044_v1  ;;  %v366_v5 = vmul.f32 %v2047_v2, %v2047_v2  ;;  %v2056_v6 = vld [vmem:[%s2038_s21 + $0x18] sm:$0xff]  ;;  %v2061_v8 = vld [vmem:[%s2038_s21 + $0x20] sm:$0xff]  ;;  %v2064_v9 = vld [vmem:[%s2038_s21 + $0x28] sm:$0xff] }
  0x13   : > { %v368_v7 = vmul.f32 %v2056_v6, %v2056_v6  ;;  %v369_v14 = vmul.f32 %v2061_v8, %v2061_v8  ;;  %v370_v15 = vmul.f32 %v2064_v9, %v2064_v9  ;;  %v2075_v16 = vld [vmem:[%s2038_s21 + $0x30] sm:$0xff]  ;;  %v2078_v17 = vld [vmem:[%s2038_s21 + $0x38] sm:$0xff]  ;;  %v2087_v22 = vld [vmem:[%s2038_s21 + $0x40] sm:$0xff] }
  0x14   : > { %v430_v10 = vsel %vm429_vm0, %v365_v3, 0.0  ;;  %v436_v11 = vsel %vm429_vm0, %v367_v4, 0.0  ;;  %v433_v12 = vsel %vm429_vm0, %v366_v5, 0.0  ;;  %v371_v20 = vmul.f32 %v2075_v16, %v2075_v16  ;;  %v2090_v23 = vld [vmem:[%s2038_s21 + $0x48] sm:$0xff]  ;;  %v2099_v28 = vld [vmem:[%s2038_s21 + $0x50] sm:$0xff]  ;;  %v2102_v29 = vld [vmem:[%s2038_s21 + $0x58] sm:$0xff] }
  0x15   : > { %431 = vadd.xlane.f32.xlu0 %v430_v10  ;;  %437 = vadd.xlane.f32.xlu1 %v436_v11  ;;  %v439_v13 = vsel %vm429_vm0, %v368_v7, 0.0  ;;  %v442_v18 = vsel %vm429_vm0, %v369_v14, 0.0  ;;  %v445_v19 = vsel %vm429_vm0, %v370_v15, 0.0  ;;  %v372_v21 = vmul.f32 %v2078_v17, %v2078_v17  ;;  %v2111_v34 = vld [vmem:[%s2038_s21 + $0x60] sm:$0xff]  ;;  %v2114_v35 = vld [vmem:[%s2038_s21 + $0x68] sm:$0xff]  ;;  %v2123_v40 = vld [vmem:[%s2038_s21 + $0x70] sm:$0xff] }
  0x16   : > { %v448_v24 = vsel %vm429_vm0, %v371_v20, 0.0  ;;  %v373_v26 = vmul.f32 %v2087_v22, %v2087_v22  ;;  %v374_v27 = vmul.f32 %v2090_v23, %v2090_v23  ;;  %v375_v32 = vmul.f32 %v2099_v28, %v2099_v28  ;;  %v2126_v41 = vld [vmem:[%s2038_s21 + $0x78] sm:$0xff]  ;;  %v2135_v46 = vld [vmem:[%s2038_s21 + $0x80] sm:$0xff]  ;;  %v2138_v47 = vld [vmem:[%s2038_s21 + $0x88] sm:$0xff] }
  0x17   : > { %v451_v25 = vsel %vm429_vm0, %v372_v21, 0.0  ;;  %v376_v33 = vmul.f32 %v2102_v29, %v2102_v29  ;;  %v377_v38 = vmul.f32 %v2111_v34, %v2111_v34  ;;  %v378_v39 = vmul.f32 %v2114_v35, %v2114_v35  ;;  %v2147_v52 = vld [vmem:[%s2038_s21 + $0x90] sm:$0xff]  ;;  %v2150_v53 = vld [vmem:[%s2038_s21 + $0x98] sm:$0xff]  ;;  %v2159_v58 = vld [vmem:[%s2038_s21 + $0xa0] sm:$0xff] }
  0x18   : > { %v454_v30 = vsel %vm429_vm0, %v373_v26, 0.0  ;;  %v457_v31 = vsel %vm429_vm0, %v374_v27, 0.0  ;;  %v460_v36 = vsel %vm429_vm0, %v375_v32, 0.0  ;;  %v379_v44 = vmul.f32 %v2123_v40, %v2123_v40  ;;  %v2162_v59 = vld [vmem:[%s2038_s21 + $0xa8] sm:$0xff]  ;;  %v2171_v3 = vld [vmem:[%s2038_s21 + $0xb0] sm:$0xff]  ;;  %v2174_v4 = vld [vmem:[%s2038_s21 + $0xb8] sm:$0xff] }
  0x19   : > { %434 = vadd.xlane.f32.xlu0 %v433_v12  ;;  %440 = vadd.xlane.f32.xlu1 %v439_v13  ;;  %v463_v37 = vsel %vm429_vm0, %v376_v33, 0.0  ;;  %v466_v42 = vsel %vm429_vm0, %v377_v38, 0.0  ;;  %v469_v43 = vsel %vm429_vm0, %v378_v39, 0.0  ;;  %v380_v45 = vmul.f32 %v2126_v41, %v2126_v41  ;;  %v2183_v12 = vld [vmem:[%s2038_s21 + $0xc0] sm:$0xff]  ;;  %v2186_v13 = vld [vmem:[%s2038_s21 + $0xc8] sm:$0xff]  ;;  %v2195_v20 = vld [vmem:[%s2038_s21 + $0xd0] sm:$0xff] }
  0x1a   : > { %v472_v48 = vsel %vm429_vm0, %v379_v44, 0.0  ;;  %v381_v50 = vmul.f32 %v2135_v46, %v2135_v46  ;;  %v382_v51 = vmul.f32 %v2138_v47, %v2138_v47  ;;  %v383_v56 = vmul.f32 %v2147_v52, %v2147_v52  ;;  %v2198_v21 = vld [vmem:[%s2038_s21 + $0xd8] sm:$0xff]  ;;  %v2219_v38 = vld [vmem:[%s2038_s21 + $0xf0] sm:$0xff] }
  0x1b   : > { %v475_v49 = vsel %vm429_vm0, %v380_v45, 0.0  ;;  %v384_v57 = vmul.f32 %v2150_v53, %v2150_v53  ;;  %v385_v62 = vmul.f32 %v2159_v58, %v2159_v58  ;;  %v386_v63 = vmul.f32 %v2162_v59, %v2162_v59  ;;  %v2222_v39 = vld [vmem:[%s2038_s21 + $0xf8] sm:$0xff] }
  0x1c   : > { %v478_v54 = vsel %vm429_vm0, %v381_v50, 0.0  ;;  %v481_v55 = vsel %vm429_vm0, %v382_v51, 0.0  ;;  %v484_v60 = vsel %vm429_vm0, %v383_v56, 0.0  ;;  %v387_v10 = vmul.f32 %v2171_v3, %v2171_v3  ;;  %v2243_v56 = vld [vmem:[%s2038_s21 + $0x110] sm:$0xff] }
  0x1d   : > { %443 = vadd.xlane.f32.xlu0 %v442_v18  ;;  %446 = vadd.xlane.f32.xlu1 %v445_v19  ;;  %v487_v61 = vsel %vm429_vm0, %v384_v57, 0.0  ;;  %v490_v5 = vsel %vm429_vm0, %v385_v62, 0.0  ;;  %v493_v7 = vsel %vm429_vm0, %v386_v63, 0.0  ;;  %v388_v11 = vmul.f32 %v2174_v4, %v2174_v4  ;;  %v2246_v57 = vld [vmem:[%s2038_s21 + $0x118] sm:$0xff] }
  0x1e   : > { %v496_v14 = vsel %vm429_vm0, %v387_v10, 0.0  ;;  %v389_v18 = vmul.f32 %v2183_v12, %v2183_v12  ;;  %v390_v19 = vmul.f32 %v2186_v13, %v2186_v13  ;;  %v391_v26 = vmul.f32 %v2195_v20, %v2195_v20 }
  0x1f   : > { %v499_v15 = vsel %vm429_vm0, %v388_v11, 0.0  ;;  %v392_v27 = vmul.f32 %v2198_v21, %v2198_v21  ;;  %v395_v44 = vmul.f32 %v2219_v38, %v2219_v38  ;;  %v396_v45 = vmul.f32 %v2222_v39, %v2222_v39 }
  0x20   : > { %v508_v32 = vsel %vm429_vm0, %v391_v26, 0.0  ;;  %v399_v62 = vmul.f32 %v2243_v56, %v2243_v56  ;;  %v400_v63 = vmul.f32 %v2246_v57, %v2246_v57 }
  0x21   : > { %449 = vadd.xlane.f32.xlu0 %v448_v24  ;;  %452 = vadd.xlane.f32.xlu1 %v451_v25  ;;  %v502_v24 = vsel %vm429_vm0, %v389_v18, 0.0  ;;  %v505_v25 = vsel %vm429_vm0, %v390_v19, 0.0  ;;  %v511_v33 = vsel %vm429_vm0, %v392_v27, 0.0  ;;  %v520_v50 = vsel %vm429_vm0, %v395_v44, 0.0  ;;  %v2267_v18 = vld [vmem:[%s2038_s21 + $0x130] sm:$0xff]  ;;  %v2270_v19 = vld [vmem:[%s2038_s21 + $0x138] sm:$0xff] }
  0x22   : > { %v523_v51 = vsel %vm429_vm0, %v396_v45, 0.0  ;;  %v532_v10 = vsel %vm429_vm0, %v399_v62, 0.0  ;;  %v535_v11 = vsel %vm429_vm0, %v400_v63, 0.0  ;;  %v403_v26 = vmul.f32 %v2267_v18, %v2267_v18  ;;  %v2291_v44 = vld [vmem:[%s2038_s21 + $0x150] sm:$0xff]  ;;  %v2294_v45 = vld [vmem:[%s2038_s21 + $0x158] sm:$0xff] }
  0x23   : > { %v404_v27 = vmul.f32 %v2270_v19, %v2270_v19 }
  0x25   : > { %455 = vadd.xlane.f32.xlu0 %v454_v30  ;;  %458 = vadd.xlane.f32.xlu1 %v457_v31  ;;  %v2207_v30 = vld [vmem:[%s2038_s21 + $0xe0] sm:$0xff]  ;;  %v2210_v31 = vld [vmem:[%s2038_s21 + $0xe8] sm:$0xff] }
  0x29   : > { %461 = vadd.xlane.f32.xlu0 %v460_v36  ;;  %464 = vadd.xlane.f32.xlu1 %v463_v37  ;;  %v393_v36 = vmul.f32 %v2207_v30, %v2207_v30  ;;  %v394_v37 = vmul.f32 %v2210_v31, %v2210_v31 }
  0x2d   : > { %467 = vadd.xlane.f32.xlu0 %v466_v42  ;;  %470 = vadd.xlane.f32.xlu1 %v469_v43  ;;  %v514_v42 = vsel %vm429_vm0, %v393_v36, 0.0  ;;  %v517_v43 = vsel %vm429_vm0, %v394_v37, 0.0  ;;  %v544_v36 = vsel %vm429_vm0, %v403_v26, 0.0  ;;  %v547_v37 = vsel %vm429_vm0, %v404_v27, 0.0 }
  0x31   : > { %473 = vadd.xlane.f32.xlu0 %v472_v48  ;;  %476 = vadd.xlane.f32.xlu1 %v475_v49  ;;  %v2231_v48 = vld [vmem:[%s2038_s21 + $0x100] sm:$0xff]  ;;  %v2234_v49 = vld [vmem:[%s2038_s21 + $0x108] sm:$0xff] }
  0x35   : > { %479 = vadd.xlane.f32.xlu0 %v478_v54  ;;  %482 = vadd.xlane.f32.xlu1 %v481_v55  ;;  %v397_v54 = vmul.f32 %v2231_v48, %v2231_v48  ;;  %v398_v55 = vmul.f32 %v2234_v49, %v2234_v49 }
  0x39   : > { %485 = vadd.xlane.f32.xlu0 %v484_v60  ;;  %488 = vadd.xlane.f32.xlu1 %v487_v61  ;;  %v526_v60 = vsel %vm429_vm0, %v397_v54, 0.0  ;;  %v529_v61 = vsel %vm429_vm0, %v398_v55, 0.0  ;;  %v407_v54 = vmul.f32 %v2291_v44, %v2291_v44  ;;  %v408_v55 = vmul.f32 %v2294_v45, %v2294_v45 }
  0x3b   : > { %v556_v62 = vsel %vm429_vm0, %v407_v54, 0.0  ;;  %v559_v63 = vsel %vm429_vm0, %v408_v55, 0.0  ;;  %v351_v54 = vld [vmem:[%s2038_s21 + $0x190] sm:$0xff]  ;;  %v352_v55 = vld [vmem:[%s2038_s21 + $0x198] sm:$0xff] }
  0x3d   : > { %491 = vadd.xlane.f32.xlu0 %v490_v5  ;;  %494 = vadd.xlane.f32.xlu1 %v493_v7  ;;  %v2255_v5 = vld [vmem:[%s2038_s21 + $0x120] sm:$0xff]  ;;  %v2258_v7 = vld [vmem:[%s2038_s21 + $0x128] sm:$0xff] }
  0x41   : > { %497 = vadd.xlane.f32.xlu0 %v496_v14  ;;  %500 = vadd.xlane.f32.xlu1 %v499_v15  ;;  %v401_v14 = vmul.f32 %v2255_v5, %v2255_v5  ;;  %v402_v15 = vmul.f32 %v2258_v7, %v2258_v7 }
  0x45   : > { %503 = vadd.xlane.f32.xlu0 %v502_v24  ;;  %506 = vadd.xlane.f32.xlu1 %v505_v25  ;;  %v538_v24 = vsel %vm429_vm0, %v401_v14, 0.0  ;;  %v541_v25 = vsel %vm429_vm0, %v402_v15, 0.0  ;;  %v347_v14 = vld [vmem:[%s2038_s21 + $0x170] sm:$0xff]  ;;  %v348_v15 = vld [vmem:[%s2038_s21 + $0x178] sm:$0xff] }
  0x46   : > { %v411_v26 = vmul.f32 %v347_v14, %v347_v14  ;;  %v412_v27 = vmul.f32 %v348_v15, %v348_v15  ;;  %v354_v14 = vld [vmem:[%s2038_s21 + $0x1a8] sm:$0xff] }
  0x49   : > { %509 = vadd.xlane.f32.xlu0 %v508_v32  ;;  %512 = vadd.xlane.f32.xlu1 %v511_v33  ;;  %v2279_v32 = vld [vmem:[%s2038_s21 + $0x140] sm:$0xff]  ;;  %v2282_v33 = vld [vmem:[%s2038_s21 + $0x148] sm:$0xff] }
  0x4d   : > { %515 = vadd.xlane.f32.xlu0 %v514_v42  ;;  %518 = vadd.xlane.f32.xlu1 %v517_v43  ;;  %v405_v42 = vmul.f32 %v2279_v32, %v2279_v32  ;;  %v406_v43 = vmul.f32 %v2282_v33, %v2282_v33 }
  0x51   : > { %521 = vadd.xlane.f32.xlu0 %v520_v50  ;;  %524 = vadd.xlane.f32.xlu1 %v523_v51  ;;  %v550_v50 = vsel %vm429_vm0, %v405_v42, 0.0  ;;  %v553_v51 = vsel %vm429_vm0, %v406_v43, 0.0  ;;  %v568_v42 = vsel %vm429_vm0, %v411_v26, 0.0  ;;  %v571_v43 = vsel %vm429_vm0, %v412_v27, 0.0  ;;  %v355_v27 = vld [vmem:[%s2038_s21 + $0x1b0] sm:$0xff] }
  0x52   : > { %v418_v26 = vmul.f32 %v354_v14, %v354_v14 }
  0x55   : > { %527 = vadd.xlane.f32.xlu0 %v526_v60  ;;  %530 = vadd.xlane.f32.xlu1 %v529_v61  ;;  %v2303_v60 = vld [vmem:[%s2038_s21 + $0x160] sm:$0xff]  ;;  %v346_v61 = vld [vmem:[%s2038_s21 + $0x168] sm:$0xff] }
  0x59   : > { %533 = vadd.xlane.f32.xlu0 %v532_v10  ;;  %536 = vadd.xlane.f32.xlu1 %v535_v11  ;;  %v409_v10 = vmul.f32 %v2303_v60, %v2303_v60  ;;  %v410_v11 = vmul.f32 %v346_v61, %v346_v61 }
  0x5d   : > { %539 = vadd.xlane.f32.xlu0 %v538_v24  ;;  %542 = vadd.xlane.f32.xlu1 %v541_v25  ;;  %v562_v24 = vsel %vm429_vm0, %v409_v10, 0.0  ;;  %v565_v25 = vsel %vm429_vm0, %v410_v11, 0.0  ;;  %v416_v10 = vmul.f32 %v352_v55, %v352_v55  ;;  %v353_v11 = vld [vmem:[%s2038_s21 + $0x1a0] sm:$0xff] }
  0x61   : > { %545 = vadd.xlane.f32.xlu0 %v544_v36  ;;  %548 = vadd.xlane.f32.xlu1 %v547_v37  ;;  %v349_v36 = vld [vmem:[%s2038_s21 + $0x180] sm:$0xff]  ;;  %v350_v37 = vld [vmem:[%s2038_s21 + $0x188] sm:$0xff] }
  0x65   : > { %551 = vadd.xlane.f32.xlu0 %v550_v50  ;;  %554 = vadd.xlane.f32.xlu1 %v553_v51  ;;  %v413_v50 = vmul.f32 %v349_v36, %v349_v36  ;;  %v414_v51 = vmul.f32 %v350_v37, %v350_v37  ;;  %v356_v36 = vld [vmem:[%s2038_s21 + $0x1b8] sm:$0xff] }
  0x67   : > { %v574_v61 = vsel %vm429_vm0, %v413_v50, 0.0  ;;  %v420_v50 = vmul.f32 %v356_v36, %v356_v36 }
  0x69   : > { %557 = vadd.xlane.f32.xlu0 %v556_v62  ;;  %560 = vadd.xlane.f32.xlu1 %v559_v63  ;;  %v577_v62 = vsel %vm429_vm0, %v414_v51, 0.0  ;;  %v415_v63 = vmul.f32 %v351_v54, %v351_v54  ;;  %v357_v51 = vld [vmem:[%s2038_s21 + $0x1c0] sm:$0xff]  ;;  %v358_v54 = vld [vmem:[%s2038_s21 + $0x1c8] sm:$0xff] }
  0x6b   : > { %v580_v15 = vsel %vm429_vm0, %v415_v63, 0.0  ;;  %v422_v63 = vmul.f32 %v358_v54, %v358_v54 }
  0x6d   : > { %563 = vadd.xlane.f32.xlu0 %v562_v24  ;;  %566 = vadd.xlane.f32.xlu1 %v565_v25  ;;  %v583_v24 = vsel %vm429_vm0, %v416_v10, 0.0  ;;  %v417_v25 = vmul.f32 %v353_v11, %v353_v11  ;;  %v359_v10 = vld [vmem:[%s2038_s21 + $0x1d0] sm:$0xff]  ;;  %v360_v11 = vld [vmem:[%s2038_s21 + $0x1d8] sm:$0xff] }
  0x6f   : > { %v586_v37 = vsel %vm429_vm0, %v417_v25, 0.0  ;;  %v424_v25 = vmul.f32 %v360_v11, %v360_v11 }
  0x71   : > { %569 = vadd.xlane.f32.xlu0 %v568_v42  ;;  %572 = vadd.xlane.f32.xlu1 %v571_v43  ;;  %v589_v42 = vsel %vm429_vm0, %v418_v26, 0.0  ;;  %v419_v43 = vmul.f32 %v355_v27, %v355_v27  ;;  %v361_v26 = vld [vmem:[%s2038_s21 + $0x1e0] sm:$0xff]  ;;  %v362_v27 = vld [vmem:[%s2038_s21 + $0x1e8] sm:$0xff] }
  0x73   : > { %v592_v55 = vsel %vm429_vm0, %v419_v43, 0.0  ;;  %v426_v43 = vmul.f32 %v362_v27, %v362_v27 }
  0x75   : > { %575 = vadd.xlane.f32.xlu0 %v574_v61  ;;  %578 = vadd.xlane.f32.xlu1 %v577_v62  ;;  %v595_v61 = vsel %vm429_vm0, %v420_v50, 0.0  ;;  %v421_v62 = vmul.f32 %v357_v51, %v357_v51  ;;  %v363_v50 = vld [vmem:[%s2038_s21 + $0x1f0] sm:$0xff]  ;;  %v364_v51 = vld [vmem:[%s2038_s21 + $0x1f8] sm:$0xff] }
  0x77   : > { %v598_v14 = vsel %vm429_vm0, %v421_v62, 0.0  ;;  %v428_v62 = vmul.f32 %v364_v51, %v364_v51 }
  0x79   : > { %581 = vadd.xlane.f32.xlu0 %v580_v15  ;;  %584 = vadd.xlane.f32.xlu1 %v583_v24  ;;  %v601_v15 = vsel %vm429_vm0, %v422_v63, 0.0  ;;  %v423_v24 = vmul.f32 %v359_v10, %v359_v10  ;;  %v619_v10 = vsel %vm429_vm0, %v428_v62, 0.0 }
  0x7b   : > { %v604_v36 = vsel %vm429_vm0, %v423_v24, 0.0 }
  0x7d   : > { %587 = vadd.xlane.f32.xlu0 %v586_v37  ;;  %590 = vadd.xlane.f32.xlu1 %v589_v42  ;;  %v607_v37 = vsel %vm429_vm0, %v424_v25, 0.0  ;;  %v425_v42 = vmul.f32 %v361_v26, %v361_v26 }
  0x7f   : > { %v610_v54 = vsel %vm429_vm0, %v425_v42, 0.0 }
  0x81   : > { %593 = vadd.xlane.f32.xlu0 %v592_v55  ;;  %596 = vadd.xlane.f32.xlu1 %v595_v61  ;;  %v613_v55 = vsel %vm429_vm0, %v426_v43, 0.0  ;;  %v427_v61 = vmul.f32 %v363_v50, %v363_v50 }
  0x83   : > { %v616_v63 = vsel %vm429_vm0, %v427_v61, 0.0 }
  0x85   : > { %599 = vadd.xlane.f32.xlu0 %v598_v14  ;;  %602 = vadd.xlane.f32.xlu1 %v601_v15 }
  0x89   : > { %605 = vadd.xlane.f32.xlu0 %v604_v36  ;;  %608 = vadd.xlane.f32.xlu1 %v607_v37 }
  0x8d   : > { %611 = vadd.xlane.f32.xlu0 %v610_v54  ;;  %614 = vadd.xlane.f32.xlu1 %v613_v55 }
  0x91   : > { %617 = vadd.xlane.f32.xlu0 %v616_v63  ;;  %620 = vadd.xlane.f32.xlu1 %v619_v10 }
  0x9e   : > { %v432_v11 = vpop.xlane.xlu0 %431  ;;  %v438_v14 = vpop.xlane.xlu1 %437 }
  0x9f   : > { %v622_v15 = vmax.f32 %v432_v11, 1e-24  ;;  %v624_v24 = vmax.f32 %v438_v14, 1e-24  ;;  %v237_v11 = vld [vmem:[%s2352_s24] sm:$0xff] }
  0xa1   : > { %1780 = vrsqrt.f32 %v622_v15 }
  0xa2   : > { %1782 = vrsqrt.f32 %v624_v24  ;;  %v435_v25 = vpop.xlane.xlu0 %434  ;;  %v441_v26 = vpop.xlane.xlu1 %440 }
  0xa3   : > { %v623_v27 = vmax.f32 %v435_v25, 1e-24  ;;  %v625_v36 = vmax.f32 %v441_v26, 1e-24  ;;  %v239_v26 = vld [vmem:[%s2352_s24 + $0x10] sm:$0xff] }
  0xa5   : > { %1784 = vrsqrt.f32 %v623_v27 }
  0xa6   : > { %1786 = vrsqrt.f32 %v625_v36  ;;  %v444_v37 = vpop.xlane.xlu0 %443  ;;  %v447_v42 = vpop.xlane.xlu1 %446 }
  0xa7   : > { %v626_v43 = vmax.f32 %v444_v37, 1e-24  ;;  %v627_v50 = vmax.f32 %v447_v42, 1e-24 }
  0xa9   : > { %1788 = vrsqrt.f32 %v626_v43 }
  0xaa   : > { %1790 = vrsqrt.f32 %v627_v50  ;;  %v450_v51 = vpop.xlane.xlu0 %449  ;;  %v453_v54 = vpop.xlane.xlu1 %452  ;;  %v238_v50 = vld [vmem:[%s2352_s24 + $0x8] sm:$0xff] }
  0xab   : > { %v628_v55 = vmax.f32 %v450_v51, 1e-24  ;;  %v629_v61 = vmax.f32 %v453_v54, 1e-24 }
  0xad   : > { %1792 = vrsqrt.f32 %v628_v55 }
  0xae   : > { %v1781_v62 = vpop.eup %1780  ;;  %1794 = vrsqrt.f32 %v629_v61  ;;  %v456_v63 = vpop.xlane.xlu0 %455 }
  0xaf   : > { %v459_v10 = vpop.xlane.xlu1 %458  ;;  %v1783_v14 = vpop.eup %1782  ;;  %v630_v15 = vmax.f32 %v456_v63, 1e-24  ;;  %v2356_v25 = vmul.f32 %v1781_v62, %v2041_v0 }
  0xb0   : > { %v631_v24 = vmax.f32 %v459_v10, 1e-24  ;;  %v2360_v27 = vmul.f32 %v1783_v14, %v2044_v1  ;;  %v240_v1 = vld [vmem:[%s2352_s24 + $0x18] sm:$0xff] }
  0xb1   : > { %1796 = vrsqrt.f32 %v630_v15  ;;  %v814_v36 = vmul.f32 %v2356_v25, %v237_v11 }
  0xb2   : > { %v1785_v37 = vpop.eup %1784  ;;  %1798 = vrsqrt.f32 %v631_v24  ;;  %v462_v42 = vpop.xlane.xlu0 %461  ;;  %v816_v51 = vmul.f32 %v2360_v27, %v239_v26 }
  0xb3   : > { %v465_v43 = vpop.xlane.xlu1 %464  ;;  %v1787_v54 = vpop.eup %1786  ;;  %v632_v55 = vmax.f32 %v462_v42, 1e-24  ;;  %v878_v0 = vsel %vm429_vm0, %v814_v36, 0.0  ;;  %v2367_v62 = vmul.f32 %v1785_v37, %v2047_v2  ;;  %v241_v36 = vld [vmem:[%s2352_s24 + $0x20] sm:$0xff] }
  0xb4   : > { %v633_v61 = vmax.f32 %v465_v43, 1e-24  ;;  %879 = vadd.xlane.f32.xlu0 %v878_v0  ;;  %v2371_v63 = vmul.f32 %v1787_v54, %v2056_v6  ;;  %v884_v11 = vsel %vm429_vm0, %v816_v51, 0.0  ;;  %v242_v54 = vld [vmem:[%s2352_s24 + $0x28] sm:$0xff] }
  0xb5   : > { %1800 = vrsqrt.f32 %v632_v55  ;;  %v815_v10 = vmul.f32 %v2367_v62, %v238_v50 }
  0xb6   : > { %v1789_v14 = vpop.eup %1788  ;;  %1802 = vrsqrt.f32 %v633_v61  ;;  %v468_v15 = vpop.xlane.xlu0 %467  ;;  %v817_v26 = vmul.f32 %v2371_v63, %v240_v1 }
  0xb7   : > { %v471_v24 = vpop.xlane.xlu1 %470  ;;  %v1791_v2 = vpop.eup %1790  ;;  %v634_v37 = vmax.f32 %v468_v15, 1e-24  ;;  %v881_v42 = vsel %vm429_vm0, %v815_v10, 0.0  ;;  %v2379_v6 = vmul.f32 %v1789_v14, %v2061_v8  ;;  %v243_v8 = vld [vmem:[%s2352_s24 + $0x30] sm:$0xff] }
  0xb8   : > { %v635_v43 = vmax.f32 %v471_v24, 1e-24  ;;  %882 = vadd.xlane.f32.xlu1 %v881_v42  ;;  %885 = vadd.xlane.f32.xlu0 %v884_v11  ;;  %v2383_v50 = vmul.f32 %v1791_v2, %v2064_v9  ;;  %v887_v51 = vsel %vm429_vm0, %v817_v26, 0.0  ;;  %v244_v2 = vld [vmem:[%s2352_s24 + $0x38] sm:$0xff] }
  0xb9   : > { %1804 = vrsqrt.f32 %v634_v37  ;;  %v818_v55 = vmul.f32 %v2379_v6, %v241_v36 }
  0xba   : > { %v1793_v0 = vpop.eup %1792  ;;  %1806 = vrsqrt.f32 %v635_v43  ;;  %v474_v61 = vpop.xlane.xlu0 %473  ;;  %v819_v10 = vmul.f32 %v2383_v50, %v242_v54 }
  0xbb   : > { %v477_v1 = vpop.xlane.xlu1 %476  ;;  %v1795_v14 = vpop.eup %1794  ;;  %v636_v15 = vmax.f32 %v474_v61, 1e-24  ;;  %v890_v11 = vsel %vm429_vm0, %v818_v55, 0.0  ;;  %v2391_v9 = vmul.f32 %v1793_v0, %v2075_v16  ;;  %v245_v16 = vld [vmem:[%s2352_s24 + $0x40] sm:$0xff] }
  0xbc   : > { %v637_v24 = vmax.f32 %v477_v1, 1e-24  ;;  %888 = vadd.xlane.f32.xlu1 %v887_v51  ;;  %891 = vadd.xlane.f32.xlu0 %v890_v11  ;;  %v2395_v26 = vmul.f32 %v1795_v14, %v2078_v17  ;;  %v893_v36 = vsel %vm429_vm0, %v819_v10, 0.0  ;;  %v246_v14 = vld [vmem:[%s2352_s24 + $0x48] sm:$0xff] }
  0xbd   : > { %1808 = vrsqrt.f32 %v636_v15  ;;  %v820_v37 = vmul.f32 %v2391_v9, %v243_v8 }
  0xbe   : > { %v1797_v42 = vpop.eup %1796  ;;  %1810 = vrsqrt.f32 %v637_v24  ;;  %v480_v43 = vpop.xlane.xlu0 %479  ;;  %v821_v55 = vmul.f32 %v2395_v26, %v244_v2 }
  0xbf   : > { %v483_v54 = vpop.xlane.xlu1 %482  ;;  %v1799_v0 = vpop.eup %1798  ;;  %v638_v61 = vmax.f32 %v480_v43, 1e-24  ;;  %v896_v51 = vsel %vm429_vm0, %v820_v37, 0.0  ;;  %v2403_v17 = vmul.f32 %v1797_v42, %v2087_v22  ;;  %v247_v22 = vld [vmem:[%s2352_s24 + $0x50] sm:$0xff] }
  0xc0   : > { %v639_v1 = vmax.f32 %v483_v54, 1e-24  ;;  %894 = vadd.xlane.f32.xlu1 %v893_v36  ;;  %897 = vadd.xlane.f32.xlu0 %v896_v51  ;;  %v2407_v10 = vmul.f32 %v1799_v0, %v2090_v23  ;;  %v899_v8 = vsel %vm429_vm0, %v821_v55, 0.0  ;;  %v248_v0 = vld [vmem:[%s2352_s24 + $0x58] sm:$0xff] }
  0xc1   : > { %1812 = vrsqrt.f32 %v638_v61  ;;  %v822_v15 = vmul.f32 %v2403_v17, %v245_v16 }
  0xc2   : > { %v1801_v11 = vpop.eup %1800  ;;  %1814 = vrsqrt.f32 %v639_v1  ;;  %v486_v24 = vpop.xlane.xlu0 %485  ;;  %v823_v37 = vmul.f32 %v2407_v10, %v246_v14 }
  0xc3   : > { %v489_v2 = vpop.xlane.xlu1 %488  ;;  %v1803_v42 = vpop.eup %1802  ;;  %v640_v43 = vmax.f32 %v486_v24, 1e-24  ;;  %v902_v36 = vsel %vm429_vm0, %v822_v15, 0.0  ;;  %v2415_v23 = vmul.f32 %v1801_v11, %v2099_v28  ;;  %v249_v28 = vld [vmem:[%s2352_s24 + $0x60] sm:$0xff] }
  0xc4   : > { %v641_v54 = vmax.f32 %v489_v2, 1e-24  ;;  %900 = vadd.xlane.f32.xlu1 %v899_v8  ;;  %903 = vadd.xlane.f32.xlu0 %v902_v36  ;;  %v2419_v55 = vmul.f32 %v1803_v42, %v2102_v29  ;;  %v905_v16 = vsel %vm429_vm0, %v823_v37, 0.0  ;;  %v250_v42 = vld [vmem:[%s2352_s24 + $0x68] sm:$0xff] }
  0xc5   : > { %1816 = vrsqrt.f32 %v640_v43  ;;  %v824_v61 = vmul.f32 %v2415_v23, %v247_v22 }
  0xc6   : > { %v1805_v51 = vpop.eup %1804  ;;  %1818 = vrsqrt.f32 %v641_v54  ;;  %v492_v1 = vpop.xlane.xlu0 %491  ;;  %v825_v15 = vmul.f32 %v2419_v55, %v248_v0 }
  0xc7   : > { %v495_v14 = vpop.xlane.xlu1 %494  ;;  %v1807_v11 = vpop.eup %1806  ;;  %v642_v24 = vmax.f32 %v492_v1, 1e-24  ;;  %v908_v8 = vsel %vm429_vm0, %v824_v61, 0.0  ;;  %v2427_v29 = vmul.f32 %v1805_v51, %v2111_v34  ;;  %v251_v34 = vld [vmem:[%s2352_s24 + $0x70] sm:$0xff] }
  0xc8   : > { %v643_v2 = vmax.f32 %v495_v14, 1e-24  ;;  %906 = vadd.xlane.f32.xlu1 %v905_v16  ;;  %909 = vadd.xlane.f32.xlu0 %v908_v8  ;;  %v2431_v37 = vmul.f32 %v1807_v11, %v2114_v35  ;;  %v911_v22 = vsel %vm429_vm0, %v825_v15, 0.0  ;;  %v252_v11 = vld [vmem:[%s2352_s24 + $0x78] sm:$0xff] }
  0xc9   : > { %1820 = vrsqrt.f32 %v642_v24  ;;  %v826_v43 = vmul.f32 %v2427_v29, %v249_v28 }
  0xca   : > { %v1809_v36 = vpop.eup %1808  ;;  %1822 = vrsqrt.f32 %v643_v2  ;;  %v498_v54 = vpop.xlane.xlu0 %497  ;;  %v827_v61 = vmul.f32 %v2431_v37, %v250_v42 }
  0xcb   : > { %v501_v0 = vpop.xlane.xlu1 %500  ;;  %v1811_v51 = vpop.eup %1810  ;;  %v644_v1 = vmax.f32 %v498_v54, 1e-24  ;;  %v914_v16 = vsel %vm429_vm0, %v826_v43, 0.0  ;;  %v2439_v35 = vmul.f32 %v1809_v36, %v2123_v40  ;;  %v253_v40 = vld [vmem:[%s2352_s24 + $0x80] sm:$0xff] }
  0xcc   : > { %v645_v14 = vmax.f32 %v501_v0, 1e-24  ;;  %912 = vadd.xlane.f32.xlu1 %v911_v22  ;;  %915 = vadd.xlane.f32.xlu0 %v914_v16  ;;  %v2443_v15 = vmul.f32 %v1811_v51, %v2126_v41  ;;  %v917_v28 = vsel %vm429_vm0, %v827_v61, 0.0  ;;  %v254_v51 = vld [vmem:[%s2352_s24 + $0x88] sm:$0xff] }
  0xcd   : > { %1824 = vrsqrt.f32 %v644_v1  ;;  %v828_v24 = vmul.f32 %v2439_v35, %v251_v34 }
  0xce   : > { %v1813_v8 = vpop.eup %1812  ;;  %1826 = vrsqrt.f32 %v645_v14  ;;  %v504_v2 = vpop.xlane.xlu0 %503  ;;  %v829_v43 = vmul.f32 %v2443_v15, %v252_v11 }
  0xcf   : > { %v507_v42 = vpop.xlane.xlu1 %506  ;;  %v1815_v36 = vpop.eup %1814  ;;  %v646_v54 = vmax.f32 %v504_v2, 1e-24  ;;  %v920_v22 = vsel %vm429_vm0, %v828_v24, 0.0  ;;  %v2451_v41 = vmul.f32 %v1813_v8, %v2135_v46  ;;  %v255_v46 = vld [vmem:[%s2352_s24 + $0x90] sm:$0xff] }
  0xd0   : > { %v647_v0 = vmax.f32 %v507_v42, 1e-24  ;;  %918 = vadd.xlane.f32.xlu1 %v917_v28  ;;  %921 = vadd.xlane.f32.xlu0 %v920_v22  ;;  %v2455_v61 = vmul.f32 %v1815_v36, %v2138_v47  ;;  %v923_v34 = vsel %vm429_vm0, %v829_v43, 0.0  ;;  %v256_v36 = vld [vmem:[%s2352_s24 + $0x98] sm:$0xff] }
  0xd1   : > { %1828 = vrsqrt.f32 %v646_v54  ;;  %v830_v1 = vmul.f32 %v2451_v41, %v253_v40 }
  0xd2   : > { %v1817_v16 = vpop.eup %1816  ;;  %1830 = vrsqrt.f32 %v647_v0  ;;  %v510_v14 = vpop.xlane.xlu0 %509  ;;  %v831_v24 = vmul.f32 %v2455_v61, %v254_v51 }
  0xd3   : > { %v513_v11 = vpop.xlane.xlu1 %512  ;;  %v1819_v8 = vpop.eup %1818  ;;  %v648_v2 = vmax.f32 %v510_v14, 1e-24  ;;  %v926_v28 = vsel %vm429_vm0, %v830_v1, 0.0  ;;  %v2463_v47 = vmul.f32 %v1817_v16, %v2147_v52  ;;  %v257_v52 = vld [vmem:[%s2352_s24 + $0xa0] sm:$0xff] }
  0xd4   : > { %v649_v42 = vmax.f32 %v513_v11, 1e-24  ;;  %924 = vadd.xlane.f32.xlu1 %v923_v34  ;;  %927 = vadd.xlane.f32.xlu0 %v926_v28  ;;  %v2467_v43 = vmul.f32 %v1819_v8, %v2150_v53  ;;  %v929_v40 = vsel %vm429_vm0, %v831_v24, 0.0  ;;  %v258_v8 = vld [vmem:[%s2352_s24 + $0xa8] sm:$0xff] }
  0xd5   : > { %1832 = vrsqrt.f32 %v648_v2  ;;  %v832_v54 = vmul.f32 %v2463_v47, %v255_v46 }
  0xd6   : > { %v1821_v22 = vpop.eup %1820  ;;  %1834 = vrsqrt.f32 %v649_v42  ;;  %v516_v0 = vpop.xlane.xlu0 %515  ;;  %v833_v1 = vmul.f32 %v2467_v43, %v256_v36 }
  0xd7   : > { %v519_v51 = vpop.xlane.xlu1 %518  ;;  %v1823_v16 = vpop.eup %1822  ;;  %v650_v14 = vmax.f32 %v516_v0, 1e-24  ;;  %v932_v34 = vsel %vm429_vm0, %v832_v54, 0.0  ;;  %v2475_v53 = vmul.f32 %v1821_v22, %v2159_v58  ;;  %v259_v58 = vld [vmem:[%s2352_s24 + $0xb0] sm:$0xff] }
  0xd8   : > { %v651_v11 = vmax.f32 %v519_v51, 1e-24  ;;  %930 = vadd.xlane.f32.xlu1 %v929_v40  ;;  %933 = vadd.xlane.f32.xlu0 %v932_v34  ;;  %v2479_v24 = vmul.f32 %v1823_v16, %v2162_v59  ;;  %v935_v46 = vsel %vm429_vm0, %v833_v1, 0.0  ;;  %v260_v16 = vld [vmem:[%s2352_s24 + $0xb8] sm:$0xff] }
  0xd9   : > { %1836 = vrsqrt.f32 %v650_v14  ;;  %v834_v2 = vmul.f32 %v2475_v53, %v257_v52 }
  0xda   : > { %v1825_v28 = vpop.eup %1824  ;;  %1838 = vrsqrt.f32 %v651_v11  ;;  %v522_v42 = vpop.xlane.xlu0 %521  ;;  %v835_v54 = vmul.f32 %v2479_v24, %v258_v8 }
  0xdb   : > { %v525_v36 = vpop.xlane.xlu1 %524  ;;  %v1827_v22 = vpop.eup %1826  ;;  %v652_v0 = vmax.f32 %v522_v42, 1e-24  ;;  %v938_v40 = vsel %vm429_vm0, %v834_v2, 0.0  ;;  %v2487_v59 = vmul.f32 %v1825_v28, %v2171_v3  ;;  %v261_v3 = vld [vmem:[%s2352_s24 + $0xc0] sm:$0xff] }
  0xdc   : > { %v653_v51 = vmax.f32 %v525_v36, 1e-24  ;;  %936 = vadd.xlane.f32.xlu1 %v935_v46  ;;  %939 = vadd.xlane.f32.xlu0 %v938_v40  ;;  %v2491_v1 = vmul.f32 %v1827_v22, %v2174_v4  ;;  %v941_v52 = vsel %vm429_vm0, %v835_v54, 0.0  ;;  %v262_v22 = vld [vmem:[%s2352_s24 + $0xc8] sm:$0xff] }
  0xdd   : > { %1840 = vrsqrt.f32 %v652_v0  ;;  %v836_v14 = vmul.f32 %v2487_v59, %v259_v58 }
  0xde   : > { %v1829_v34 = vpop.eup %1828  ;;  %1842 = vrsqrt.f32 %v653_v51  ;;  %v528_v11 = vpop.xlane.xlu0 %527  ;;  %v837_v2 = vmul.f32 %v2491_v1, %v260_v16 }
  0xdf   : > { %v531_v8 = vpop.xlane.xlu1 %530  ;;  %v1831_v28 = vpop.eup %1830  ;;  %v654_v42 = vmax.f32 %v528_v11, 1e-24  ;;  %v944_v46 = vsel %vm429_vm0, %v836_v14, 0.0  ;;  %v2499_v4 = vmul.f32 %v1829_v34, %v2183_v12  ;;  %v263_v12 = vld [vmem:[%s2352_s24 + $0xd0] sm:$0xff] }
  0xe0   : > { %v655_v36 = vmax.f32 %v531_v8, 1e-24  ;;  %942 = vadd.xlane.f32.xlu1 %v941_v52  ;;  %945 = vadd.xlane.f32.xlu0 %v944_v46  ;;  %v2503_v54 = vmul.f32 %v1831_v28, %v2186_v13  ;;  %v947_v58 = vsel %vm429_vm0, %v837_v2, 0.0  ;;  %v264_v28 = vld [vmem:[%s2352_s24 + $0xd8] sm:$0xff] }
  0xe1   : > { %1844 = vrsqrt.f32 %v654_v42  ;;  %v838_v0 = vmul.f32 %v2499_v4, %v261_v3 }
  0xe2   : > { %v1833_v40 = vpop.eup %1832  ;;  %1846 = vrsqrt.f32 %v655_v36  ;;  %v534_v51 = vpop.xlane.xlu0 %533  ;;  %v839_v14 = vmul.f32 %v2503_v54, %v262_v22 }
  0xe3   : > { %v537_v16 = vpop.xlane.xlu1 %536  ;;  %v1835_v34 = vpop.eup %1834  ;;  %v656_v11 = vmax.f32 %v534_v51, 1e-24  ;;  %v950_v52 = vsel %vm429_vm0, %v838_v0, 0.0  ;;  %v2511_v13 = vmul.f32 %v1833_v40, %v2195_v20  ;;  %v265_v20 = vld [vmem:[%s2352_s24 + $0xe0] sm:$0xff] }
  0xe4   : > { %v657_v8 = vmax.f32 %v537_v16, 1e-24  ;;  %948 = vadd.xlane.f32.xlu1 %v947_v58  ;;  %951 = vadd.xlane.f32.xlu0 %v950_v52  ;;  %v2515_v2 = vmul.f32 %v1835_v34, %v2198_v21  ;;  %v953_v3 = vsel %vm429_vm0, %v839_v14, 0.0  ;;  %v266_v34 = vld [vmem:[%s2352_s24 + $0xe8] sm:$0xff] }
  0xe5   : > { %1848 = vrsqrt.f32 %v656_v11  ;;  %v840_v42 = vmul.f32 %v2511_v13, %v263_v12 }
  0xe6   : > { %v1837_v46 = vpop.eup %1836  ;;  %1850 = vrsqrt.f32 %v657_v8  ;;  %v540_v36 = vpop.xlane.xlu0 %539  ;;  %v841_v0 = vmul.f32 %v2515_v2, %v264_v28 }
  0xe7   : > { %v543_v22 = vpop.xlane.xlu1 %542  ;;  %v1839_v40 = vpop.eup %1838  ;;  %v658_v51 = vmax.f32 %v540_v36, 1e-24  ;;  %v956_v58 = vsel %vm429_vm0, %v840_v42, 0.0  ;;  %v2523_v21 = vmul.f32 %v1837_v46, %v2207_v30  ;;  %v267_v30 = vld [vmem:[%s2352_s24 + $0xf0] sm:$0xff] }
  0xe8   : > { %v659_v16 = vmax.f32 %v543_v22, 1e-24  ;;  %954 = vadd.xlane.f32.xlu1 %v953_v3  ;;  %957 = vadd.xlane.f32.xlu0 %v956_v58  ;;  %v2527_v14 = vmul.f32 %v1839_v40, %v2210_v31  ;;  %v959_v12 = vsel %vm429_vm0, %v841_v0, 0.0  ;;  %v268_v40 = vld [vmem:[%s2352_s24 + $0xf8] sm:$0xff] }
  0xe9   : > { %1852 = vrsqrt.f32 %v658_v51  ;;  %v842_v11 = vmul.f32 %v2523_v21, %v265_v20 }
  0xea   : > { %v1841_v52 = vpop.eup %1840  ;;  %1854 = vrsqrt.f32 %v659_v16  ;;  %v546_v8 = vpop.xlane.xlu0 %545  ;;  %v843_v42 = vmul.f32 %v2527_v14, %v266_v34 }
  0xeb   : > { %v549_v28 = vpop.xlane.xlu1 %548  ;;  %v1843_v46 = vpop.eup %1842  ;;  %v660_v36 = vmax.f32 %v546_v8, 1e-24  ;;  %v962_v3 = vsel %vm429_vm0, %v842_v11, 0.0  ;;  %v2535_v31 = vmul.f32 %v1841_v52, %v2219_v38  ;;  %v269_v38 = vld [vmem:[%s2352_s24 + $0x100] sm:$0xff] }
  0xec   : > { %v661_v22 = vmax.f32 %v549_v28, 1e-24  ;;  %960 = vadd.xlane.f32.xlu1 %v959_v12  ;;  %963 = vadd.xlane.f32.xlu0 %v962_v3  ;;  %v2539_v0 = vmul.f32 %v1843_v46, %v2222_v39  ;;  %v965_v20 = vsel %vm429_vm0, %v843_v42, 0.0  ;;  %v270_v46 = vld [vmem:[%s2352_s24 + $0x108] sm:$0xff] }
  0xed   : > { %1856 = vrsqrt.f32 %v660_v36  ;;  %v844_v51 = vmul.f32 %v2535_v31, %v267_v30 }
  0xee   : > { %v1845_v58 = vpop.eup %1844  ;;  %1858 = vrsqrt.f32 %v661_v22  ;;  %v552_v16 = vpop.xlane.xlu0 %551  ;;  %v845_v11 = vmul.f32 %v2539_v0, %v268_v40 }
  0xef   : > { %v555_v34 = vpop.xlane.xlu1 %554  ;;  %v1847_v52 = vpop.eup %1846  ;;  %v662_v8 = vmax.f32 %v552_v16, 1e-24  ;;  %v968_v12 = vsel %vm429_vm0, %v844_v51, 0.0  ;;  %v2547_v39 = vmul.f32 %v1845_v58, %v2231_v48  ;;  %v271_v48 = vld [vmem:[%s2352_s24 + $0x110] sm:$0xff] }
  0xf0   : > { %v663_v28 = vmax.f32 %v555_v34, 1e-24  ;;  %966 = vadd.xlane.f32.xlu1 %v965_v20  ;;  %969 = vadd.xlane.f32.xlu0 %v968_v12  ;;  %v2551_v42 = vmul.f32 %v1847_v52, %v2234_v49  ;;  %v971_v30 = vsel %vm429_vm0, %v845_v11, 0.0  ;;  %v272_v52 = vld [vmem:[%s2352_s24 + $0x118] sm:$0xff] }
  0xf1   : > { %1860 = vrsqrt.f32 %v662_v8  ;;  %v846_v36 = vmul.f32 %v2547_v39, %v269_v38 }
  0xf2   : > { %v1849_v3 = vpop.eup %1848  ;;  %1862 = vrsqrt.f32 %v663_v28  ;;  %v558_v22 = vpop.xlane.xlu0 %557  ;;  %v847_v51 = vmul.f32 %v2551_v42, %v270_v46 }
  0xf3   : > { %v561_v40 = vpop.xlane.xlu1 %560  ;;  %v1851_v58 = vpop.eup %1850  ;;  %v664_v16 = vmax.f32 %v558_v22, 1e-24  ;;  %v974_v20 = vsel %vm429_vm0, %v846_v36, 0.0  ;;  %v2559_v49 = vmul.f32 %v1849_v3, %v2243_v56  ;;  %v273_v56 = vld [vmem:[%s2352_s24 + $0x120] sm:$0xff] }
  0xf4   : > { %v665_v34 = vmax.f32 %v561_v40, 1e-24  ;;  %972 = vadd.xlane.f32.xlu1 %v971_v30  ;;  %975 = vadd.xlane.f32.xlu0 %v974_v20  ;;  %v2563_v11 = vmul.f32 %v1851_v58, %v2246_v57  ;;  %v977_v38 = vsel %vm429_vm0, %v847_v51, 0.0  ;;  %v274_v58 = vld [vmem:[%s2352_s24 + $0x128] sm:$0xff] }
  0xf5   : > { %1864 = vrsqrt.f32 %v664_v16  ;;  %v848_v8 = vmul.f32 %v2559_v49, %v271_v48 }
  0xf6   : > { %v1853_v12 = vpop.eup %1852  ;;  %1866 = vrsqrt.f32 %v665_v34  ;;  %v564_v28 = vpop.xlane.xlu0 %563  ;;  %v849_v36 = vmul.f32 %v2563_v11, %v272_v52 }
  0xf7   : > { %v567_v46 = vpop.xlane.xlu1 %566  ;;  %v1855_v3 = vpop.eup %1854  ;;  %v666_v22 = vmax.f32 %v564_v28, 1e-24  ;;  %v980_v30 = vsel %vm429_vm0, %v848_v8, 0.0  ;;  %v2571_v57 = vmul.f32 %v1853_v12, %v2255_v5  ;;  %v275_v5 = vld [vmem:[%s2352_s24 + $0x130] sm:$0xff] }
  0xf8   : > { %v667_v40 = vmax.f32 %v567_v46, 1e-24  ;;  %978 = vadd.xlane.f32.xlu1 %v977_v38  ;;  %981 = vadd.xlane.f32.xlu0 %v980_v30  ;;  %v2575_v51 = vmul.f32 %v1855_v3, %v2258_v7  ;;  %v983_v48 = vsel %vm429_vm0, %v849_v36, 0.0  ;;  %v276_v3 = vld [vmem:[%s2352_s24 + $0x138] sm:$0xff] }
  0xf9   : > { %1868 = vrsqrt.f32 %v666_v22  ;;  %v850_v16 = vmul.f32 %v2571_v57, %v273_v56 }
  0xfa   : > { %v1857_v20 = vpop.eup %1856  ;;  %1870 = vrsqrt.f32 %v667_v40  ;;  %v570_v34 = vpop.xlane.xlu0 %569  ;;  %v851_v8 = vmul.f32 %v2575_v51, %v274_v58 }
  0xfb   : > { %v573_v52 = vpop.xlane.xlu1 %572  ;;  %v1859_v12 = vpop.eup %1858  ;;  %v668_v28 = vmax.f32 %v570_v34, 1e-24  ;;  %v986_v38 = vsel %vm429_vm0, %v850_v16, 0.0  ;;  %v2583_v7 = vmul.f32 %v1857_v20, %v2267_v18  ;;  %v277_v18 = vld [vmem:[%s2352_s24 + $0x140] sm:$0xff] }
  0xfc   : > { %v669_v46 = vmax.f32 %v573_v52, 1e-24  ;;  %984 = vadd.xlane.f32.xlu1 %v983_v48  ;;  %987 = vadd.xlane.f32.xlu0 %v986_v38  ;;  %v2587_v36 = vmul.f32 %v1859_v12, %v2270_v19  ;;  %v989_v56 = vsel %vm429_vm0, %v851_v8, 0.0  ;;  %v278_v12 = vld [vmem:[%s2352_s24 + $0x148] sm:$0xff] }
  0xfd   : > { %1872 = vrsqrt.f32 %v668_v28  ;;  %v852_v22 = vmul.f32 %v2583_v7, %v275_v5 }
  0xfe   : > { %v1861_v30 = vpop.eup %1860  ;;  %1874 = vrsqrt.f32 %v669_v46  ;;  %v576_v40 = vpop.xlane.xlu0 %575  ;;  %v853_v16 = vmul.f32 %v2587_v36, %v276_v3 }
  0xff   : > { %v579_v58 = vpop.xlane.xlu1 %578  ;;  %v1863_v20 = vpop.eup %1862  ;;  %v670_v34 = vmax.f32 %v576_v40, 1e-24  ;;  %v992_v48 = vsel %vm429_vm0, %v852_v22, 0.0  ;;  %v2595_v19 = vmul.f32 %v1861_v30, %v2279_v32  ;;  %v279_v32 = vld [vmem:[%s2352_s24 + $0x150] sm:$0xff] }
 0x100   : > { %v671_v52 = vmax.f32 %v579_v58, 1e-24  ;;  %990 = vadd.xlane.f32.xlu1 %v989_v56  ;;  %993 = vadd.xlane.f32.xlu0 %v992_v48  ;;  %v2599_v8 = vmul.f32 %v1863_v20, %v2282_v33  ;;  %v995_v5 = vsel %vm429_vm0, %v853_v16, 0.0  ;;  %v280_v20 = vld [vmem:[%s2352_s24 + $0x158] sm:$0xff] }
 0x101   : > { %1876 = vrsqrt.f32 %v670_v34  ;;  %v854_v28 = vmul.f32 %v2595_v19, %v277_v18 }
 0x102   : > { %v1865_v38 = vpop.eup %1864  ;;  %1878 = vrsqrt.f32 %v671_v52  ;;  %v582_v46 = vpop.xlane.xlu0 %581  ;;  %v855_v22 = vmul.f32 %v2599_v8, %v278_v12 }
 0x103   : > { %v585_v3 = vpop.xlane.xlu1 %584  ;;  %v1867_v30 = vpop.eup %1866  ;;  %v672_v40 = vmax.f32 %v582_v46, 1e-24  ;;  %v998_v56 = vsel %vm429_vm0, %v854_v28, 0.0  ;;  %v2607_v33 = vmul.f32 %v1865_v38, %v2291_v44  ;;  %v281_v28 = vld [vmem:[%s2352_s24 + $0x160] sm:$0xff] }
 0x104   : > { %v673_v58 = vmax.f32 %v585_v3, 1e-24  ;;  %996 = vadd.xlane.f32.xlu1 %v995_v5  ;;  %999 = vadd.xlane.f32.xlu0 %v998_v56  ;;  %v2611_v16 = vmul.f32 %v1867_v30, %v2294_v45  ;;  %v1001_v18 = vsel %vm429_vm0, %v855_v22, 0.0  ;;  %v282_v22 = vld [vmem:[%s2352_s24 + $0x168] sm:$0xff] }
 0x105   : > { %1880 = vrsqrt.f32 %v672_v40  ;;  %v856_v34 = vmul.f32 %v2607_v33, %v279_v32  ;;  %v1908_v32 = vld [vmem:[%s2038_s21 + $0x168] sm:$0xff] }
 0x106   : > { %v1869_v48 = vpop.eup %1868  ;;  %1882 = vrsqrt.f32 %v673_v58  ;;  %v588_v52 = vpop.xlane.xlu0 %587  ;;  %v857_v44 = vmul.f32 %v2611_v16, %v280_v20 }
 0x107   : > { %v591_v12 = vpop.xlane.xlu1 %590  ;;  %v1871_v38 = vpop.eup %1870  ;;  %v674_v5 = vmax.f32 %v588_v52, 1e-24  ;;  %v1004_v46 = vsel %vm429_vm0, %v856_v34, 0.0  ;;  %v2619_v3 = vmul.f32 %v1869_v48, %v2303_v60  ;;  %v283_v48 = vld [vmem:[%s2352_s24 + $0x170] sm:$0xff] }
 0x108   : > { %v675_v45 = vmax.f32 %v591_v12, 1e-24  ;;  %1002 = vadd.xlane.f32.xlu1 %v1001_v18  ;;  %1005 = vadd.xlane.f32.xlu0 %v1004_v46  ;;  %v2623_v30 = vmul.f32 %v1908_v32, %v1871_v38  ;;  %v1007_v40 = vsel %vm429_vm0, %v857_v44, 0.0  ;;  %v1909_v46 = vld [vmem:[%s2038_s21 + $0x170] sm:$0xff]  ;;  %v284_v44 = vld [vmem:[%s2352_s24 + $0x178] sm:$0xff] }
 0x109   : > { %1884 = vrsqrt.f32 %v674_v5  ;;  %v858_v56 = vmul.f32 %v2619_v3, %v281_v28  ;;  %v1910_v28 = vld [vmem:[%s2038_s21 + $0x178] sm:$0xff] }
 0x10a   : > { %3373 = vst [vmem:[#allocation2_spill] sm:$0xff] %v2623_v30  ;;  %v1873_v58 = vpop.eup %1872  ;;  %1886 = vrsqrt.f32 %v675_v45  ;;  %v594_v20 = vpop.xlane.xlu0 %593  ;;  %v859_v60 = vmul.f32 %v2623_v30, %v282_v22 }
 0x10b   : > { %v597_v34 = vpop.xlane.xlu1 %596  ;;  %v1875_v18 = vpop.eup %1874  ;;  %v676_v52 = vmax.f32 %v594_v20, 1e-24  ;;  %v1010_v12 = vsel %vm429_vm0, %v858_v56, 0.0  ;;  %v2631_v5 = vmul.f32 %v1909_v46, %v1873_v58  ;;  %v285_v46 = vld [vmem:[%s2352_s24 + $0x180] sm:$0xff] }
 0x10c   : > { %v677_v38 = vmax.f32 %v597_v34, 1e-24  ;;  %1008 = vadd.xlane.f32.xlu1 %v1007_v40  ;;  %1011 = vadd.xlane.f32.xlu0 %v1010_v12  ;;  %v2635_v45 = vmul.f32 %v1910_v28, %v1875_v18  ;;  %v1013_v22 = vsel %vm429_vm0, %v859_v60, 0.0  ;;  %v1911_v28 = vld [vmem:[%s2038_s21 + $0x180] sm:$0xff]  ;;  %v286_v60 = vld [vmem:[%s2352_s24 + $0x188] sm:$0xff] }
 0x10d   : > { %3374 = vst [vmem:[#allocation3_spill] sm:$0xff] %v2631_v5  ;;  %1888 = vrsqrt.f32 %v676_v52  ;;  %v860_v32 = vmul.f32 %v2631_v5, %v283_v48  ;;  %v1912_v48 = vld [vmem:[%s2038_s21 + $0x188] sm:$0xff] }
 0x10e   : > { %3375 = vst [vmem:[#allocation4_spill] sm:$0xff] %v2635_v45  ;;  %v1877_v56 = vpop.eup %1876  ;;  %1890 = vrsqrt.f32 %v677_v38  ;;  %v600_v20 = vpop.xlane.xlu0 %599  ;;  %v861_v58 = vmul.f32 %v2635_v45, %v284_v44 }
 0x10f   : > { %v603_v34 = vpop.xlane.xlu1 %602  ;;  %v1879_v40 = vpop.eup %1878  ;;  %v678_v12 = vmax.f32 %v600_v20, 1e-24  ;;  %v1016_v30 = vsel %vm429_vm0, %v860_v32, 0.0  ;;  %v2643_v52 = vmul.f32 %v1911_v28, %v1877_v56  ;;  %v287_v28 = vld [vmem:[%s2352_s24 + $0x190] sm:$0xff] }
 0x110   : > { %v679_v18 = vmax.f32 %v603_v34, 1e-24  ;;  %1014 = vadd.xlane.f32.xlu1 %v1013_v22  ;;  %1017 = vadd.xlane.f32.xlu0 %v1016_v30  ;;  %v2647_v38 = vmul.f32 %v1912_v48, %v1879_v40  ;;  %v1019_v44 = vsel %vm429_vm0, %v861_v58, 0.0  ;;  %v1913_v48 = vld [vmem:[%s2038_s21 + $0x190] sm:$0xff]  ;;  %v288_v58 = vld [vmem:[%s2352_s24 + $0x198] sm:$0xff] }
 0x111   : > { %3376 = vst [vmem:[#allocation5_spill] sm:$0xff] %v2643_v52  ;;  %1892 = vrsqrt.f32 %v678_v12  ;;  %v862_v20 = vmul.f32 %v2643_v52, %v285_v46  ;;  %v1914_v46 = vld [vmem:[%s2038_s21 + $0x198] sm:$0xff] }
 0x112   : > { %3377 = vst [vmem:[#allocation6_spill] sm:$0xff] %v2647_v38  ;;  %v1881_v32 = vpop.eup %1880  ;;  %1894 = vrsqrt.f32 %v679_v18  ;;  %v606_v34 = vpop.xlane.xlu0 %605  ;;  %v863_v56 = vmul.f32 %v2647_v38, %v286_v60 }
 0x113   : > { %v609_v45 = vpop.xlane.xlu1 %608  ;;  %v1883_v22 = vpop.eup %1882  ;;  %v680_v30 = vmax.f32 %v606_v34, 1e-24  ;;  %v1022_v5 = vsel %vm429_vm0, %v862_v20, 0.0  ;;  %v2655_v12 = vmul.f32 %v1913_v48, %v1881_v32  ;;  %v289_v48 = vld [vmem:[%s2352_s24 + $0x1a0] sm:$0xff] }
 0x114   : > { %v681_v40 = vmax.f32 %v609_v45, 1e-24  ;;  %1020 = vadd.xlane.f32.xlu1 %v1019_v44  ;;  %1023 = vadd.xlane.f32.xlu0 %v1022_v5  ;;  %v2659_v18 = vmul.f32 %v1914_v46, %v1883_v22  ;;  %v1025_v60 = vsel %vm429_vm0, %v863_v56, 0.0  ;;  %v1915_v46 = vld [vmem:[%s2038_s21 + $0x1a0] sm:$0xff]  ;;  %v290_v56 = vld [vmem:[%s2352_s24 + $0x1a8] sm:$0xff] }
 0x115   : > { %3378 = vst [vmem:[#allocation7_spill] sm:$0xff] %v2655_v12  ;;  %1896 = vrsqrt.f32 %v680_v30  ;;  %v864_v34 = vmul.f32 %v2655_v12, %v287_v28  ;;  %v1916_v28 = vld [vmem:[%s2038_s21 + $0x1a8] sm:$0xff]  ;;  %v1917_v12 = vld [vmem:[%s2038_s21 + $0x1b0] sm:$0xff] }
 0x116   : > { %3379 = vst [vmem:[#allocation8_spill] sm:$0xff] %v2659_v18  ;;  %v1885_v20 = vpop.eup %1884  ;;  %1898 = vrsqrt.f32 %v681_v40  ;;  %v612_v45 = vpop.xlane.xlu0 %611  ;;  %v865_v32 = vmul.f32 %v2659_v18, %v288_v58 }
 0x117   : > { %v615_v38 = vpop.xlane.xlu1 %614  ;;  %v1887_v44 = vpop.eup %1886  ;;  %v682_v5 = vmax.f32 %v612_v45, 1e-24  ;;  %v1028_v52 = vsel %vm429_vm0, %v864_v34, 0.0  ;;  %v2667_v30 = vmul.f32 %v1915_v46, %v1885_v20  ;;  %v291_v46 = vld [vmem:[%s2352_s24 + $0x1b0] sm:$0xff] }
 0x118   : > { %v683_v22 = vmax.f32 %v615_v38, 1e-24  ;;  %1026 = vadd.xlane.f32.xlu1 %v1025_v60  ;;  %1029 = vadd.xlane.f32.xlu0 %v1028_v52  ;;  %v2671_v40 = vmul.f32 %v1916_v28, %v1887_v44  ;;  %v1031_v58 = vsel %vm429_vm0, %v865_v32, 0.0  ;;  %v292_v32 = vld [vmem:[%s2352_s24 + $0x1b8] sm:$0xff] }
 0x119   : > { %1900 = vrsqrt.f32 %v682_v5  ;;  %v866_v45 = vmul.f32 %v2667_v30, %v289_v48  ;;  %v1918_v48 = vld [vmem:[%s2038_s21 + $0x1b8] sm:$0xff] }
 0x11a   : > { %3380 = vst [vmem:[#allocation9_spill] sm:$0xff] %v2671_v40  ;;  %v1889_v34 = vpop.eup %1888  ;;  %1902 = vrsqrt.f32 %v683_v22  ;;  %v618_v38 = vpop.xlane.xlu0 %617  ;;  %v867_v20 = vmul.f32 %v2671_v40, %v290_v56 }
 0x11b   : > { %v621_v18 = vpop.xlane.xlu1 %620  ;;  %v1891_v60 = vpop.eup %1890  ;;  %v684_v52 = vmax.f32 %v618_v38, 1e-24  ;;  %v1034_v44 = vsel %vm429_vm0, %v866_v45, 0.0  ;;  %v2679_v5 = vmul.f32 %v1917_v12, %v1889_v34  ;;  %v293_v12 = vld [vmem:[%s2352_s24 + $0x1c0] sm:$0xff] }
 0x11c   : > { %v685_v28 = vmax.f32 %v621_v18, 1e-24  ;;  %1032 = vadd.xlane.f32.xlu1 %v1031_v58  ;;  %1035 = vadd.xlane.f32.xlu0 %v1034_v44  ;;  %v2683_v22 = vmul.f32 %v1918_v48, %v1891_v60  ;;  %v1037_v56 = vsel %vm429_vm0, %v867_v20, 0.0  ;;  %v1919_v34 = vld [vmem:[%s2038_s21 + $0x1c0] sm:$0xff]  ;;  %v294_v60 = vld [vmem:[%s2352_s24 + $0x1c8] sm:$0xff] }
 0x11d   : > { %3381 = vst [vmem:[#allocation10_spill] sm:$0xff] %v2679_v5  ;;  %1904 = vrsqrt.f32 %v684_v52  ;;  %v868_v38 = vmul.f32 %v2679_v5, %v291_v46  ;;  %v1920_v20 = vld [vmem:[%s2038_s21 + $0x1c8] sm:$0xff] }
 0x11e   : > { %3382 = vst [vmem:[#allocation11_spill] sm:$0xff] %v2683_v22  ;;  %v1893_v40 = vpop.eup %1892  ;;  %1906 = vrsqrt.f32 %v685_v28  ;;  %v869_v18 = vmul.f32 %v2683_v22, %v292_v32 }
 0x11f   : > { %v1895_v45 = vpop.eup %1894  ;;  %v1040_v58 = vsel %vm429_vm0, %v868_v38, 0.0  ;;  %v2691_v44 = vmul.f32 %v1919_v34, %v1893_v40  ;;  %v295_v38 = vld [vmem:[%s2352_s24 + $0x1d0] sm:$0xff] }
 0x120   : > { %1038 = vadd.xlane.f32.xlu1 %v1037_v56  ;;  %1041 = vadd.xlane.f32.xlu0 %v1040_v58  ;;  %v2695_v46 = vmul.f32 %v1920_v20, %v1895_v45  ;;  %v1043_v52 = vsel %vm429_vm0, %v869_v18, 0.0  ;;  %v1921_v34 = vld [vmem:[%s2038_s21 + $0x1d0] sm:$0xff]  ;;  %v296_v58 = vld [vmem:[%s2352_s24 + $0x1d8] sm:$0xff] }
 0x121   : > { %3383 = vst [vmem:[#allocation12_spill] sm:$0xff] %v2691_v44  ;;  %v870_v28 = vmul.f32 %v2691_v44, %v293_v12  ;;  %v1922_v18 = vld [vmem:[%s2038_s21 + $0x1d8] sm:$0xff] }
 0x122   : > { %3384 = vst [vmem:[#allocation13_spill] sm:$0xff] %v2695_v46  ;;  %v1897_v32 = vpop.eup %1896  ;;  %v871_v48 = vmul.f32 %v2695_v46, %v294_v60 }
 0x123   : > { %v1899_v22 = vpop.eup %1898  ;;  %v1046_v40 = vsel %vm429_vm0, %v870_v28, 0.0  ;;  %v2703_v56 = vmul.f32 %v1921_v34, %v1897_v32  ;;  %v297_v28 = vld [vmem:[%s2352_s24 + $0x1e0] sm:$0xff] }
 0x124   : > { %1044 = vadd.xlane.f32.xlu1 %v1043_v52  ;;  %1047 = vadd.xlane.f32.xlu0 %v1046_v40  ;;  %v2707_v45 = vmul.f32 %v1922_v18, %v1899_v22  ;;  %v1049_v12 = vsel %vm429_vm0, %v871_v48, 0.0  ;;  %v1923_v34 = vld [vmem:[%s2038_s21 + $0x1e0] sm:$0xff]  ;;  %v298_v40 = vld [vmem:[%s2352_s24 + $0x1e8] sm:$0xff] }
 0x125   : > { %3385 = vst [vmem:[#allocation14_spill] sm:$0xff] %v2703_v56  ;;  %v872_v60 = vmul.f32 %v2703_v56, %v295_v38  ;;  %v1924_v22 = vld [vmem:[%s2038_s21 + $0x1e8] sm:$0xff]  ;;  %v299_v56 = vld [vmem:[%s2352_s24 + $0x1f0] sm:$0xff] }
 0x126   : > { %3386 = vst [vmem:[#allocation15_spill] sm:$0xff] %v2707_v45  ;;  %v1901_v20 = vpop.eup %1900  ;;  %v873_v46 = vmul.f32 %v2707_v45, %v296_v58 }
 0x127   : > { %v1903_v44 = vpop.eup %1902  ;;  %v1052_v32 = vsel %vm429_vm0, %v872_v60, 0.0  ;;  %v2715_v52 = vmul.f32 %v1923_v34, %v1901_v20  ;;  %v1925_v20 = vld [vmem:[%s2038_s21 + $0x1f0] sm:$0xff] }
 0x128   : > { %1050 = vadd.xlane.f32.xlu1 %v1049_v12  ;;  %1053 = vadd.xlane.f32.xlu0 %v1052_v32  ;;  %v2719_v48 = vmul.f32 %v1924_v22, %v1903_v44  ;;  %v1055_v38 = vsel %vm429_vm0, %v873_v46, 0.0  ;;  %v300_v12 = vld [vmem:[%s2352_s24 + $0x1f8] sm:$0xff]  ;;  %v2736_v46 = vld [vmem:[%s3336_s2] ss:$0 sm:$0xff] }
 0x129   : > { %v874_v58 = vmul.f32 %v2715_v52, %v297_v28  ;;  %v1926_v32 = vld [vmem:[%s2038_s21 + $0x1f8] sm:$0xff] }
 0x12a   : > { %3387 = vst [vmem:[#allocation16_spill] sm:$0xff] %v2719_v48  ;;  %v1905_v18 = vpop.eup %1904  ;;  %v875_v45 = vmul.f32 %v2719_v48, %v298_v40 }
 0x12b   : > { %v1907_v60 = vpop.eup %1906  ;;  %v1058_v5 = vsel %vm429_vm0, %v874_v58, 0.0  ;;  %v2727_v34 = vmul.f32 %v1925_v20, %v1905_v18 }
 0x12c   : > { %1056 = vadd.xlane.f32.xlu1 %v1055_v38  ;;  %1059 = vadd.xlane.f32.xlu0 %v1058_v5  ;;  %v2731_v44 = vmul.f32 %v1926_v32, %v1907_v60  ;;  %v1061_v28 = vsel %vm429_vm0, %v875_v45, 0.0  ;;  %v1333_v38 = vmul.f32 %v2736_v46, %v2356_v25  ;;  %v1334_v60 = vmul.f32 %v2736_v46, %v2367_v62 }
 0x12d   : > { %3388 = vst [vmem:[#allocation17_spill] sm:$0xff] %v2727_v34  ;;  %v876_v40 = vmul.f32 %v2727_v34, %v299_v56  ;;  %v1335_v45 = vmul.f32 %v2736_v46, %v2360_v27  ;;  %v1337_v32 = vmul.f32 %v2736_v46, %v2379_v6 }
 0x12e   : > { %3389 = vst [vmem:[#allocation18_spill] sm:$0xff] %v2731_v44  ;;  %v877_v22 = vmul.f32 %v2731_v44, %v300_v12  ;;  %v1397_v18 = vsel %vm429_vm0, %v1333_v38, 0.0  ;;  %v1400_v56 = vsel %vm429_vm0, %v1334_v60, 0.0  ;;  %v1336_v12 = vmul.f32 %v2736_v46, %v2371_v63 }
 0x12f   : > { %v1064_v58 = vsel %vm429_vm0, %v876_v40, 0.0  ;;  %v1403_v20 = vsel %vm429_vm0, %v1335_v45, 0.0  ;;  %v1409_v40 = vsel %vm429_vm0, %v1337_v32, 0.0  ;;  %v1340_v45 = vmul.f32 %v2736_v46, %v2395_v26 }
 0x130   : > { %1062 = vadd.xlane.f32.xlu1 %v1061_v28  ;;  %1065 = vadd.xlane.f32.xlu0 %v1064_v58  ;;  %v1067_v5 = vsel %vm429_vm0, %v877_v22, 0.0  ;;  %v1406_v28 = vsel %vm429_vm0, %v1336_v12, 0.0  ;;  %v1338_v22 = vmul.f32 %v2736_v46, %v2383_v50  ;;  %v1339_v58 = vmul.f32 %v2736_v46, %v2391_v9 }
 0x132   : > { %v1415_v60 = vsel %vm429_vm0, %v1339_v58, 0.0 }
 0x134   : > { %1068 = vadd.xlane.f32.xlu1 %v1067_v5  ;;  %1398 = vadd.xlane.f32.xlu0 %v1397_v18  ;;  %v1412_v18 = vsel %vm429_vm0, %v1338_v22, 0.0 }
 0x138   : > { %1401 = vadd.xlane.f32.xlu1 %v1400_v56  ;;  %1404 = vadd.xlane.f32.xlu0 %v1403_v20  ;;  %v1341_v56 = vmul.f32 %v2736_v46, %v2403_v17 }
 0x13c   : > { %1407 = vadd.xlane.f32.xlu1 %v1406_v28  ;;  %1410 = vadd.xlane.f32.xlu0 %v1409_v40  ;;  %v1927_v28 = vld [vmem:[%s2352_s24] sm:$0xff] }
 0x13d   : > { %v880_v38 = vpop.xlane.xlu0 %879 }
 0x13e   : > { %v1070_v5 = vmul.f32 2.0, %v880_v38  ;;  %v1418_v38 = vsel %vm429_vm0, %v1340_v45, 0.0 }
 0x140   : > { %v1134_v20 = vmul.f32 %v1070_v5, %v2356_v25  ;;  %1413 = vadd.xlane.f32.xlu1 %v1412_v18  ;;  %1416 = vadd.xlane.f32.xlu0 %v1415_v60  ;;  %v1421_v25 = vsel %vm429_vm0, %v1341_v56, 0.0  ;;  %v1342_v5 = vmul.f32 %v2736_v46, %v2407_v10  ;;  %v1343_v18 = vmul.f32 %v2736_v46, %v2415_v23 }
 0x141   : > { %v883_v12 = vpop.xlane.xlu1 %882  ;;  %v886_v32 = vpop.xlane.xlu0 %885 }
 0x142   : > { %v1198_v40 = vsub.f32 %v1927_v28, %v1134_v20  ;;  %v1071_v22 = vmul.f32 2.0, %v883_v12  ;;  %v1072_v58 = vmul.f32 2.0, %v886_v32  ;;  %v1928_v32 = vld [vmem:[%s2352_s24 + $0x8] sm:$0xff]  ;;  %v1929_v28 = vld [vmem:[%s2352_s24 + $0x10] sm:$0xff] }
 0x144   : > { %1262 = vst.msk [vmem:[%s2773_s29] sm:$0xff] %vm429_vm0, %v1198_v40  ;;  %v1135_v60 = vmul.f32 %v1071_v22, %v2367_v62  ;;  %v1136_v20 = vmul.f32 %v1072_v58, %v2360_v27  ;;  %1419 = vadd.xlane.f32.xlu1 %v1418_v38  ;;  %1422 = vadd.xlane.f32.xlu0 %v1421_v25  ;;  %v1424_v40 = vsel %vm429_vm0, %v1342_v5, 0.0  ;;  %v1427_v62 = vsel %vm429_vm0, %v1343_v18, 0.0  ;;  %v1930_v18 = vld [vmem:[%s2352_s24 + $0x18] sm:$0xff] }
 0x145   : > { %v889_v12 = vpop.xlane.xlu1 %888  ;;  %v892_v45 = vpop.xlane.xlu0 %891  ;;  %v1344_v27 = vmul.f32 %v2736_v46, %v2419_v55  ;;  %v1345_v22 = vmul.f32 %v2736_v46, %v2427_v29 }
 0x146   : > { %v1199_v56 = vsub.f32 %v1928_v32, %v1135_v60  ;;  %v1200_v44 = vsub.f32 %v1929_v28, %v1136_v20  ;;  %v1073_v34 = vmul.f32 2.0, %v889_v12  ;;  %v1074_v48 = vmul.f32 2.0, %v892_v45  ;;  %v1931_v20 = vld [vmem:[%s2352_s24 + $0x20] sm:$0xff] }
 0x148   : > { %1263 = vst.msk [vmem:[%s2773_s29 + $0x8] sm:$0xff] %vm429_vm0, %v1199_v56  ;;  %1264 = vst.msk [vmem:[%s2773_s29 + $0x10] sm:$0xff] %vm429_vm0, %v1200_v44  ;;  %v1137_v58 = vmul.f32 %v1073_v34, %v2371_v63  ;;  %v1138_v38 = vmul.f32 %v1074_v48, %v2379_v6  ;;  %1425 = vadd.xlane.f32.xlu1 %v1424_v40  ;;  %1428 = vadd.xlane.f32.xlu0 %v1427_v62  ;;  %v1430_v44 = vsel %vm429_vm0, %v1344_v27, 0.0  ;;  %v1932_v62 = vld [vmem:[%s2352_s24 + $0x28] sm:$0xff] }
 0x149   : > { %v895_v25 = vpop.xlane.xlu1 %894  ;;  %v898_v5 = vpop.xlane.xlu0 %897  ;;  %v1433_v63 = vsel %vm429_vm0, %v1345_v22, 0.0  ;;  %v1346_v6 = vmul.f32 %v2736_v46, %v2431_v37  ;;  %v1347_v48 = vmul.f32 %v2736_v46, %v2439_v35  ;;  %v1933_v22 = vld [vmem:[%s2352_s24 + $0x30] sm:$0xff] }
 0x14a   : > { %v1201_v60 = vsub.f32 %v1930_v18, %v1137_v58  ;;  %v1202_v12 = vsub.f32 %v1931_v20, %v1138_v38  ;;  %v1075_v45 = vmul.f32 2.0, %v895_v25  ;;  %v1076_v32 = vmul.f32 2.0, %v898_v5 }
 0x14b   : > { %v1436_v5 = vsel %vm429_vm0, %v1346_v6, 0.0  ;;  %v1349_v18 = vmul.f32 %v2736_v46, %v2451_v41 }
 0x14c   : > { %1265 = vst.msk [vmem:[%s2773_s29 + $0x18] sm:$0xff] %vm429_vm0, %v1201_v60  ;;  %1266 = vst.msk [vmem:[%s2773_s29 + $0x20] sm:$0xff] %vm429_vm0, %v1202_v12  ;;  %v1139_v34 = vmul.f32 %v1075_v45, %v2383_v50  ;;  %v1140_v56 = vmul.f32 %v1076_v32, %v2391_v9  ;;  %1431 = vadd.xlane.f32.xlu1 %v1430_v44  ;;  %1434 = vadd.xlane.f32.xlu0 %v1433_v63  ;;  %v1439_v50 = vsel %vm429_vm0, %v1347_v48, 0.0  ;;  %v1934_v32 = vld [vmem:[%s2352_s24 + $0x38] sm:$0xff]  ;;  %v1935_v63 = vld [vmem:[%s2352_s24 + $0x40] sm:$0xff] }
 0x14d   : > { %v901_v28 = vpop.xlane.xlu1 %900  ;;  %v904_v40 = vpop.xlane.xlu0 %903  ;;  %v1348_v9 = vmul.f32 %v2736_v46, %v2443_v15 }
 0x14e   : > { %v1203_v27 = vsub.f32 %v1932_v62, %v1139_v34  ;;  %v1204_v58 = vsub.f32 %v1933_v22, %v1140_v56  ;;  %v1077_v38 = vmul.f32 2.0, %v901_v28  ;;  %v1078_v25 = vmul.f32 2.0, %v904_v40 }
 0x14f   : > { %v1442_v56 = vsel %vm429_vm0, %v1348_v9, 0.0  ;;  %v1351_v28 = vmul.f32 %v2736_v46, %v2463_v47 }
 0x150   : > { %1267 = vst.msk [vmem:[%s2773_s29 + $0x28] sm:$0xff] %vm429_vm0, %v1203_v27  ;;  %1268 = vst.msk [vmem:[%s2773_s29 + $0x30] sm:$0xff] %vm429_vm0, %v1204_v58  ;;  %v1141_v60 = vmul.f32 %v1077_v38, %v2395_v26  ;;  %v1142_v20 = vmul.f32 %v1078_v25, %v2403_v17  ;;  %1437 = vadd.xlane.f32.xlu1 %v1436_v5  ;;  %1440 = vadd.xlane.f32.xlu0 %v1439_v50  ;;  %v1445_v26 = vsel %vm429_vm0, %v1349_v18, 0.0  ;;  %v1936_v58 = vld [vmem:[%s2352_s24 + $0x48] sm:$0xff]  ;;  %v1937_v25 = vld [vmem:[%s2352_s24 + $0x50] sm:$0xff] }
 0x151   : > { %v907_v12 = vpop.xlane.xlu1 %906  ;;  %v910_v45 = vpop.xlane.xlu0 %909  ;;  %v1350_v17 = vmul.f32 %v2736_v46, %v2455_v61 }
 0x152   : > { %v1205_v44 = vsub.f32 %v1934_v32, %v1141_v60  ;;  %v1206_v6 = vsub.f32 %v1935_v63, %v1142_v20  ;;  %v1079_v48 = vmul.f32 2.0, %v907_v12  ;;  %v1080_v34 = vmul.f32 2.0, %v910_v45 }
 0x153   : > { %v1448_v18 = vsel %vm429_vm0, %v1350_v17, 0.0  ;;  %v1353_v60 = vmul.f32 %v2736_v46, %v2475_v53  ;;  %v1355_v17 = vmul.f32 %v2736_v46, %v2487_v59 }
 0x154   : > { %1269 = vst.msk [vmem:[%s2773_s29 + $0x38] sm:$0xff] %vm429_vm0, %v1205_v44  ;;  %1270 = vst.msk [vmem:[%s2773_s29 + $0x40] sm:$0xff] %vm429_vm0, %v1206_v6  ;;  %v1143_v40 = vmul.f32 %v1079_v48, %v2407_v10  ;;  %v1144_v62 = vmul.f32 %v1080_v34, %v2415_v23  ;;  %1443 = vadd.xlane.f32.xlu1 %v1442_v56  ;;  %1446 = vadd.xlane.f32.xlu0 %v1445_v26  ;;  %v1451_v10 = vsel %vm429_vm0, %v1351_v28, 0.0  ;;  %v1938_v44 = vld [vmem:[%s2352_s24 + $0x58] sm:$0xff]  ;;  %v1939_v6 = vld [vmem:[%s2352_s24 + $0x60] sm:$0xff] }
 0x155   : > { %v913_v27 = vpop.xlane.xlu1 %912  ;;  %v916_v22 = vpop.xlane.xlu0 %915  ;;  %v1352_v23 = vmul.f32 %v2736_v46, %v2467_v43 }
 0x156   : > { %v1207_v38 = vsub.f32 %v1936_v58, %v1143_v40  ;;  %v1208_v5 = vsub.f32 %v1937_v25, %v1144_v62  ;;  %v1081_v50 = vmul.f32 2.0, %v913_v27  ;;  %v1082_v9 = vmul.f32 2.0, %v916_v22  ;;  %v1940_v22 = vld [vmem:[%s2352_s24 + $0x68] sm:$0xff] }
 0x157   : > { %v1454_v26 = vsel %vm429_vm0, %v1352_v23, 0.0 }
 0x158   : > { %1271 = vst.msk [vmem:[%s2773_s29 + $0x48] sm:$0xff] %vm429_vm0, %v1207_v38  ;;  %1272 = vst.msk [vmem:[%s2773_s29 + $0x50] sm:$0xff] %vm429_vm0, %v1208_v5  ;;  %v1145_v20 = vmul.f32 %v1081_v50, %v2419_v55  ;;  %v1146_v12 = vmul.f32 %v1082_v9, %v2427_v29  ;;  %1449 = vadd.xlane.f32.xlu1 %v1448_v18  ;;  %1452 = vadd.xlane.f32.xlu0 %v1451_v10  ;;  %v1457_v55 = vsel %vm429_vm0, %v1353_v60, 0.0  ;;  %v1941_v38 = vld [vmem:[%s2352_s24 + $0x70] sm:$0xff] }
 0x159   : > { %v919_v45 = vpop.xlane.xlu1 %918  ;;  %v922_v32 = vpop.xlane.xlu0 %921  ;;  %v1354_v29 = vmul.f32 %v2736_v46, %v2479_v24  ;;  %v1357_v18 = vmul.f32 %v2736_v46, %v2499_v4 }
 0x15a   : > { %v1209_v63 = vsub.f32 %v1938_v44, %v1145_v20  ;;  %v1210_v48 = vsub.f32 %v1939_v6, %v1146_v12  ;;  %v1083_v34 = vmul.f32 2.0, %v919_v45  ;;  %v1084_v56 = vmul.f32 2.0, %v922_v32  ;;  %v1942_v12 = vld [vmem:[%s2352_s24 + $0x78] sm:$0xff]  ;;  %v1943_v32 = vld [vmem:[%s2352_s24 + $0x80] sm:$0xff] }
 0x15b   : > { %v1460_v9 = vsel %vm429_vm0, %v1354_v29, 0.0 }
 0x15c   : > { %1273 = vst.msk [vmem:[%s2773_s29 + $0x58] sm:$0xff] %vm429_vm0, %v1209_v63  ;;  %1274 = vst.msk [vmem:[%s2773_s29 + $0x60] sm:$0xff] %vm429_vm0, %v1210_v48  ;;  %v1147_v28 = vmul.f32 %v1083_v34, %v2431_v37  ;;  %v1148_v40 = vmul.f32 %v1084_v56, %v2439_v35  ;;  %1455 = vadd.xlane.f32.xlu1 %v1454_v26  ;;  %1458 = vadd.xlane.f32.xlu0 %v1457_v55  ;;  %v1463_v37 = vsel %vm429_vm0, %v1355_v17, 0.0  ;;  %v1944_v17 = vld [vmem:[%s2352_s24 + $0x88] sm:$0xff] }
 0x15d   : > { %v925_v62 = vpop.xlane.xlu1 %924  ;;  %v928_v27 = vpop.xlane.xlu0 %927  ;;  %v1356_v35 = vmul.f32 %v2736_v46, %v2491_v1  ;;  %v1359_v34 = vmul.f32 %v2736_v46, %v2511_v13 }
 0x15e   : > { %v1211_v58 = vsub.f32 %v1940_v22, %v1147_v28  ;;  %v1212_v25 = vsub.f32 %v1941_v38, %v1148_v40  ;;  %v1085_v5 = vmul.f32 2.0, %v925_v62  ;;  %v1086_v50 = vmul.f32 2.0, %v928_v27  ;;  %v1945_v40 = vld [vmem:[%s2352_s24 + $0x90] sm:$0xff] }
 0x15f   : > { %v1466_v48 = vsel %vm429_vm0, %v1356_v35, 0.0  ;;  %v1361_v38 = vmul.f32 %v2736_v46, %v2523_v21 }
 0x160   : > { %1275 = vst.msk [vmem:[%s2773_s29 + $0x68] sm:$0xff] %vm429_vm0, %v1211_v58  ;;  %1276 = vst.msk [vmem:[%s2773_s29 + $0x70] sm:$0xff] %vm429_vm0, %v1212_v25  ;;  %v1149_v10 = vmul.f32 %v1085_v5, %v2443_v15  ;;  %v1150_v23 = vmul.f32 %v1086_v50, %v2451_v41  ;;  %1461 = vadd.xlane.f32.xlu1 %v1460_v9  ;;  %1464 = vadd.xlane.f32.xlu0 %v1463_v37  ;;  %v1469_v15 = vsel %vm429_vm0, %v1357_v18, 0.0  ;;  %v1946_v37 = vld [vmem:[%s2352_s24 + $0x98] sm:$0xff]  ;;  %v1947_v18 = vld [vmem:[%s2352_s24 + $0xa0] sm:$0xff] }
 0x161   : > { %v931_v60 = vpop.xlane.xlu1 %930  ;;  %v934_v20 = vpop.xlane.xlu0 %933  ;;  %v1358_v41 = vmul.f32 %v2736_v46, %v2503_v54 }
 0x162   : > { %v1213_v45 = vsub.f32 %v1942_v12, %v1149_v10  ;;  %v1214_v44 = vsub.f32 %v1943_v32, %v1150_v23  ;;  %v1087_v63 = vmul.f32 2.0, %v931_v60  ;;  %v1088_v6 = vmul.f32 2.0, %v934_v20 }
 0x163   : > { %v1472_v58 = vsel %vm429_vm0, %v1358_v41, 0.0  ;;  %v1363_v12 = vmul.f32 %v2736_v46, %v2535_v31 }
 0x164   : > { %1277 = vst.msk [vmem:[%s2773_s29 + $0x78] sm:$0xff] %vm429_vm0, %v1213_v45  ;;  %1278 = vst.msk [vmem:[%s2773_s29 + $0x80] sm:$0xff] %vm429_vm0, %v1214_v44  ;;  %v1151_v56 = vmul.f32 %v1087_v63, %v2455_v61  ;;  %v1152_v26 = vmul.f32 %v1088_v6, %v2463_v47  ;;  %1467 = vadd.xlane.f32.xlu1 %v1466_v48  ;;  %1470 = vadd.xlane.f32.xlu0 %v1469_v15  ;;  %v1475_v61 = vsel %vm429_vm0, %v1359_v34, 0.0  ;;  %v1948_v6 = vld [vmem:[%s2352_s24 + $0xa8] sm:$0xff]  ;;  %v1949_v15 = vld [vmem:[%s2352_s24 + $0xb0] sm:$0xff] }
 0x165   : > { %v937_v55 = vpop.xlane.xlu1 %936  ;;  %v940_v29 = vpop.xlane.xlu0 %939  ;;  %v1360_v47 = vmul.f32 %v2736_v46, %v2515_v2 }
 0x166   : > { %v1215_v28 = vsub.f32 %v1944_v17, %v1151_v56  ;;  %v1216_v62 = vsub.f32 %v1945_v40, %v1152_v26  ;;  %v1089_v27 = vmul.f32 2.0, %v937_v55  ;;  %v1090_v22 = vmul.f32 2.0, %v940_v29 }
 0x167   : > { %v1478_v20 = vsel %vm429_vm0, %v1360_v47, 0.0  ;;  %v1365_v55 = vmul.f32 %v2736_v46, %v2547_v39 }
 0x168   : > { %1279 = vst.msk [vmem:[%s2773_s29 + $0x88] sm:$0xff] %vm429_vm0, %v1215_v28  ;;  %1280 = vst.msk [vmem:[%s2773_s29 + $0x90] sm:$0xff] %vm429_vm0, %v1216_v62  ;;  %v1153_v25 = vmul.f32 %v1089_v27, %v2467_v43  ;;  %v1154_v5 = vmul.f32 %v1090_v22, %v2475_v53  ;;  %1473 = vadd.xlane.f32.xlu1 %v1472_v58  ;;  %1476 = vadd.xlane.f32.xlu0 %v1475_v61  ;;  %v1481_v43 = vsel %vm429_vm0, %v1361_v38, 0.0  ;;  %v1950_v62 = vld [vmem:[%s2352_s24 + $0xb8] sm:$0xff]  ;;  %v1951_v22 = vld [vmem:[%s2352_s24 + $0xc0] sm:$0xff] }
 0x169   : > { %v943_v50 = vpop.xlane.xlu1 %942  ;;  %v946_v9 = vpop.xlane.xlu0 %945  ;;  %v1362_v53 = vmul.f32 %v2736_v46, %v2527_v14 }
 0x16a   : > { %v1217_v35 = vsub.f32 %v1946_v37, %v1153_v25  ;;  %v1218_v10 = vsub.f32 %v1947_v18, %v1154_v5  ;;  %v1091_v23 = vmul.f32 2.0, %v943_v50  ;;  %v1092_v60 = vmul.f32 2.0, %v946_v9 }
 0x16b   : > { %v1484_v26 = vsel %vm429_vm0, %v1362_v53, 0.0  ;;  %v1367_v25 = vmul.f32 %v2736_v46, %v2559_v49  ;;  %v1369_v53 = vmul.f32 %v2736_v46, %v2571_v57 }
 0x16c   : > { %1281 = vst.msk [vmem:[%s2773_s29 + $0x98] sm:$0xff] %vm429_vm0, %v1217_v35  ;;  %1282 = vst.msk [vmem:[%s2773_s29 + $0xa0] sm:$0xff] %vm429_vm0, %v1218_v10  ;;  %v1155_v45 = vmul.f32 %v1091_v23, %v2479_v24  ;;  %v1156_v32 = vmul.f32 %v1092_v60, %v2487_v59  ;;  %1479 = vadd.xlane.f32.xlu1 %v1478_v20  ;;  %1482 = vadd.xlane.f32.xlu0 %v1481_v43  ;;  %v1487_v24 = vsel %vm429_vm0, %v1363_v12, 0.0  ;;  %v1952_v35 = vld [vmem:[%s2352_s24 + $0xc8] sm:$0xff]  ;;  %v1953_v10 = vld [vmem:[%s2352_s24 + $0xd0] sm:$0xff] }
 0x16d   : > { %v949_v44 = vpop.xlane.xlu1 %948  ;;  %v952_v63 = vpop.xlane.xlu0 %951  ;;  %v1364_v59 = vmul.f32 %v2736_v46, %v2539_v0 }
 0x16e   : > { %v1219_v48 = vsub.f32 %v1948_v6, %v1155_v45  ;;  %v1220_v41 = vsub.f32 %v1949_v15, %v1156_v32  ;;  %v1093_v34 = vmul.f32 2.0, %v949_v44  ;;  %v1094_v56 = vmul.f32 2.0, %v952_v63  ;;  %v1954_v63 = vld [vmem:[%s2352_s24 + $0xd8] sm:$0xff] }
 0x16f   : > { %v1490_v38 = vsel %vm429_vm0, %v1364_v59, 0.0 }
 0x170   : > { %1283 = vst.msk [vmem:[%s2773_s29 + $0xa8] sm:$0xff] %vm429_vm0, %v1219_v48  ;;  %1284 = vst.msk [vmem:[%s2773_s29 + $0xb0] sm:$0xff] %vm429_vm0, %v1220_v41  ;;  %v1157_v29 = vmul.f32 %v1093_v34, %v2491_v1  ;;  %v1158_v17 = vmul.f32 %v1094_v56, %v2499_v4  ;;  %1485 = vadd.xlane.f32.xlu1 %v1484_v26  ;;  %1488 = vadd.xlane.f32.xlu0 %v1487_v24  ;;  %v1493_v1 = vsel %vm429_vm0, %v1365_v55, 0.0  ;;  %v1955_v48 = vld [vmem:[%s2352_s24 + $0xe0] sm:$0xff] }
 0x171   : > { %v955_v28 = vpop.xlane.xlu1 %954  ;;  %v958_v40 = vpop.xlane.xlu0 %957  ;;  %v1366_v4 = vmul.f32 %v2736_v46, %v2551_v42  ;;  %v1371_v26 = vmul.f32 %v2736_v46, %v2583_v7 }
 0x172   : > { %v1221_v27 = vsub.f32 %v1950_v62, %v1157_v29  ;;  %v1222_v58 = vsub.f32 %v1951_v22, %v1158_v17  ;;  %v1095_v61 = vmul.f32 2.0, %v955_v28  ;;  %v1096_v47 = vmul.f32 2.0, %v958_v40  ;;  %v1956_v17 = vld [vmem:[%s2352_s24 + $0xe8] sm:$0xff]  ;;  %v1957_v40 = vld [vmem:[%s2352_s24 + $0xf0] sm:$0xff] }
 0x173   : > { %v1496_v43 = vsel %vm429_vm0, %v1366_v4, 0.0 }
 0x174   : > { %1285 = vst.msk [vmem:[%s2773_s29 + $0xb8] sm:$0xff] %vm429_vm0, %v1221_v27  ;;  %1286 = vst.msk [vmem:[%s2773_s29 + $0xc0] sm:$0xff] %vm429_vm0, %v1222_v58  ;;  %v1159_v5 = vmul.f32 %v1095_v61, %v2503_v54  ;;  %v1160_v50 = vmul.f32 %v1096_v47, %v2511_v13  ;;  %1491 = vadd.xlane.f32.xlu1 %v1490_v38  ;;  %1494 = vadd.xlane.f32.xlu0 %v1493_v1  ;;  %v1499_v54 = vsel %vm429_vm0, %v1367_v25, 0.0  ;;  %v1958_v25 = vld [vmem:[%s2352_s24 + $0xf8] sm:$0xff] }
 0x175   : > { %v961_v9 = vpop.xlane.xlu1 %960  ;;  %v964_v37 = vpop.xlane.xlu0 %963  ;;  %v1368_v13 = vmul.f32 %v2736_v46, %v2563_v11  ;;  %v1373_v61 = vmul.f32 %v2736_v46, %v2595_v19 }
 0x176   : > { %v1223_v18 = vsub.f32 %v1952_v35, %v1159_v5  ;;  %v1224_v23 = vsub.f32 %v1953_v10, %v1160_v50  ;;  %v1097_v60 = vmul.f32 2.0, %v961_v9  ;;  %v1098_v20 = vmul.f32 2.0, %v964_v37  ;;  %v1959_v50 = vld [vmem:[%s2352_s24 + $0x100] sm:$0xff] }
 0x177   : > { %v1502_v56 = vsel %vm429_vm0, %v1368_v13, 0.0  ;;  %v1375_v10 = vmul.f32 %v2736_v46, %v2607_v33 }
 0x178   : > { %1287 = vst.msk [vmem:[%s2773_s29 + $0xc8] sm:$0xff] %vm429_vm0, %v1223_v18  ;;  %1288 = vst.msk [vmem:[%s2773_s29 + $0xd0] sm:$0xff] %vm429_vm0, %v1224_v23  ;;  %v1161_v12 = vmul.f32 %v1097_v60, %v2515_v2  ;;  %v1162_v45 = vmul.f32 %v1098_v20, %v2523_v21  ;;  %1497 = vadd.xlane.f32.xlu1 %v1496_v43  ;;  %1500 = vadd.xlane.f32.xlu0 %v1499_v54  ;;  %v1505_v2 = vsel %vm429_vm0, %v1369_v53, 0.0  ;;  %v1960_v54 = vld [vmem:[%s2352_s24 + $0x108] sm:$0xff]  ;;  %v1961_v53 = vld [vmem:[%s2352_s24 + $0x110] sm:$0xff] }
 0x179   : > { %v967_v32 = vpop.xlane.xlu1 %966  ;;  %v970_v44 = vpop.xlane.xlu0 %969  ;;  %v1370_v21 = vmul.f32 %v2736_v46, %v2575_v51 }
 0x17a   : > { %v1225_v6 = vsub.f32 %v1954_v63, %v1161_v12  ;;  %v1226_v15 = vsub.f32 %v1955_v48, %v1162_v45  ;;  %v1099_v41 = vmul.f32 2.0, %v967_v32  ;;  %v1100_v34 = vmul.f32 2.0, %v970_v44 }
 0x17b   : > { %v1508_v58 = vsel %vm429_vm0, %v1370_v21, 0.0  ;;  %v1377_v63 = vmul.f32 %v2736_v46, %v2619_v3 }
 0x17c   : > { %1289 = vst.msk [vmem:[%s2773_s29 + $0xd8] sm:$0xff] %vm429_vm0, %v1225_v6  ;;  %1290 = vst.msk [vmem:[%s2773_s29 + $0xe0] sm:$0xff] %vm429_vm0, %v1226_v15  ;;  %v1163_v24 = vmul.f32 %v1099_v41, %v2527_v14  ;;  %v1164_v59 = vmul.f32 %v1100_v34, %v2535_v31  ;;  %1503 = vadd.xlane.f32.xlu1 %v1502_v56  ;;  %1506 = vadd.xlane.f32.xlu0 %v1505_v2  ;;  %v1511_v14 = vsel %vm429_vm0, %v1371_v26, 0.0  ;;  %v1962_v34 = vld [vmem:[%s2352_s24 + $0x118] sm:$0xff]  ;;  %v1963_v2 = vld [vmem:[%s2352_s24 + $0x120] sm:$0xff] }
 0x17d   : > { %v973_v55 = vpop.xlane.xlu1 %972  ;;  %v976_v29 = vpop.xlane.xlu0 %975  ;;  %v1372_v31 = vmul.f32 %v2736_v46, %v2587_v36 }
 0x17e   : > { %v1227_v28 = vsub.f32 %v1956_v17, %v1163_v24  ;;  %v1228_v62 = vsub.f32 %v1957_v40, %v1164_v59  ;;  %v1101_v27 = vmul.f32 2.0, %v973_v55  ;;  %v1102_v22 = vmul.f32 2.0, %v976_v29  ;;  %v3390_v55 = vld [vmem:[#allocation2_spill] sm:$0xff]  ;;  %v3391_v29 = vld [vmem:[#allocation3_spill] sm:$0xff] }
 0x17f   : > { %v1514_v18 = vsel %vm429_vm0, %v1372_v31, 0.0  ;;  %v1379_v17 = vmul.f32 %v2736_v46, %v3391_v29 }
 0x180   : > { %1291 = vst.msk [vmem:[%s2773_s29 + $0xe8] sm:$0xff] %vm429_vm0, %v1227_v28  ;;  %1292 = vst.msk [vmem:[%s2773_s29 + $0xf0] sm:$0xff] %vm429_vm0, %v1228_v62  ;;  %v1165_v47 = vmul.f32 %v1101_v27, %v2539_v0  ;;  %v1166_v38 = vmul.f32 %v1102_v22, %v2547_v39  ;;  %1509 = vadd.xlane.f32.xlu1 %v1508_v58  ;;  %1512 = vadd.xlane.f32.xlu0 %v1511_v14  ;;  %v1517_v0 = vsel %vm429_vm0, %v1373_v61, 0.0  ;;  %v1964_v22 = vld [vmem:[%s2352_s24 + $0x128] sm:$0xff]  ;;  %v1965_v14 = vld [vmem:[%s2352_s24 + $0x130] sm:$0xff] }
 0x181   : > { %v979_v1 = vpop.xlane.xlu1 %978  ;;  %v982_v4 = vpop.xlane.xlu0 %981  ;;  %v1374_v39 = vmul.f32 %v2736_v46, %v2599_v8 }
 0x182   : > { %v1229_v5 = vsub.f32 %v1958_v25, %v1165_v47  ;;  %v1230_v9 = vsub.f32 %v1959_v50, %v1166_v38  ;;  %v1103_v37 = vmul.f32 2.0, %v979_v1  ;;  %v1104_v35 = vmul.f32 2.0, %v982_v4  ;;  %v3392_v1 = vld [vmem:[#allocation4_spill] sm:$0xff]  ;;  %v3393_v4 = vld [vmem:[#allocation5_spill] sm:$0xff] }
 0x183   : > { %v1520_v44 = vsel %vm429_vm0, %v1374_v39, 0.0  ;;  %v1381_v25 = vmul.f32 %v2736_v46, %v3393_v4 }
 0x184   : > { %1293 = vst.msk [vmem:[%s2773_s29 + $0xf8] sm:$0xff] %vm429_vm0, %v1229_v5  ;;  %1294 = vst.msk [vmem:[%s2773_s29 + $0x100] sm:$0xff] %vm429_vm0, %v1230_v9  ;;  %v1167_v23 = vmul.f32 %v1103_v37, %v2551_v42  ;;  %v1168_v60 = vmul.f32 %v1104_v35, %v2559_v49  ;;  %1515 = vadd.xlane.f32.xlu1 %v1514_v18  ;;  %1518 = vadd.xlane.f32.xlu0 %v1517_v0  ;;  %v1523_v42 = vsel %vm429_vm0, %v1375_v10, 0.0  ;;  %v1966_v35 = vld [vmem:[%s2352_s24 + $0x138] sm:$0xff]  ;;  %v1967_v0 = vld [vmem:[%s2352_s24 + $0x140] sm:$0xff] }
 0x185   : > { %v985_v20 = vpop.xlane.xlu1 %984  ;;  %v988_v43 = vpop.xlane.xlu0 %987  ;;  %v1376_v49 = vmul.f32 %v2736_v46, %v2611_v16 }
 0x186   : > { %v1231_v13 = vsub.f32 %v1960_v54, %v1167_v23  ;;  %v1232_v12 = vsub.f32 %v1961_v53, %v1168_v60  ;;  %v1105_v45 = vmul.f32 2.0, %v985_v20  ;;  %v1106_v32 = vmul.f32 2.0, %v988_v43  ;;  %v3394_v20 = vld [vmem:[#allocation6_spill] sm:$0xff]  ;;  %v3395_v43 = vld [vmem:[#allocation7_spill] sm:$0xff] }
 0x187   : > { %v1526_v59 = vsel %vm429_vm0, %v1376_v49, 0.0  ;;  %v1383_v54 = vmul.f32 %v2736_v46, %v3395_v43 }
 0x188   : > { %1295 = vst.msk [vmem:[%s2773_s29 + $0x108] sm:$0xff] %vm429_vm0, %v1231_v13  ;;  %1296 = vst.msk [vmem:[%s2773_s29 + $0x110] sm:$0xff] %vm429_vm0, %v1232_v12  ;;  %v1169_v6 = vmul.f32 %v1105_v45, %v2563_v11  ;;  %v1170_v48 = vmul.f32 %v1106_v32, %v2571_v57  ;;  %1521 = vadd.xlane.f32.xlu1 %v1520_v44  ;;  %1524 = vadd.xlane.f32.xlu0 %v1523_v42  ;;  %v1529_v11 = vsel %vm429_vm0, %v1377_v63, 0.0  ;;  %v1968_v32 = vld [vmem:[%s2352_s24 + $0x148] sm:$0xff]  ;;  %v1969_v42 = vld [vmem:[%s2352_s24 + $0x150] sm:$0xff] }
 0x189   : > { %v991_v15 = vpop.xlane.xlu1 %990  ;;  %v994_v41 = vpop.xlane.xlu0 %993  ;;  %v1378_v57 = vmul.f32 %v2736_v46, %v3390_v55 }
 0x18a   : > { %v1233_v56 = vsub.f32 %v1962_v34, %v1169_v6  ;;  %v1234_v21 = vsub.f32 %v1963_v2, %v1170_v48  ;;  %v1107_v26 = vmul.f32 2.0, %v991_v15  ;;  %v1108_v24 = vmul.f32 2.0, %v994_v41  ;;  %v3396_v15 = vld [vmem:[#allocation8_spill] sm:$0xff] }
 0x18b   : > { %v1532_v38 = vsel %vm429_vm0, %v1378_v57, 0.0  ;;  %v1385_v41 = vmul.f32 %v2736_v46, %v2667_v30 }
 0x18c   : > { %1297 = vst.msk [vmem:[%s2773_s29 + $0x118] sm:$0xff] %vm429_vm0, %v1233_v56  ;;  %1298 = vst.msk [vmem:[%s2773_s29 + $0x120] sm:$0xff] %vm429_vm0, %v1234_v21  ;;  %v1171_v28 = vmul.f32 %v1107_v26, %v2575_v51  ;;  %v1172_v40 = vmul.f32 %v1108_v24, %v2583_v7  ;;  %1527 = vadd.xlane.f32.xlu1 %v1526_v59  ;;  %1530 = vadd.xlane.f32.xlu0 %v1529_v11  ;;  %v1535_v51 = vsel %vm429_vm0, %v1379_v17, 0.0  ;;  %v1970_v26 = vld [vmem:[%s2352_s24 + $0x158] sm:$0xff]  ;;  %v1971_v59 = vld [vmem:[%s2352_s24 + $0x160] sm:$0xff] }
 0x18d   : > { %v997_v62 = vpop.xlane.xlu1 %996  ;;  %v1000_v27 = vpop.xlane.xlu0 %999  ;;  %v1380_v7 = vmul.f32 %v2736_v46, %v3392_v1 }
 0x18e   : > { %v1235_v58 = vsub.f32 %v1964_v22, %v1171_v28  ;;  %v1236_v31 = vsub.f32 %v1965_v14, %v1172_v40  ;;  %v1109_v61 = vmul.f32 2.0, %v997_v62  ;;  %v1110_v47 = vmul.f32 2.0, %v1000_v27  ;;  %v3397_v40 = vld [vmem:[#allocation9_spill] sm:$0xff]  ;;  %v3398_v62 = vld [vmem:[#allocation10_spill] sm:$0xff] }
 0x18f   : > { %v1538_v60 = vsel %vm429_vm0, %v1380_v7, 0.0  ;;  %v1387_v27 = vmul.f32 %v2736_v46, %v3398_v62 }
 0x190   : > { %1299 = vst.msk [vmem:[%s2773_s29 + $0x128] sm:$0xff] %vm429_vm0, %v1235_v58  ;;  %1300 = vst.msk [vmem:[%s2773_s29 + $0x130] sm:$0xff] %vm429_vm0, %v1236_v31  ;;  %v1173_v5 = vmul.f32 %v1109_v61, %v2587_v36  ;;  %v1174_v50 = vmul.f32 %v1110_v47, %v2595_v19  ;;  %1533 = vadd.xlane.f32.xlu1 %v1532_v38  ;;  %1536 = vadd.xlane.f32.xlu0 %v1535_v51  ;;  %v1541_v36 = vsel %vm429_vm0, %v1381_v25, 0.0  ;;  %v1972_v61 = vld [vmem:[%s2352_s24 + $0x168] sm:$0xff]  ;;  %v1973_v38 = vld [vmem:[%s2352_s24 + $0x170] sm:$0xff] }
 0x191   : > { %v1003_v9 = vpop.xlane.xlu1 %1002  ;;  %v1006_v37 = vpop.xlane.xlu0 %1005  ;;  %v1382_v19 = vmul.f32 %v2736_v46, %v3394_v20 }
 0x192   : > { %v1237_v18 = vsub.f32 %v1966_v35, %v1173_v5  ;;  %v1238_v39 = vsub.f32 %v1967_v0, %v1174_v50  ;;  %v1111_v10 = vmul.f32 2.0, %v1003_v9  ;;  %v1112_v23 = vmul.f32 2.0, %v1006_v37  ;;  %v3399_v50 = vld [vmem:[#allocation11_spill] sm:$0xff]  ;;  %v3400_v9 = vld [vmem:[#allocation12_spill] sm:$0xff] }
 0x193   : > { %v1544_v48 = vsel %vm429_vm0, %v1382_v19, 0.0  ;;  %v1389_v37 = vmul.f32 %v2736_v46, %v3400_v9 }
 0x194   : > { %1301 = vst.msk [vmem:[%s2773_s29 + $0x138] sm:$0xff] %vm429_vm0, %v1237_v18  ;;  %1302 = vst.msk [vmem:[%s2773_s29 + $0x140] sm:$0xff] %vm429_vm0, %v1238_v39  ;;  %v1175_v13 = vmul.f32 %v1111_v10, %v2599_v8  ;;  %v1176_v53 = vmul.f32 %v1112_v23, %v2607_v33  ;;  %1539 = vadd.xlane.f32.xlu1 %v1538_v60  ;;  %1542 = vadd.xlane.f32.xlu0 %v1541_v36  ;;  %v1547_v8 = vsel %vm429_vm0, %v1383_v54, 0.0  ;;  %v1974_v10 = vld [vmem:[%s2352_s24 + $0x178] sm:$0xff]  ;;  %v1975_v60 = vld [vmem:[%s2352_s24 + $0x180] sm:$0xff] }
 0x195   : > { %v1009_v12 = vpop.xlane.xlu1 %1008  ;;  %v1012_v45 = vpop.xlane.xlu0 %1011  ;;  %v1384_v33 = vmul.f32 %v2736_v46, %v3396_v15 }
 0x196   : > { %v1239_v44 = vsub.f32 %v1968_v32, %v1175_v13  ;;  %v1240_v49 = vsub.f32 %v1969_v42, %v1176_v53  ;;  %v1113_v63 = vmul.f32 2.0, %v1009_v12  ;;  %v1114_v6 = vmul.f32 2.0, %v1012_v45  ;;  %v3401_v53 = vld [vmem:[#allocation13_spill] sm:$0xff]  ;;  %v3402_v12 = vld [vmem:[#allocation14_spill] sm:$0xff] }
 0x197   : > { %v1550_v28 = vsel %vm429_vm0, %v1384_v33, 0.0  ;;  %v1391_v45 = vmul.f32 %v2736_v46, %v3402_v12 }
 0x198   : > { %1303 = vst.msk [vmem:[%s2773_s29 + $0x148] sm:$0xff] %vm429_vm0, %v1239_v44  ;;  %1304 = vst.msk [vmem:[%s2773_s29 + $0x150] sm:$0xff] %vm429_vm0, %v1240_v49  ;;  %v1177_v34 = vmul.f32 %v1113_v63, %v2611_v16  ;;  %v1178_v56 = vmul.f32 %v1114_v6, %v2619_v3  ;;  %1545 = vadd.xlane.f32.xlu1 %v1544_v48  ;;  %1548 = vadd.xlane.f32.xlu0 %v1547_v8  ;;  %v1553_v16 = vsel %vm429_vm0, %v1385_v41, 0.0  ;;  %v1976_v63 = vld [vmem:[%s2352_s24 + $0x188] sm:$0xff]  ;;  %v1977_v48 = vld [vmem:[%s2352_s24 + $0x190] sm:$0xff] }
 0x199   : > { %v1015_v2 = vpop.xlane.xlu1 %1014  ;;  %v1018_v21 = vpop.xlane.xlu0 %1017  ;;  %v1386_v3 = vmul.f32 %v2736_v46, %v3397_v40 }
 0x19a   : > { %v1241_v24 = vsub.f32 %v1970_v26, %v1177_v34  ;;  %v1242_v11 = vsub.f32 %v1971_v59, %v1178_v56  ;;  %v1115_v57 = vmul.f32 2.0, %v1015_v2  ;;  %v1116_v17 = vmul.f32 2.0, %v1018_v21  ;;  %v3403_v56 = vld [vmem:[#allocation15_spill] sm:$0xff] }
 0x19b   : > { %v1556_v5 = vsel %vm429_vm0, %v1386_v3, 0.0  ;;  %v1393_v2 = vmul.f32 %v2736_v46, %v2715_v52 }
 0x19c   : > { %1305 = vst.msk [vmem:[%s2773_s29 + $0x158] sm:$0xff] %vm429_vm0, %v1241_v24  ;;  %1306 = vst.msk [vmem:[%s2773_s29 + $0x160] sm:$0xff] %vm429_vm0, %v1242_v11  ;;  %v1179_v22 = vmul.f32 %v1115_v57, %v3390_v55  ;;  %v1180_v58 = vmul.f32 %v1116_v17, %v3391_v29  ;;  %1551 = vadd.xlane.f32.xlu1 %v1550_v28  ;;  %1554 = vadd.xlane.f32.xlu0 %v1553_v16  ;;  %v1559_v55 = vsel %vm429_vm0, %v1387_v27, 0.0  ;;  %v1978_v11 = vld [vmem:[%s2352_s24 + $0x198] sm:$0xff]  ;;  %v1979_v17 = vld [vmem:[%s2352_s24 + $0x1a0] sm:$0xff] }
 0x19d   : > { %v1021_v14 = vpop.xlane.xlu1 %1020  ;;  %v1024_v31 = vpop.xlane.xlu0 %1023  ;;  %v1388_v29 = vmul.f32 %v2736_v46, %v3399_v50 }
 0x19e   : > { %v1243_v47 = vsub.f32 %v1972_v61, %v1179_v22  ;;  %v1244_v51 = vsub.f32 %v1973_v38, %v1180_v58  ;;  %v1117_v7 = vmul.f32 2.0, %v1021_v14  ;;  %v1118_v25 = vmul.f32 2.0, %v1024_v31  ;;  %v3404_v22 = vld [vmem:[#allocation16_spill] sm:$0xff]  ;;  %v3405_v58 = vld [vmem:[#allocation17_spill] sm:$0xff] }
 0x19f   : > { %v1562_v13 = vsel %vm429_vm0, %v1388_v29, 0.0  ;;  %v1395_v14 = vmul.f32 %v2736_v46, %v3405_v58 }
 0x1a0   : > { %1307 = vst.msk [vmem:[%s2773_s29 + $0x168] sm:$0xff] %vm429_vm0, %v1243_v47  ;;  %1308 = vst.msk [vmem:[%s2773_s29 + $0x170] sm:$0xff] %vm429_vm0, %v1244_v51  ;;  %v1181_v35 = vmul.f32 %v1117_v7, %v3392_v1  ;;  %v1182_v18 = vmul.f32 %v1118_v25, %v3393_v4  ;;  %1557 = vadd.xlane.f32.xlu1 %v1556_v5  ;;  %1560 = vadd.xlane.f32.xlu0 %v1559_v55  ;;  %v1565_v1 = vsel %vm429_vm0, %v1389_v37, 0.0  ;;  %v1980_v51 = vld [vmem:[%s2352_s24 + $0x1a8] sm:$0xff]  ;;  %v1981_v25 = vld [vmem:[%s2352_s24 + $0x1b0] sm:$0xff] }
 0x1a1   : > { %v1027_v0 = vpop.xlane.xlu1 %1026  ;;  %v1030_v39 = vpop.xlane.xlu0 %1029  ;;  %v1390_v4 = vmul.f32 %v2736_v46, %v3401_v53 }
 0x1a2   : > { %v1245_v23 = vsub.f32 %v1974_v10, %v1181_v35  ;;  %v1246_v36 = vsub.f32 %v1975_v60, %v1182_v18  ;;  %v1119_v19 = vmul.f32 2.0, %v1027_v0  ;;  %v1120_v54 = vmul.f32 2.0, %v1030_v39 }
 0x1a3   : > { %v1568_v34 = vsel %vm429_vm0, %v1390_v4, 0.0  ;;  %v1583_v35 = vsel %vm429_vm0, %v1395_v14, 0.0 }
 0x1a4   : > { %1309 = vst.msk [vmem:[%s2773_s29 + $0x178] sm:$0xff] %vm429_vm0, %v1245_v23  ;;  %1310 = vst.msk [vmem:[%s2773_s29 + $0x180] sm:$0xff] %vm429_vm0, %v1246_v36  ;;  %v1183_v32 = vmul.f32 %v1119_v19, %v3394_v20  ;;  %v1184_v44 = vmul.f32 %v1120_v54, %v3395_v43  ;;  %1563 = vadd.xlane.f32.xlu1 %v1562_v13  ;;  %1566 = vadd.xlane.f32.xlu0 %v1565_v1  ;;  %v1571_v20 = vsel %vm429_vm0, %v1391_v45, 0.0  ;;  %v1982_v23 = vld [vmem:[%s2352_s24 + $0x1b8] sm:$0xff]  ;;  %v1983_v36 = vld [vmem:[%s2352_s24 + $0x1c0] sm:$0xff] }
 0x1a5   : > { %v1033_v42 = vpop.xlane.xlu1 %1032  ;;  %v1036_v49 = vpop.xlane.xlu0 %1035  ;;  %v1392_v43 = vmul.f32 %v2736_v46, %v3403_v56  ;;  %v1984_v45 = vld [vmem:[%s2352_s24 + $0x1c8] sm:$0xff] }
 0x1a6   : > { %v1247_v6 = vsub.f32 %v1976_v63, %v1183_v32  ;;  %v1248_v8 = vsub.f32 %v1977_v48, %v1184_v44  ;;  %v1121_v33 = vmul.f32 2.0, %v1033_v42  ;;  %v1122_v41 = vmul.f32 2.0, %v1036_v49  ;;  %v1985_v44 = vld [vmem:[%s2352_s24 + $0x1d0] sm:$0xff] }
 0x1a7   : > { %v1574_v27 = vsel %vm429_vm0, %v1392_v43, 0.0 }
 0x1a8   : > { %1311 = vst.msk [vmem:[%s2773_s29 + $0x188] sm:$0xff] %vm429_vm0, %v1247_v6  ;;  %1312 = vst.msk [vmem:[%s2773_s29 + $0x190] sm:$0xff] %vm429_vm0, %v1248_v8  ;;  %v1185_v21 = vmul.f32 %v1121_v33, %v3396_v15  ;;  %v1186_v26 = vmul.f32 %v1122_v41, %v2667_v30  ;;  %1569 = vadd.xlane.f32.xlu1 %v1568_v34  ;;  %1572 = vadd.xlane.f32.xlu0 %v1571_v20  ;;  %v1577_v15 = vsel %vm429_vm0, %v1393_v2, 0.0  ;;  %v1986_v8 = vld [vmem:[%s2352_s24 + $0x1d8] sm:$0xff]  ;;  %v1987_v41 = vld [vmem:[%s2352_s24 + $0x1e0] sm:$0xff] }
 0x1a9   : > { %v1039_v24 = vpop.xlane.xlu1 %1038  ;;  %v1042_v59 = vpop.xlane.xlu0 %1041  ;;  %v1394_v30 = vmul.f32 %v2736_v46, %v3404_v22 }
 0x1aa   : > { %v1249_v57 = vsub.f32 %v1978_v11, %v1185_v21  ;;  %v1250_v28 = vsub.f32 %v1979_v17, %v1186_v26  ;;  %v1123_v16 = vmul.f32 2.0, %v1039_v24  ;;  %v1124_v3 = vmul.f32 2.0, %v1042_v59  ;;  %v1988_v26 = vld [vmem:[%s2352_s24 + $0x1e8] sm:$0xff]  ;;  %v1989_v59 = vld [vmem:[%s2352_s24 + $0x1f0] sm:$0xff] }
 0x1ab   : > { %v1580_v37 = vsel %vm429_vm0, %v1394_v30, 0.0 }
 0x1ac   : > { %1313 = vst.msk [vmem:[%s2773_s29 + $0x198] sm:$0xff] %vm429_vm0, %v1249_v57  ;;  %1314 = vst.msk [vmem:[%s2773_s29 + $0x1a0] sm:$0xff] %vm429_vm0, %v1250_v28  ;;  %v1187_v31 = vmul.f32 %v1123_v16, %v3397_v40  ;;  %v1188_v61 = vmul.f32 %v1124_v3, %v3398_v62  ;;  %1575 = vadd.xlane.f32.xlu1 %v1574_v27  ;;  %1578 = vadd.xlane.f32.xlu0 %v1577_v15  ;;  %v3406_v40 = vld [vmem:[#allocation18_spill] sm:$0xff]  ;;  %v1990_v3 = vld [vmem:[%s2352_s24 + $0x1f8] sm:$0xff] }
 0x1ad   : > { %v1045_v47 = vpop.xlane.xlu1 %1044  ;;  %v1048_v38 = vpop.xlane.xlu0 %1047  ;;  %v1396_v18 = vmul.f32 %v2736_v46, %v3406_v40 }
 0x1ae   : > { %v1251_v7 = vsub.f32 %v1980_v51, %v1187_v31  ;;  %v1252_v5 = vsub.f32 %v1981_v25, %v1188_v61  ;;  %v1125_v55 = vmul.f32 2.0, %v1045_v47  ;;  %v1126_v29 = vmul.f32 2.0, %v1048_v38 }
 0x1af   : > { %v1586_v13 = vsel %vm429_vm0, %v1396_v18, 0.0 }
 0x1b0   : > { %1315 = vst.msk [vmem:[%s2773_s29 + $0x1a8] sm:$0xff] %vm429_vm0, %v1251_v7  ;;  %1316 = vst.msk [vmem:[%s2773_s29 + $0x1b0] sm:$0xff] %vm429_vm0, %v1252_v5  ;;  %v1189_v62 = vmul.f32 %v1125_v55, %v3399_v50  ;;  %v1190_v0 = vmul.f32 %v1126_v29, %v3400_v9  ;;  %1581 = vadd.xlane.f32.xlu1 %v1580_v37  ;;  %1584 = vadd.xlane.f32.xlu0 %v1583_v35 }
 0x1b1   : > { %v1051_v39 = vpop.xlane.xlu1 %1050  ;;  %v1054_v10 = vpop.xlane.xlu0 %1053 }
 0x1b2   : > { %v1253_v60 = vsub.f32 %v1982_v23, %v1189_v62  ;;  %v1254_v46 = vsub.f32 %v1983_v36, %v1190_v0  ;;  %v1127_v19 = vmul.f32 2.0, %v1051_v39  ;;  %v1128_v54 = vmul.f32 2.0, %v1054_v10 }
 0x1b4   : > { %1317 = vst.msk [vmem:[%s2773_s29 + $0x1b8] sm:$0xff] %vm429_vm0, %v1253_v60  ;;  %1318 = vst.msk [vmem:[%s2773_s29 + $0x1c0] sm:$0xff] %vm429_vm0, %v1254_v46  ;;  %v1191_v50 = vmul.f32 %v1127_v19, %v3401_v53  ;;  %v1192_v9 = vmul.f32 %v1128_v54, %v3402_v12  ;;  %1587 = vadd.xlane.f32.xlu1 %v1586_v13 }
 0x1b5   : > { %v1057_v1 = vpop.xlane.xlu1 %1056  ;;  %v1060_v4 = vpop.xlane.xlu0 %1059 }
 0x1b6   : > { %v1255_v32 = vsub.f32 %v1984_v45, %v1191_v50  ;;  %v1256_v42 = vsub.f32 %v1985_v44, %v1192_v9  ;;  %v1129_v49 = vmul.f32 2.0, %v1057_v1  ;;  %v1130_v63 = vmul.f32 2.0, %v1060_v4 }
 0x1b8   : > { %1319 = vst.msk [vmem:[%s2773_s29 + $0x1c8] sm:$0xff] %vm429_vm0, %v1255_v32  ;;  %1320 = vst.msk [vmem:[%s2773_s29 + $0x1d0] sm:$0xff] %vm429_vm0, %v1256_v42  ;;  %v1193_v53 = vmul.f32 %v1129_v49, %v3403_v56  ;;  %v1194_v12 = vmul.f32 %v1130_v63, %v2715_v52 }
 0x1b9   : > { %v1063_v6 = vpop.xlane.xlu1 %1062  ;;  %v1066_v48 = vpop.xlane.xlu0 %1065 }
 0x1ba   : > { %v1257_v33 = vsub.f32 %v1986_v8, %v1193_v53  ;;  %v1258_v34 = vsub.f32 %v1987_v41, %v1194_v12  ;;  %v1131_v20 = vmul.f32 2.0, %v1063_v6  ;;  %v1132_v43 = vmul.f32 2.0, %v1066_v48 }
 0x1bc   : > { %1321 = vst.msk [vmem:[%s2773_s29 + $0x1d8] sm:$0xff] %vm429_vm0, %v1257_v33  ;;  %1322 = vst.msk [vmem:[%s2773_s29 + $0x1e0] sm:$0xff] %vm429_vm0, %v1258_v34  ;;  %v1195_v52 = vmul.f32 %v1131_v20, %v3404_v22  ;;  %v1196_v56 = vmul.f32 %v1132_v43, %v3405_v58 }
 0x1bd   : > { %v1069_v2 = vpop.xlane.xlu1 %1068  ;;  %v1399_v21 = vpop.xlane.xlu0 %1398 }
 0x1be   : > { %v1259_v24 = vsub.f32 %v1988_v26, %v1195_v52  ;;  %v1260_v11 = vsub.f32 %v1989_v59, %v1196_v56  ;;  %v1133_v57 = vmul.f32 2.0, %v1069_v2  ;;  %1590 = vst.msk [vmem:[%s3185_s6] sm:$0xff] %vm1589_vm1, %v1399_v21 }
 0x1c0   : > { %1323 = vst.msk [vmem:[%s2773_s29 + $0x1e8] sm:$0xff] %vm429_vm0, %v1259_v24  ;;  %1324 = vst.msk [vmem:[%s2773_s29 + $0x1f0] sm:$0xff] %vm429_vm0, %v1260_v11  ;;  %v1197_v17 = vmul.f32 %v1133_v57, %v3406_v40 }
 0x1c1   : > { %v1402_v28 = vpop.xlane.xlu1 %1401  ;;  %v1405_v16 = vpop.xlane.xlu0 %1404 }
 0x1c2   : > { %v1261_v27 = vsub.f32 %v1990_v3, %v1197_v17  ;;  %1591 = vst.msk [vmem:[%s3185_s6 + $0x8] sm:$0xff] %vm1589_vm1, %v1402_v28  ;;  %1592 = vst.msk [vmem:[%s3185_s6 + $0x10] sm:$0xff] %vm1589_vm1, %v1405_v16 }
 0x1c4   : > { %1325 = vst.msk [vmem:[%s2773_s29 + $0x1f8] sm:$0xff] %vm429_vm0, %v1261_v27 }
 0x1c5   : > { %v1408_v15 = vpop.xlane.xlu1 %1407  ;;  %v1411_v22 = vpop.xlane.xlu0 %1410 }
 0x1c6   : > { %1593 = vst.msk [vmem:[%s3185_s6 + $0x18] sm:$0xff] %vm1589_vm1, %v1408_v15  ;;  %1594 = vst.msk [vmem:[%s3185_s6 + $0x20] sm:$0xff] %vm1589_vm1, %v1411_v22 }
 0x1c9   : > { %v1414_v30 = vpop.xlane.xlu1 %1413  ;;  %v1417_v58 = vpop.xlane.xlu0 %1416 }
 0x1ca   : > { %1595 = vst.msk [vmem:[%s3185_s6 + $0x28] sm:$0xff] %vm1589_vm1, %v1414_v30  ;;  %1596 = vst.msk [vmem:[%s3185_s6 + $0x30] sm:$0xff] %vm1589_vm1, %v1417_v58 }
 0x1cd   : > { %v1420_v14 = vpop.xlane.xlu1 %1419  ;;  %v1423_v31 = vpop.xlane.xlu0 %1422 }
 0x1ce   : > { %1597 = vst.msk [vmem:[%s3185_s6 + $0x38] sm:$0xff] %vm1589_vm1, %v1420_v14  ;;  %1598 = vst.msk [vmem:[%s3185_s6 + $0x40] sm:$0xff] %vm1589_vm1, %v1423_v31 }
 0x1d1   : > { %v1426_v61 = vpop.xlane.xlu1 %1425  ;;  %v1429_v47 = vpop.xlane.xlu0 %1428 }
 0x1d2   : > { %1599 = vst.msk [vmem:[%s3185_s6 + $0x48] sm:$0xff] %vm1589_vm1, %v1426_v61  ;;  %1600 = vst.msk [vmem:[%s3185_s6 + $0x50] sm:$0xff] %vm1589_vm1, %v1429_v47 }
 0x1d5   : > { %v1432_v38 = vpop.xlane.xlu1 %1431  ;;  %v1435_v51 = vpop.xlane.xlu0 %1434 }
 0x1d6   : > { %1601 = vst.msk [vmem:[%s3185_s6 + $0x58] sm:$0xff] %vm1589_vm1, %v1432_v38  ;;  %1602 = vst.msk [vmem:[%s3185_s6 + $0x60] sm:$0xff] %vm1589_vm1, %v1435_v51 }
 0x1d9   : > { %v1438_v7 = vpop.xlane.xlu1 %1437  ;;  %v1441_v25 = vpop.xlane.xlu0 %1440 }
 0x1da   : > { %1603 = vst.msk [vmem:[%s3185_s6 + $0x68] sm:$0xff] %vm1589_vm1, %v1438_v7  ;;  %1604 = vst.msk [vmem:[%s3185_s6 + $0x70] sm:$0xff] %vm1589_vm1, %v1441_v25 }
 0x1dd   : > { %v1444_v5 = vpop.xlane.xlu1 %1443  ;;  %v1447_v55 = vpop.xlane.xlu0 %1446 }
 0x1de   : > { %1605 = vst.msk [vmem:[%s3185_s6 + $0x78] sm:$0xff] %vm1589_vm1, %v1444_v5  ;;  %1606 = vst.msk [vmem:[%s3185_s6 + $0x80] sm:$0xff] %vm1589_vm1, %v1447_v55 }
 0x1e1   : > { %v1450_v29 = vpop.xlane.xlu1 %1449  ;;  %v1453_v37 = vpop.xlane.xlu0 %1452 }
 0x1e2   : > { %1607 = vst.msk [vmem:[%s3185_s6 + $0x88] sm:$0xff] %vm1589_vm1, %v1450_v29  ;;  %1608 = vst.msk [vmem:[%s3185_s6 + $0x90] sm:$0xff] %vm1589_vm1, %v1453_v37 }
 0x1e5   : > { %v1456_v35 = vpop.xlane.xlu1 %1455  ;;  %v1459_v40 = vpop.xlane.xlu0 %1458 }
 0x1e6   : > { %1609 = vst.msk [vmem:[%s3185_s6 + $0x98] sm:$0xff] %vm1589_vm1, %v1456_v35  ;;  %1610 = vst.msk [vmem:[%s3185_s6 + $0xa0] sm:$0xff] %vm1589_vm1, %v1459_v40 }
 0x1e9   : > { %v1462_v18 = vpop.xlane.xlu1 %1461  ;;  %v1465_v62 = vpop.xlane.xlu0 %1464 }
 0x1ea   : > { %1611 = vst.msk [vmem:[%s3185_s6 + $0xa8] sm:$0xff] %vm1589_vm1, %v1462_v18  ;;  %1612 = vst.msk [vmem:[%s3185_s6 + $0xb0] sm:$0xff] %vm1589_vm1, %v1465_v62 }
 0x1ed   : > { %v1468_v0 = vpop.xlane.xlu1 %1467  ;;  %v1471_v39 = vpop.xlane.xlu0 %1470 }
 0x1ee   : > { %1613 = vst.msk [vmem:[%s3185_s6 + $0xb8] sm:$0xff] %vm1589_vm1, %v1468_v0  ;;  %1614 = vst.msk [vmem:[%s3185_s6 + $0xc0] sm:$0xff] %vm1589_vm1, %v1471_v39 }
 0x1f1   : > { %v1474_v10 = vpop.xlane.xlu1 %1473  ;;  %v1477_v23 = vpop.xlane.xlu0 %1476 }
 0x1f2   : > { %1615 = vst.msk [vmem:[%s3185_s6 + $0xc8] sm:$0xff] %vm1589_vm1, %v1474_v10  ;;  %1616 = vst.msk [vmem:[%s3185_s6 + $0xd0] sm:$0xff] %vm1589_vm1, %v1477_v23 }
 0x1f5   : > { %v1480_v60 = vpop.xlane.xlu1 %1479  ;;  %v1483_v36 = vpop.xlane.xlu0 %1482 }
 0x1f6   : > { %1617 = vst.msk [vmem:[%s3185_s6 + $0xd8] sm:$0xff] %vm1589_vm1, %v1480_v60  ;;  %1618 = vst.msk [vmem:[%s3185_s6 + $0xe0] sm:$0xff] %vm1589_vm1, %v1483_v36 }
 0x1f9   : > { %v1486_v46 = vpop.xlane.xlu1 %1485  ;;  %v1489_v19 = vpop.xlane.xlu0 %1488 }
 0x1fa   : > { %1619 = vst.msk [vmem:[%s3185_s6 + $0xe8] sm:$0xff] %vm1589_vm1, %v1486_v46  ;;  %1620 = vst.msk [vmem:[%s3185_s6 + $0xf0] sm:$0xff] %vm1589_vm1, %v1489_v19 }
 0x1fd   : > { %v1492_v54 = vpop.xlane.xlu1 %1491  ;;  %v1495_v13 = vpop.xlane.xlu0 %1494 }
 0x1fe   : > { %1621 = vst.msk [vmem:[%s3185_s6 + $0xf8] sm:$0xff] %vm1589_vm1, %v1492_v54  ;;  %1622 = vst.msk [vmem:[%s3185_s6 + $0x100] sm:$0xff] %vm1589_vm1, %v1495_v13 }
 0x201   : > { %v1498_v50 = vpop.xlane.xlu1 %1497  ;;  %v1501_v9 = vpop.xlane.xlu0 %1500 }
 0x202   : > { %1623 = vst.msk [vmem:[%s3185_s6 + $0x108] sm:$0xff] %vm1589_vm1, %v1498_v50  ;;  %1624 = vst.msk [vmem:[%s3185_s6 + $0x110] sm:$0xff] %vm1589_vm1, %v1501_v9 }
 0x205   : > { %v1504_v1 = vpop.xlane.xlu1 %1503  ;;  %v1507_v4 = vpop.xlane.xlu0 %1506 }
 0x206   : > { %1625 = vst.msk [vmem:[%s3185_s6 + $0x118] sm:$0xff] %vm1589_vm1, %v1504_v1  ;;  %1626 = vst.msk [vmem:[%s3185_s6 + $0x120] sm:$0xff] %vm1589_vm1, %v1507_v4 }
 0x209   : > { %v1510_v45 = vpop.xlane.xlu1 %1509  ;;  %v1513_v32 = vpop.xlane.xlu0 %1512 }
 0x20a   : > { %1627 = vst.msk [vmem:[%s3185_s6 + $0x128] sm:$0xff] %vm1589_vm1, %v1510_v45  ;;  %1628 = vst.msk [vmem:[%s3185_s6 + $0x130] sm:$0xff] %vm1589_vm1, %v1513_v32 }
 0x20d   : > { %v1516_v44 = vpop.xlane.xlu1 %1515  ;;  %v1519_v42 = vpop.xlane.xlu0 %1518 }
 0x20e   : > { %1629 = vst.msk [vmem:[%s3185_s6 + $0x138] sm:$0xff] %vm1589_vm1, %v1516_v44  ;;  %1630 = vst.msk [vmem:[%s3185_s6 + $0x140] sm:$0xff] %vm1589_vm1, %v1519_v42 }
 0x211   : > { %v1522_v49 = vpop.xlane.xlu1 %1521  ;;  %v1525_v63 = vpop.xlane.xlu0 %1524 }
 0x212   : > { %1631 = vst.msk [vmem:[%s3185_s6 + $0x148] sm:$0xff] %vm1589_vm1, %v1522_v49  ;;  %1632 = vst.msk [vmem:[%s3185_s6 + $0x150] sm:$0xff] %vm1589_vm1, %v1525_v63 }
 0x215   : > { %v1528_v53 = vpop.xlane.xlu1 %1527  ;;  %v1531_v12 = vpop.xlane.xlu0 %1530 }
 0x216   : > { %1633 = vst.msk [vmem:[%s3185_s6 + $0x158] sm:$0xff] %vm1589_vm1, %v1528_v53  ;;  %1634 = vst.msk [vmem:[%s3185_s6 + $0x160] sm:$0xff] %vm1589_vm1, %v1531_v12 }
 0x219   : > { %v1534_v6 = vpop.xlane.xlu1 %1533  ;;  %v1537_v48 = vpop.xlane.xlu0 %1536 }
 0x21a   : > { %1635 = vst.msk [vmem:[%s3185_s6 + $0x168] sm:$0xff] %vm1589_vm1, %v1534_v6  ;;  %1636 = vst.msk [vmem:[%s3185_s6 + $0x170] sm:$0xff] %vm1589_vm1, %v1537_v48 }
 0x21d   : > { %v1540_v8 = vpop.xlane.xlu1 %1539  ;;  %v1543_v33 = vpop.xlane.xlu0 %1542 }
 0x21e   : > { %1637 = vst.msk [vmem:[%s3185_s6 + $0x178] sm:$0xff] %vm1589_vm1, %v1540_v8  ;;  %1638 = vst.msk [vmem:[%s3185_s6 + $0x180] sm:$0xff] %vm1589_vm1, %v1543_v33 }
 0x221   : > { %v1546_v41 = vpop.xlane.xlu1 %1545  ;;  %v1549_v34 = vpop.xlane.xlu0 %1548 }
 0x222   : > { %1639 = vst.msk [vmem:[%s3185_s6 + $0x188] sm:$0xff] %vm1589_vm1, %v1546_v41  ;;  %1640 = vst.msk [vmem:[%s3185_s6 + $0x190] sm:$0xff] %vm1589_vm1, %v1549_v34 }
 0x225   : > { %v1552_v20 = vpop.xlane.xlu1 %1551  ;;  %v1555_v43 = vpop.xlane.xlu0 %1554 }
 0x226   : > { %1641 = vst.msk [vmem:[%s3185_s6 + $0x198] sm:$0xff] %vm1589_vm1, %v1552_v20  ;;  %1642 = vst.msk [vmem:[%s3185_s6 + $0x1a0] sm:$0xff] %vm1589_vm1, %v1555_v43 }
 0x229   : > { %v1558_v52 = vpop.xlane.xlu1 %1557  ;;  %v1561_v56 = vpop.xlane.xlu0 %1560 }
 0x22a   : > { %1643 = vst.msk [vmem:[%s3185_s6 + $0x1a8] sm:$0xff] %vm1589_vm1, %v1558_v52  ;;  %1644 = vst.msk [vmem:[%s3185_s6 + $0x1b0] sm:$0xff] %vm1589_vm1, %v1561_v56 }
 0x22d   : > { %v1564_v2 = vpop.xlane.xlu1 %1563  ;;  %v1567_v21 = vpop.xlane.xlu0 %1566 }
 0x22e   : > { %1645 = vst.msk [vmem:[%s3185_s6 + $0x1b8] sm:$0xff] %vm1589_vm1, %v1564_v2  ;;  %1646 = vst.msk [vmem:[%s3185_s6 + $0x1c0] sm:$0xff] %vm1589_vm1, %v1567_v21 }
 0x231   : > { %v1570_v26 = vpop.xlane.xlu1 %1569  ;;  %v1573_v24 = vpop.xlane.xlu0 %1572 }
 0x232   : > { %1647 = vst.msk [vmem:[%s3185_s6 + $0x1c8] sm:$0xff] %vm1589_vm1, %v1570_v26  ;;  %1648 = vst.msk [vmem:[%s3185_s6 + $0x1d0] sm:$0xff] %vm1589_vm1, %v1573_v24 }
 0x235   : > { %v1576_v59 = vpop.xlane.xlu1 %1575  ;;  %v1579_v11 = vpop.xlane.xlu0 %1578 }
 0x236   : > { %1649 = vst.msk [vmem:[%s3185_s6 + $0x1d8] sm:$0xff] %vm1589_vm1, %v1576_v59  ;;  %1650 = vst.msk [vmem:[%s3185_s6 + $0x1e0] sm:$0xff] %vm1589_vm1, %v1579_v11 }
 0x239   : > { %v1582_v57 = vpop.xlane.xlu1 %1581  ;;  %v1585_v17 = vpop.xlane.xlu0 %1584 }
 0x23a   : > { %1651 = vst.msk [vmem:[%s3185_s6 + $0x1e8] sm:$0xff] %vm1589_vm1, %v1582_v57  ;;  %1652 = vst.msk [vmem:[%s3185_s6 + $0x1f0] sm:$0xff] %vm1589_vm1, %v1585_v17 }
 0x23d   : > { %v1588_v28 = vpop.xlane.xlu1 %1587 }
 0x23e   : > { %1653 = vst.msk [vmem:[%s3185_s6 + $0x1f8] sm:$0xff] %vm1589_vm1, %v1588_v28 }
 0x23f PF: > { %s15_s15 = sadd.s32 1, %s1997_s15  }
 0x240   : > { %p12_p4 = scmp.ge.s32.totalorder %s15_s15, 4  }
 0x242   :  { %14 = sbr.rel (!%p12_p4) target bundleno = 1 (0x1), region = 77 }

// kernel: dual_forward.5
= control target key start
LH: loop header
LB: loop body
LE: loop exit
PB: predicated region body
PF: predicated region fallthrough
CT: control target
= control target key end

     0   :  { %s1837_s15 = smov 0   ;;  %s2456_s0 = inlined_call_operand.vmem [shape: f32[256,128], index: 0, kind: input, shape index: {}]   ;;  %s2457_s1 = inlined_call_operand.vmem [shape: f32[128,128], index: 1, kind: input, shape index: {}]   ;;  %s2458_s2 = inlined_call_operand.vmem [shape: f32[128,128], index: 2, kind: input, shape index: {}]   ;;  %s2459_s3 = inlined_call_operand.vmem [shape: f32[1,128], index: 3, kind: input, shape index: {}]   ;;  %s2460_s4 = inlined_call_operand.vmem [shape: f32[256,128], index: 4, kind: output, shape index: {}]  }
   0x1 LB: > { %s1296_s16 = sadd.s32 4294967295, %s1810_s15   ;;  %p1300_p0 = scmp.ge.s32.totalorder %s1810_s15, 1  ;;  %s1810_s15 = sphi %s1837_s15, %s14_s15  }
   0x2   : > { %p163_p1 = scmp.lt.s32.totalorder %s1810_s15, 3 }
   0x4   : > { %p164_p2 = pnand %p1300_p0, %p163_p1 }
   0x5   : > { %s1301_s7 = sshll.u32 (!%p164_p2), %s1296_s16, 4 }
   0x6   : > { %167 = sbr.rel (%p164_p2) target bundleno = 1204 (0x4b4), region = 36  ;;  %p190_p3 = scmp.lt.s32.totalorder (!%p164_p2), %s1301_s7, 31 }
   0xb   : > { %v1848_v0 = vld [vmem:[%s2457_s1 + $0x78] sm:$0xff]  ;;  %v1853_v1 = vld [vmem:[%s2457_s1 + $0x70] sm:$0xff]  ;;  %v1858_v2 = vld [vmem:[%s2457_s1 + $0x68] sm:$0xff]  ;;  %s2462_s7 = smov (!%p190_p3, %s1301_s7), 31 }
   0xc   : > { %v344_v3 = vmul.f32 %v1848_v0, %v1848_v0  ;;  %v342_v4 = vmul.f32 %v1858_v2, %v1858_v2  ;;  %v1867_v5 = vld [vmem:[%s2457_s1 + $0x60] sm:$0xff]  ;;  %1476 = vmatprep.subr.mxu1 %v1848_v0  ;;  %v343_v6 = vmul.f32 %v1853_v1, %v1853_v1  ;;  %v1878_v8 = vld [vmem:[%s2457_s1 + $0x58] sm:$0xff]  ;;  %v1883_v9 = vld [vmem:[%s2457_s1 + $0x50] sm:$0xff]  ;;  %s1302_s21 = sshll.u32 %s2462_s7, 3 }
   0xd   : > { %1477 = vmatpush3.msra.mxu1 %v1848_v0  ;;  %v341_v7 = vmul.f32 %v1867_v5, %v1867_v5  ;;  %v340_v10 = vmul.f32 %v1878_v8, %v1878_v8  ;;  %v339_v11 = vmul.f32 %v1883_v9, %v1883_v9  ;;  %v1895_v12 = vld [vmem:[%s2457_s1 + $0x48] sm:$0xff]  ;;  %v1900_v13 = vld [vmem:[%s2457_s1 + $0x40] sm:$0xff]  ;;  %v1914_v16 = vld [vmem:[%s2457_s1 + $0x38] sm:$0xff]  ;;  %s1981_s28 = scalar_lea.vmem %s2456_s0, %s1302_s21  ;;  %s2405_s18 = scalar_lea.vmem %s2460_s4, %s1302_s21 }
   0xe   : > { %375 = vadd.xlane.f32.xlu0 %v344_v3  ;;  %371 = vadd.xlane.f32.xlu1 %v342_v4  ;;  %v338_v14 = vmul.f32 %v1895_v12, %v1895_v12  ;;  %v337_v15 = vmul.f32 %v1900_v13, %v1900_v13  ;;  %v1919_v17 = vld [vmem:[%s2457_s1 + $0x30] sm:$0xff]  ;;  %v336_v18 = vmul.f32 %v1914_v16, %v1914_v16  ;;  %v1931_v20 = vld [vmem:[%s2457_s1 + $0x28] sm:$0xff]  ;;  %v1936_v21 = vld [vmem:[%s2457_s1 + $0x20] sm:$0xff] }
   0xf   : > { %1478 = vmatprep.subr.mxu1 %v1853_v1  ;;  %v335_v19 = vmul.f32 %v1919_v17, %v1919_v17  ;;  %v334_v22 = vmul.f32 %v1931_v20, %v1931_v20  ;;  %v333_v23 = vmul.f32 %v1936_v21, %v1936_v21  ;;  %v1950_v24 = vld [vmem:[%s2457_s1 + $0x18] sm:$0xff]  ;;  %v1955_v25 = vld [vmem:[%s2457_s1 + $0x10] sm:$0xff]  ;;  %v1968_v28 = vld [vmem:[%s2457_s1 + $0x8] sm:$0xff] }
  0x10   : > { %1479 = vmatpush3.msra.mxu1 %v1853_v1  ;;  %v332_v26 = vmul.f32 %v1950_v24, %v1950_v24  ;;  %v331_v27 = vmul.f32 %v1955_v25, %v1955_v25  ;;  %v1973_v29 = vld [vmem:[%s2457_s1] sm:$0xff]  ;;  %v330_v30 = vmul.f32 %v1968_v28, %v1968_v28  ;;  %v1993_v33 = vld [vmem:[%s1981_s28 + $0x8] sm:$0xff]  ;;  %v2003_v36 = vld [vmem:[%s1981_s28 + $0x10] sm:$0xff] }
  0x11   : > { %1480 = vmatprep.subr.mxu1 %v1858_v2  ;;  %v329_v31 = vmul.f32 %v1973_v29, %v1973_v29  ;;  %v1990_v32 = vld [vmem:[%s1981_s28] sm:$0xff]  ;;  %v234_v35 = vmul.f32 %v1993_v33, %v1993_v33  ;;  %v2006_v37 = vld [vmem:[%s1981_s28 + $0x18] sm:$0xff]  ;;  %v235_v38 = vmul.f32 %v2003_v36, %v2003_v36  ;;  %v2019_v41 = vld [vmem:[%s1981_s28 + $0x28] sm:$0xff] }
  0x12   : > { %373 = vadd.xlane.f32.xlu0 %v343_v6  ;;  %369 = vadd.xlane.f32.xlu1 %v341_v7  ;;  %v233_v34 = vmul.f32 %v1990_v32, %v1990_v32  ;;  %v236_v39 = vmul.f32 %v2006_v37, %v2006_v37  ;;  %v2016_v40 = vld [vmem:[%s1981_s28 + $0x20] sm:$0xff]  ;;  %v238_v43 = vmul.f32 %v2019_v41, %v2019_v41  ;;  %v2029_v44 = vld [vmem:[%s1981_s28 + $0x30] sm:$0xff]  ;;  %v2032_v45 = vld [vmem:[%s1981_s28 + $0x38] sm:$0xff] }
  0x13   : > { %1481 = vmatpush3.msra.mxu1 %v1858_v2  ;;  %v237_v42 = vmul.f32 %v2016_v40, %v2016_v40  ;;  %v239_v46 = vmul.f32 %v2029_v44, %v2029_v44  ;;  %v240_v47 = vmul.f32 %v2032_v45, %v2032_v45  ;;  %v2042_v48 = vld [vmem:[%s1981_s28 + $0x40] sm:$0xff]  ;;  %v2045_v49 = vld [vmem:[%s1981_s28 + $0x48] sm:$0xff]  ;;  %v2052_v52 = vld [vmem:[%s1981_s28 + $0x50] sm:$0xff] }
  0x14   : > { %1482 = vmatprep.subr.mxu1 %v1867_v5  ;;  %v241_v50 = vmul.f32 %v2042_v48, %v2042_v48  ;;  %v242_v51 = vmul.f32 %v2045_v49, %v2045_v49  ;;  %v2055_v53 = vld [vmem:[%s1981_s28 + $0x58] sm:$0xff]  ;;  %v243_v54 = vmul.f32 %v2052_v52, %v2052_v52  ;;  %v2062_v56 = vld [vmem:[%s1981_s28 + $0x60] sm:$0xff]  ;;  %v2065_v57 = vld [vmem:[%s1981_s28 + $0x68] sm:$0xff] }
  0x15   : > { %1483 = vmatpush3.msra.mxu1 %v1867_v5  ;;  %v244_v55 = vmul.f32 %v2055_v53, %v2055_v53  ;;  %v245_v58 = vmul.f32 %v2062_v56, %v2062_v56  ;;  %v246_v59 = vmul.f32 %v2065_v57, %v2065_v57  ;;  %v2072_v60 = vld [vmem:[%s1981_s28 + $0x70] sm:$0xff]  ;;  %v2075_v61 = vld [vmem:[%s1981_s28 + $0x78] sm:$0xff] }
  0x16   : > { %367 = vadd.xlane.f32.xlu0 %v340_v10  ;;  %365 = vadd.xlane.f32.xlu1 %v339_v11  ;;  %v247_v62 = vmul.f32 %v2072_v60, %v2072_v60  ;;  %v248_v63 = vmul.f32 %v2075_v61, %v2075_v61 }
  0x17   : > { %1484 = vmatprep.subr.mxu1 %v1878_v8 }
  0x18   : > { %1485 = vmatpush3.msra.mxu1 %v1878_v8 }
  0x19   : > { %1486 = vmatprep.subr.mxu1 %v1883_v9 }
  0x1a   : > { %363 = vadd.xlane.f32.xlu0 %v338_v14  ;;  %361 = vadd.xlane.f32.xlu1 %v337_v15 }
  0x1b   : > { %1487 = vmatpush3.msra.mxu1 %v1883_v9 }
  0x1c   : > { %1488 = vmatprep.subr.mxu1 %v1895_v12 }
  0x1d   : > { %1489 = vmatpush3.msra.mxu1 %v1895_v12 }
  0x1e   : > { %359 = vadd.xlane.f32.xlu0 %v336_v18  ;;  %357 = vadd.xlane.f32.xlu1 %v335_v19 }
  0x1f   : > { %1490 = vmatprep.subr.mxu1 %v1900_v13 }
  0x20   : > { %1491 = vmatpush3.msra.mxu1 %v1900_v13 }
  0x21   : > { %1492 = vmatprep.subr.mxu1 %v1914_v16 }
  0x22   : > { %355 = vadd.xlane.f32.xlu0 %v334_v22  ;;  %353 = vadd.xlane.f32.xlu1 %v333_v23 }
  0x23   : > { %1493 = vmatpush3.msra.mxu1 %v1914_v16 }
  0x24   : > { %1494 = vmatprep.subr.mxu1 %v1919_v17 }
  0x25   : > { %1495 = vmatpush3.msra.mxu1 %v1919_v17 }
  0x26   : > { %351 = vadd.xlane.f32.xlu0 %v332_v26  ;;  %349 = vadd.xlane.f32.xlu1 %v331_v27 }
  0x27   : > { %1496 = vmatprep.subr.mxu1 %v1931_v20 }
  0x28   : > { %1497 = vmatpush3.msra.mxu1 %v1931_v20 }
  0x29   : > { %1498 = vmatprep.subr.mxu1 %v1936_v21 }
  0x2a   : > { %347 = vadd.xlane.f32.xlu0 %v330_v30  ;;  %345 = vadd.xlane.f32.xlu1 %v329_v31 }
  0x2b   : > { %1499 = vmatpush3.msra.mxu1 %v1936_v21 }
  0x2c   : > { %1500 = vmatprep.subr.mxu1 %v1950_v24 }
  0x2d   : > { %1501 = vmatpush3.msra.mxu1 %v1950_v24 }
  0x2e   : > { %249 = vadd.xlane.f32.xlu0 %v233_v34  ;;  %251 = vadd.xlane.f32.xlu1 %v234_v35 }
  0x2f   : > { %1502 = vmatprep.subr.mxu1 %v1955_v25 }
  0x30   : > { %1503 = vmatpush3.msra.mxu1 %v1955_v25 }
  0x31   : > { %1504 = vmatprep.subr.mxu1 %v1968_v28 }
  0x32   : > { %253 = vadd.xlane.f32.xlu0 %v235_v38  ;;  %255 = vadd.xlane.f32.xlu1 %v236_v39 }
  0x33   : > { %1505 = vmatpush3.msra.mxu1 %v1968_v28 }
  0x34   : > { %1506 = vmatprep.subr.mxu1 %v1973_v29 }
  0x35   : > { %1507 = vmatpush3.msra.mxu1 %v1973_v29 }
  0x36   : > { %257 = vadd.xlane.f32.xlu0 %v237_v42  ;;  %259 = vadd.xlane.f32.xlu1 %v238_v43 }
  0x3a   : > { %261 = vadd.xlane.f32.xlu0 %v239_v46  ;;  %263 = vadd.xlane.f32.xlu1 %v240_v47 }
  0x3e   : > { %265 = vadd.xlane.f32.xlu0 %v241_v50  ;;  %267 = vadd.xlane.f32.xlu1 %v242_v51 }
  0x42   : > { %269 = vadd.xlane.f32.xlu0 %v243_v54  ;;  %271 = vadd.xlane.f32.xlu1 %v244_v55 }
  0x46   : > { %273 = vadd.xlane.f32.xlu0 %v245_v58  ;;  %275 = vadd.xlane.f32.xlu1 %v246_v59 }
  0x4a   : > { %277 = vadd.xlane.f32.xlu0 %v247_v62  ;;  %279 = vadd.xlane.f32.xlu1 %v248_v63 }
  0x97   : > { %v376_v3 = vpop.xlane.xlu0 %375  ;;  %v372_v4 = vpop.xlane.xlu1 %371 }
  0x98   : > { %v392_v6 = vmax.f32 %v376_v3, 1e-24  ;;  %v390_v7 = vmax.f32 %v372_v4, 1e-24 }
  0x9a   : > { %1596 = vrsqrt.f32 %v392_v6 }
  0x9b   : > { %v374_v10 = vpop.xlane.xlu0 %373  ;;  %v370_v11 = vpop.xlane.xlu1 %369  ;;  %1598 = vrsqrt.f32 %v390_v7 }
  0x9c   : > { %v391_v14 = vmax.f32 %v374_v10, 1e-24  ;;  %v389_v15 = vmax.f32 %v370_v11, 1e-24 }
  0x9e   : > { %1600 = vrsqrt.f32 %v391_v14 }
  0x9f   : > { %v368_v18 = vpop.xlane.xlu0 %367  ;;  %1602 = vrsqrt.f32 %v389_v15  ;;  %v366_v22 = vpop.xlane.xlu1 %365 }
  0xa0   : > { %v388_v19 = vmax.f32 %v368_v18, 1e-24  ;;  %v387_v26 = vmax.f32 %v366_v22, 1e-24 }
  0xa2   : > { %1604 = vrsqrt.f32 %v388_v19 }
  0xa3   : > { %v364_v23 = vpop.xlane.xlu0 %363  ;;  %1606 = vrsqrt.f32 %v387_v26  ;;  %v362_v38 = vpop.xlane.xlu1 %361 }
  0xa4   : > { %v386_v34 = vmax.f32 %v364_v23, 1e-24  ;;  %v385_v47 = vmax.f32 %v362_v38, 1e-24 }
  0xa6   : > { %1608 = vrsqrt.f32 %v386_v34 }
  0xa7   : > { %v1597_v27 = vpop.eup %1596  ;;  %v360_v30 = vpop.xlane.xlu0 %359  ;;  %1610 = vrsqrt.f32 %v385_v47 }
  0xa8   : > { %v424_v31 = vmul.f32 %v1597_v27, %v1848_v0  ;;  %v1599_v35 = vpop.eup %1598  ;;  %v358_v51 = vpop.xlane.xlu1 %357  ;;  %v384_v55 = vmax.f32 %v360_v30, 1e-24 }
  0xa9   : > { %v422_v46 = vmul.f32 %v1599_v35, %v1858_v2  ;;  %v383_v2 = vmax.f32 %v358_v51, 1e-24 }
  0xaa   : > { %1420 = vmatprep.subr.mxu0 %v424_v31  ;;  %1612 = vrsqrt.f32 %v384_v55 }
  0xab   : > { %v1601_v39 = vpop.eup %1600  ;;  %1421 = vmatpush3.xpose.msra.mxu0 %v424_v31  ;;  %v356_v42 = vpop.xlane.xlu0 %355  ;;  %1614 = vrsqrt.f32 %v383_v2 }
  0xac   : > { %v423_v43 = vmul.f32 %v1601_v39, %v1853_v1  ;;  %v1603_v50 = vpop.eup %1602  ;;  %v354_v59 = vpop.xlane.xlu1 %353  ;;  %v382_v7 = vmax.f32 %v356_v42, 1e-24 }
  0xad   : > { %v421_v0 = vmul.f32 %v1603_v50, %v1867_v5 }
  0xae   : > { %1422 = vmatprep.subr.mxu0 %v423_v43 }
  0xaf   : > { %1423 = vmatpush3.xpose.msra.mxu0 %v423_v43  ;;  %v352_v54 = vpop.xlane.xlu0 %351  ;;  %v1605_v58 = vpop.eup %1604 }
  0xb0   : > { %1424 = vmatprep.subr.mxu0 %v422_v46  ;;  %v420_v1 = vmul.f32 %v1605_v58, %v1878_v8  ;;  %v1607_v63 = vpop.eup %1606  ;;  %v350_v3 = vpop.xlane.xlu1 %349  ;;  %v381_v8 = vmax.f32 %v354_v59, 1e-24  ;;  %v380_v19 = vmax.f32 %v352_v54, 1e-24 }
  0xb1   : > { %v419_v6 = vmul.f32 %v1607_v63, %v1883_v9  ;;  %v379_v26 = vmax.f32 %v350_v3, 1e-24 }
  0xb3   : > { %1425 = vmatpush3.xpose.msra.mxu0 %v422_v46  ;;  %v348_v62 = vpop.xlane.xlu0 %347  ;;  %v1609_v10 = vpop.eup %1608 }
  0xb4   : > { %1426 = vmatprep.subr.mxu0 %v421_v0  ;;  %v346_v11 = vpop.xlane.xlu1 %345  ;;  %v418_v14 = vmul.f32 %v1609_v10, %v1895_v12  ;;  %v1611_v15 = vpop.eup %1610  ;;  %v378_v35 = vmax.f32 %v348_v62, 1e-24 }
  0xb5   : > { %v417_v18 = vmul.f32 %v1611_v15, %v1900_v13  ;;  %v377_v42 = vmax.f32 %v346_v11, 1e-24 }
  0xb7   : > { %1427 = vmatpush3.xpose.msra.mxu0 %v421_v0  ;;  %v250_v4 = vpop.xlane.xlu0 %249  ;;  %v1613_v22 = vpop.eup %1612 }
  0xb8   : > { %1428 = vmatprep.subr.mxu0 %v420_v1  ;;  %v281_v5 = vmax.f32 %v250_v4, 1e-24  ;;  %v252_v9 = vpop.xlane.xlu1 %251  ;;  %v416_v23 = vmul.f32 %v1613_v22, %v1914_v16  ;;  %v1615_v30 = vpop.eup %1614 }
  0xb9   : > { %v415_v34 = vmul.f32 %v1615_v30, %v1919_v17  ;;  %v282_v51 = vmax.f32 %v252_v9, 1e-24 }
  0xba   : > { %1616 = vrsqrt.f32 %v281_v5 }
  0xbb   : > { %1429 = vmatpush3.xpose.msra.mxu0 %v420_v1  ;;  %1618 = vrsqrt.f32 %v382_v7  ;;  %v254_v27 = vpop.xlane.xlu0 %253 }
  0xbc   : > { %1430 = vmatprep.subr.mxu0 %v419_v6  ;;  %1620 = vrsqrt.f32 %v381_v8  ;;  %v256_v12 = vpop.xlane.xlu1 %255 }
  0xbd   : > { %1622 = vrsqrt.f32 %v380_v19 }
  0xbe   : > { %1624 = vrsqrt.f32 %v379_v26 }
  0xbf   : > { %1431 = vmatpush3.xpose.msra.mxu0 %v419_v6  ;;  %v258_v39 = vpop.xlane.xlu0 %257  ;;  %1626 = vrsqrt.f32 %v378_v35 }
  0xc0   : > { %1432 = vmatprep.subr.mxu0 %v418_v14  ;;  %v260_v46 = vpop.xlane.xlu1 %259  ;;  %1628 = vrsqrt.f32 %v377_v42  ;;  %v285_v59 = vmax.f32 %v258_v39, 1e-24 }
  0xc1   : > { %1630 = vrsqrt.f32 %v282_v51  ;;  %v286_v2 = vmax.f32 %v260_v46, 1e-24 }
  0xc3   : > { %1433 = vmatpush3.xpose.msra.mxu0 %v418_v14  ;;  %v262_v17 = vpop.xlane.xlu0 %261 }
  0xc4   : > { %1434 = vmatprep.subr.mxu0 %v417_v18  ;;  %v264_v54 = vpop.xlane.xlu1 %263  ;;  %v287_v63 = vmax.f32 %v262_v17, 1e-24 }
  0xc5   : > { %v288_v6 = vmax.f32 %v264_v54, 1e-24 }
  0xc7   : > { %v1617_v31 = vpop.eup %1616  ;;  %1435 = vmatpush3.xpose.msra.mxu0 %v417_v18  ;;  %v266_v58 = vpop.xlane.xlu0 %265 }
  0xc8   : > { %1436 = vmatprep.subr.mxu0 %v416_v23  ;;  %v313_v13 = vmul.f32 %v1617_v31, %v1990_v32  ;;  %v1619_v38 = vpop.eup %1618  ;;  %v283_v32 = vmax.f32 %v254_v27, 1e-24  ;;  %v268_v1 = vpop.xlane.xlu1 %267  ;;  %v289_v7 = vmax.f32 %v266_v58, 1e-24 }
  0xc9   : > { %v414_v16 = vmul.f32 %v1619_v38, %v1931_v20  ;;  %v1621_v43 = vpop.eup %1620  ;;  %v284_v20 = vmax.f32 %v256_v12, 1e-24  ;;  %v290_v10 = vmax.f32 %v268_v1, 1e-24 }
  0xca   : > { %1452 = vmatprep.mubr.f32.mxu0 %v313_v13  ;;  %v413_v47 = vmul.f32 %v1621_v43, %v1936_v21  ;;  %v1623_v50 = vpop.eup %1622  ;;  %1632 = vrsqrt.f32 %v283_v32 }
  0xcb   : > { %1437 = vmatpush3.xpose.msra.mxu0 %v416_v23  ;;  %v412_v0 = vmul.f32 %v1623_v50, %v1950_v24  ;;  %v1625_v55 = vpop.eup %1624  ;;  %1634 = vrsqrt.f32 %v284_v20  ;;  %v270_v3 = vpop.xlane.xlu0 %269 }
  0xcc   : > { %1438 = vmatprep.subr.mxu0 %v415_v34  ;;  %v411_v62 = vmul.f32 %v1625_v55, %v1955_v25  ;;  %v1627_v21 = vpop.eup %1626  ;;  %1636 = vrsqrt.f32 %v285_v59  ;;  %v272_v5 = vpop.xlane.xlu1 %271  ;;  %v291_v8 = vmax.f32 %v270_v3, 1e-24 }
  0xcd   : > { %v410_v24 = vmul.f32 %v1627_v21, %v1968_v28  ;;  %v1629_v4 = vpop.eup %1628  ;;  %1638 = vrsqrt.f32 %v286_v2  ;;  %v292_v19 = vmax.f32 %v272_v5, 1e-24 }
  0xce   : > { %1640 = vrsqrt.f32 %v287_v63  ;;  %v409_v25 = vmul.f32 %v1629_v4, %v1973_v29  ;;  %v1631_v14 = vpop.eup %1630 }
  0xcf   : > { %1439 = vmatpush3.xpose.msra.mxu0 %v415_v34  ;;  %1642 = vrsqrt.f32 %v288_v6  ;;  %v274_v11 = vpop.xlane.xlu0 %273  ;;  %v314_v18 = vmul.f32 %v1631_v14, %v1993_v33 }
  0xd0   : > { %1440 = vmatprep.subr.mxu0 %v414_v16  ;;  %1644 = vrsqrt.f32 %v289_v7  ;;  %v276_v28 = vpop.xlane.xlu1 %275  ;;  %v293_v29 = vmax.f32 %v274_v11, 1e-24 }
  0xd1   : > { %1646 = vrsqrt.f32 %v290_v10  ;;  %v294_v30 = vmax.f32 %v276_v28, 1e-24 }
  0xd2   : > { %1648 = vrsqrt.f32 %v291_v8 }
  0xd3   : > { %1441 = vmatpush3.xpose.msra.mxu0 %v414_v16  ;;  %v278_v26 = vpop.xlane.xlu0 %277  ;;  %1650 = vrsqrt.f32 %v292_v19 }
  0xd4   : > { %1442 = vmatprep.subr.mxu0 %v413_v47  ;;  %1652 = vrsqrt.f32 %v293_v29  ;;  %v295_v33 = vmax.f32 %v278_v26, 1e-24  ;;  %v280_v34 = vpop.xlane.xlu1 %279 }
  0xd5   : > { %1654 = vrsqrt.f32 %v294_v30  ;;  %v296_v13 = vmax.f32 %v280_v34, 1e-24 }
  0xd6   : > { %1656 = vrsqrt.f32 %v295_v33 }
  0xd7   : > { %1443 = vmatpush3.xpose.msra.mxu0 %v413_v47  ;;  %v1633_v15 = vpop.eup %1632  ;;  %1658 = vrsqrt.f32 %v296_v13 }
  0xd8   : > { %1444 = vmatprep.subr.mxu0 %v412_v0  ;;  %v1635_v22 = vpop.eup %1634  ;;  %v315_v9 = vmul.f32 %v1633_v15, %v2003_v36 }
  0xd9   : > { %v1637_v23 = vpop.eup %1636  ;;  %v316_v27 = vmul.f32 %v1635_v22, %v2006_v37 }
  0xda   : > { %v1639_v31 = vpop.eup %1638  ;;  %v317_v12 = vmul.f32 %v1637_v23, %v2016_v40 }
  0xdb   : > { %1445 = vmatpush3.xpose.msra.mxu0 %v412_v0  ;;  %v1641_v35 = vpop.eup %1640  ;;  %v318_v36 = vmul.f32 %v1639_v31, %v2019_v41 }
  0xdc   : > { %1446 = vmatprep.subr.mxu0 %v411_v62  ;;  %v1643_v38 = vpop.eup %1642  ;;  %v319_v39 = vmul.f32 %v1641_v35, %v2029_v44 }
  0xdd   : > { %v1645_v37 = vpop.eup %1644  ;;  %v320_v16 = vmul.f32 %v1643_v38, %v2032_v45 }
  0xde   : > { %v1647_v42 = vpop.eup %1646  ;;  %v321_v40 = vmul.f32 %v1645_v37, %v2042_v48 }
  0xdf   : > { %1447 = vmatpush3.xpose.msra.mxu0 %v411_v62  ;;  %v1649_v43 = vpop.eup %1648  ;;  %v322_v46 = vmul.f32 %v1647_v42, %v2045_v49 }
  0xe0   : > { %1448 = vmatprep.subr.mxu0 %v410_v24  ;;  %v1651_v41 = vpop.eup %1650  ;;  %v323_v47 = vmul.f32 %v1649_v43, %v2052_v52  ;;  %v570_v52 = vlaneseq }
  0xe1   : > { %v1653_v17 = vpop.eup %1652  ;;  %v324_v44 = vmul.f32 %v1651_v41, %v2055_v53 }
  0xe2   : > { %v1655_v50 = vpop.eup %1654  ;;  %v325_v45 = vmul.f32 %v1653_v17, %v2062_v56  ;;  %v571_v0 = vand.u32 127, %v570_v52 }
  0xe3   : > { %1449 = vmatpush3.xpose.msra.mxu0 %v410_v24  ;;  %v1657_v51 = vpop.eup %1656  ;;  %v326_v48 = vmul.f32 %v1655_v50, %v2065_v57 }
  0xe4   : > { %1450 = vmatprep.subr.mxu0 %v409_v25  ;;  %v1659_v32 = vpop.eup %1658  ;;  %v327_v49 = vmul.f32 %v1657_v51, %v2072_v60  ;;  %vm572_vm0 = vcmp.lt.s32.totalorder %v571_v0, 64 }
  0xe5   : > { %v328_v54 = vmul.f32 %v1659_v32, %v2075_v61 }
  0xe7   : > { %1451 = vmatpush3.xpose.msra.mxu0 %v409_v25 }
  0xea   : > { %1453 = vmatmul.mubr.f32.vlgmr.msra.gmra.mxu0 %v314_v18 }
  0xeb   : > { %1455 = vmatprep.mubr.f32.mxu0 %v315_v9 }
  0xee   : > { %1456 = vmatmul.mubr.f32.gmra.mxu0 %v316_v27 }
  0xef   : > { %1458 = vmatprep.mubr.f32.mxu0 %v317_v12 }
  0xf2   : > { %1459 = vmatmul.mubr.f32.gmra.mxu0 %v318_v36 }
  0xf3   : > { %1461 = vmatprep.mubr.f32.mxu0 %v319_v39 }
  0xf6   : > { %1462 = vmatmul.mubr.f32.gmra.mxu0 %v320_v16 }
  0xf7   : > { %1464 = vmatprep.mubr.f32.mxu0 %v321_v40 }
  0xfa   : > { %1465 = vmatmul.mubr.f32.gmra.mxu0 %v322_v46 }
  0xfb   : > { %1467 = vmatprep.mubr.f32.mxu0 %v323_v47 }
  0xfe   : > { %1468 = vmatmul.mubr.f32.gmra.mxu0 %v324_v44 }
  0xff   : > { %1470 = vmatprep.mubr.f32.mxu0 %v325_v45 }
 0x102   : > { %1471 = vmatmul.mubr.f32.gmra.mxu0 %v326_v48 }
 0x103   : > { %1473 = vmatprep.mubr.f32.mxu0 %v327_v49 }
 0x106   : > { %1474 = vmatmul.mubr.f32.gmra.mxu0 %v328_v54 }
 0x1aa   : > { %v1454_v53 = vpop.f32.mrf.mxu0 }
 0x1ab   : > { %v576_v55 = vsel %vm572_vm0, %v1454_v53, -1e+30 }
 0x1ac   : > { %593 = vmax.xlane.f32.xlu1 %v576_v55  ;;  %v491_v56 = vpop.f32.mrf.mxu0 }
 0x1ad   : > { %v575_v20 = vsel %vm572_vm0, %v491_v56, -1e+30 }
 0x1ae   : > { %591 = vmax.xlane.f32.xlu0 %v575_v20  ;;  %v1457_v57 = vpop.f32.mrf.mxu0 }
 0x1af   : > { %v578_v58 = vsel %vm572_vm0, %v1457_v57, -1e+30 }
 0x1b0   : > { %597 = vmax.xlane.f32.xlu1 %v578_v58  ;;  %v501_v60 = vpop.f32.mrf.mxu0 }
 0x1b1   : > { %v577_v61 = vsel %vm572_vm0, %v501_v60, -1e+30 }
 0x1b2   : > { %595 = vmax.xlane.f32.xlu0 %v577_v61  ;;  %v1460_v59 = vpop.f32.mrf.mxu0 }
 0x1b3   : > { %v580_v62 = vsel %vm572_vm0, %v1460_v59, -1e+30 }
 0x1b4   : > { %601 = vmax.xlane.f32.xlu1 %v580_v62  ;;  %v511_v21 = vpop.f32.mrf.mxu0 }
 0x1b5   : > { %v579_v1 = vsel %vm572_vm0, %v511_v21, -1e+30 }
 0x1b6   : > { %599 = vmax.xlane.f32.xlu0 %v579_v1  ;;  %v1463_v2 = vpop.f32.mrf.mxu0 }
 0x1b7   : > { %v582_v63 = vsel %vm572_vm0, %v1463_v2, -1e+30 }
 0x1b8   : > { %605 = vmax.xlane.f32.xlu1 %v582_v63  ;;  %v521_v24 = vpop.f32.mrf.mxu0 }
 0x1b9   : > { %v581_v3 = vsel %vm572_vm0, %v521_v24, -1e+30 }
 0x1ba   : > { %603 = vmax.xlane.f32.xlu0 %v581_v3  ;;  %v1466_v4 = vpop.f32.mrf.mxu0 }
 0x1bb   : > { %v584_v6 = vsel %vm572_vm0, %v1466_v4, -1e+30 }
 0x1bc   : > { %609 = vmax.xlane.f32.xlu1 %v584_v6  ;;  %v531_v7 = vpop.f32.mrf.mxu0 }
 0x1bd   : > { %v583_v5 = vsel %vm572_vm0, %v531_v7, -1e+30 }
 0x1be   : > { %607 = vmax.xlane.f32.xlu0 %v583_v5  ;;  %v1469_v25 = vpop.f32.mrf.mxu0 }
 0x1bf   : > { %v2124_v10 = vsel %vm572_vm0, %v1469_v25, -1e+30 }
 0x1c0   : > { %613 = vmax.xlane.f32.xlu1 %v2124_v10  ;;  %v541_v11 = vpop.f32.mrf.mxu0 }
 0x1c1   : > { %v2128_v14 = vsel %vm572_vm0, %v541_v11, -1e+30 }
 0x1c2   : > { %611 = vmax.xlane.f32.xlu0 %v2128_v14  ;;  %v1472_v8 = vpop.f32.mrf.mxu0 }
 0x1c3   : > { %v2132_v15 = vsel %vm572_vm0, %v1472_v8, -1e+30 }
 0x1c4   : > { %617 = vmax.xlane.f32.xlu1 %v2132_v15  ;;  %v551_v28 = vpop.f32.mrf.mxu0 }
 0x1c5   : > { %v2136_v18 = vsel %vm572_vm0, %v551_v28, -1e+30 }
 0x1c6   : > { %615 = vmax.xlane.f32.xlu0 %v2136_v18  ;;  %v1475_v19 = vpop.f32.mrf.mxu0 }
 0x1c7   : > { %v2140_v22 = vsel %vm572_vm0, %v1475_v19, -1e+30 }
 0x1c8   : > { %621 = vmax.xlane.f32.xlu1 %v2140_v22  ;;  %v561_v9 = vpop.f32.mrf.mxu0 }
 0x1c9   : > { %v2144_v29 = vsel %vm572_vm0, %v561_v9, -1e+30 }
 0x1ca   : > { %619 = vmax.xlane.f32.xlu0 %v2144_v29 }
 0x235   : > { %v594_v23 = vpop.xlane.xlu1 %593 }
 0x236   : > { %v624_v26 = vsub.f32 %v576_v55, %v594_v23  ;;  %v911_v23 = vld [vmem:[%s2458_s2 + $0x78] sm:$0xff] }
 0x237   : > { %v592_v27 = vpop.xlane.xlu0 %591  ;;  %1532 = vmatprep.subr.mxu1 %v911_v23 }
 0x238   : > { %v641_v30 = vmul.f32 1.442695, %v624_v26  ;;  %v623_v31 = vsub.f32 %v575_v20, %v592_v27 }
 0x239   : > { %v598_v12 = vpop.xlane.xlu1 %597 }
 0x23a   : > { %1660 = vpow2.f32 %v641_v30  ;;  %v639_v33 = vmul.f32 1.442695, %v623_v31  ;;  %v626_v34 = vsub.f32 %v578_v58, %v598_v12 }
 0x23b   : > { %v596_v35 = vpop.xlane.xlu0 %595 }
 0x23c   : > { %1662 = vpow2.f32 %v639_v33  ;;  %v645_v36 = vmul.f32 1.442695, %v626_v34  ;;  %v625_v13 = vsub.f32 %v577_v61, %v596_v35 }
 0x23d   : > { %v602_v38 = vpop.xlane.xlu1 %601 }
 0x23e   : > { %1664 = vpow2.f32 %v645_v36  ;;  %v643_v39 = vmul.f32 1.442695, %v625_v13  ;;  %v628_v37 = vsub.f32 %v580_v62, %v602_v38 }
 0x23f   : > { %v600_v16 = vpop.xlane.xlu0 %599 }
 0x240   : > { %1666 = vpow2.f32 %v643_v39  ;;  %v649_v42 = vmul.f32 1.442695, %v628_v37  ;;  %v627_v40 = vsub.f32 %v579_v1, %v600_v16 }
 0x241   : > { %v606_v43 = vpop.xlane.xlu1 %605 }
 0x242   : > { %1668 = vpow2.f32 %v649_v42  ;;  %v647_v46 = vmul.f32 1.442695, %v627_v40  ;;  %v630_v41 = vsub.f32 %v582_v63, %v606_v43  ;;  %v910_v40 = vld [vmem:[%s2458_s2 + $0x70] sm:$0xff] }
 0x243   : > { %v604_v47 = vpop.xlane.xlu0 %603 }
 0x244   : > { %1670 = vpow2.f32 %v647_v46  ;;  %v653_v17 = vmul.f32 1.442695, %v630_v41  ;;  %v629_v44 = vsub.f32 %v581_v3, %v604_v47  ;;  %v909_v47 = vld [vmem:[%s2458_s2 + $0x68] sm:$0xff] }
 0x245   : > { %v610_v50 = vpop.xlane.xlu1 %609 }
 0x246   : > { %1672 = vpow2.f32 %v653_v17  ;;  %v651_v45 = vmul.f32 1.442695, %v629_v44  ;;  %v632_v51 = vsub.f32 %v584_v6, %v610_v50 }
 0x247   : > { %v2147_v48 = vpop.eup %1660  ;;  %v608_v32 = vpop.xlane.xlu0 %607 }
 0x248   : > { %1674 = vpow2.f32 %v651_v45  ;;  %v657_v49 = vmul.f32 1.442695, %v632_v51  ;;  %v631_v54 = vsub.f32 %v583_v5, %v608_v32  ;;  %673 = vadd.xlane.f32.xlu1 %v2147_v48  ;;  %v908_v45 = vld [vmem:[%s2458_s2 + $0x60] sm:$0xff] }
 0x249   : > { %v2150_v52 = vpop.eup %1662  ;;  %v614_v0 = vpop.xlane.xlu1 %613 }
 0x24a   : > { %1676 = vpow2.f32 %v657_v49  ;;  %v655_v53 = vmul.f32 1.442695, %v631_v54  ;;  %v634_v55 = vsub.f32 %v2124_v10, %v614_v0  ;;  %671 = vadd.xlane.f32.xlu0 %v2150_v52  ;;  %v907_v49 = vld [vmem:[%s2458_s2 + $0x58] sm:$0xff] }
 0x24b   : > { %v2154_v56 = vpop.eup %1664  ;;  %v612_v20 = vpop.xlane.xlu0 %611 }
 0x24c   : > { %1678 = vpow2.f32 %v655_v53  ;;  %v661_v57 = vmul.f32 1.442695, %v634_v55  ;;  %v633_v58 = vsub.f32 %v2128_v14, %v612_v20  ;;  %677 = vadd.xlane.f32.xlu1 %v2154_v56  ;;  %v906_v53 = vld [vmem:[%s2458_s2 + $0x50] sm:$0xff] }
 0x24d   : > { %v2158_v60 = vpop.eup %1666  ;;  %v618_v61 = vpop.xlane.xlu1 %617 }
 0x24e   : > { %1680 = vpow2.f32 %v661_v57  ;;  %v659_v59 = vmul.f32 1.442695, %v633_v58  ;;  %v636_v62 = vsub.f32 %v2132_v15, %v618_v61  ;;  %675 = vadd.xlane.f32.xlu0 %v2158_v60  ;;  %v905_v57 = vld [vmem:[%s2458_s2 + $0x48] sm:$0xff] }
 0x24f   : > { %v2162_v21 = vpop.eup %1668  ;;  %v616_v1 = vpop.xlane.xlu0 %615 }
 0x250   : > { %1682 = vpow2.f32 %v659_v59  ;;  %v665_v2 = vmul.f32 1.442695, %v636_v62  ;;  %v635_v63 = vsub.f32 %v2136_v18, %v616_v1  ;;  %681 = vadd.xlane.f32.xlu1 %v2162_v21  ;;  %v904_v59 = vld [vmem:[%s2458_s2 + $0x40] sm:$0xff]  ;;  %v903_v1 = vld [vmem:[%s2458_s2 + $0x38] sm:$0xff] }
 0x251   : > { %v2166_v24 = vpop.eup %1670  ;;  %v622_v3 = vpop.xlane.xlu1 %621 }
 0x252   : > { %1684 = vpow2.f32 %v665_v2  ;;  %v663_v4 = vmul.f32 1.442695, %v635_v63  ;;  %v638_v6 = vsub.f32 %v2140_v22, %v622_v3  ;;  %679 = vadd.xlane.f32.xlu0 %v2166_v24 }
 0x253   : > { %v2170_v7 = vpop.eup %1672  ;;  %v620_v5 = vpop.xlane.xlu0 %619 }
 0x254   : > { %1686 = vpow2.f32 %v663_v4  ;;  %v669_v25 = vmul.f32 1.442695, %v638_v6  ;;  %v637_v10 = vsub.f32 %v2144_v29, %v620_v5  ;;  %685 = vadd.xlane.f32.xlu1 %v2170_v7  ;;  %v901_v6 = vld [vmem:[%s2458_s2 + $0x28] sm:$0xff] }
 0x255   : > { %v2174_v11 = vpop.eup %1674 }
 0x256   : > { %1688 = vpow2.f32 %v669_v25  ;;  %v667_v14 = vmul.f32 1.442695, %v637_v10  ;;  %683 = vadd.xlane.f32.xlu0 %v2174_v11  ;;  %v900_v25 = vld [vmem:[%s2458_s2 + $0x20] sm:$0xff] }
 0x257   : > { %v2177_v8 = vpop.eup %1676 }
 0x258   : > { %1690 = vpow2.f32 %v667_v14  ;;  %689 = vadd.xlane.f32.xlu1 %v2177_v8  ;;  %v899_v14 = vld [vmem:[%s2458_s2 + $0x18] sm:$0xff] }
 0x259   : > { %v2180_v15 = vpop.eup %1678 }
 0x25a   : > { %687 = vadd.xlane.f32.xlu0 %v2180_v15 }
 0x25b   : > { %v2183_v28 = vpop.eup %1680 }
 0x25c   : > { %693 = vadd.xlane.f32.xlu1 %v2183_v28 }
 0x25d   : > { %v2186_v18 = vpop.eup %1682 }
 0x25e   : > { %691 = vadd.xlane.f32.xlu0 %v2186_v18 }
 0x25f   : > { %v2189_v19 = vpop.eup %1684 }
 0x260   : > { %697 = vadd.xlane.f32.xlu1 %v2189_v19 }
 0x261   : > { %v2192_v22 = vpop.eup %1686 }
 0x262   : > { %695 = vadd.xlane.f32.xlu0 %v2192_v22 }
 0x263   : > { %v2195_v9 = vpop.eup %1688 }
 0x264   : > { %701 = vadd.xlane.f32.xlu1 %v2195_v9 }
 0x265   : > { %v2198_v29 = vpop.eup %1690 }
 0x266   : > { %699 = vadd.xlane.f32.xlu0 %v2198_v29 }
 0x2d1   : > { %v674_v26 = vpop.xlane.xlu1 %673 }
 0x2d2   : > { %1692 = vrcp.f32 %v674_v26 }
 0x2d3   : > { %v672_v27 = vpop.xlane.xlu0 %671 }
 0x2d4   : > { %1694 = vrcp.f32 %v672_v27  ;;  %v2266_v27 = vld [vmem:[%s1981_s28] sm:$0xff] }
 0x2d5   : > { %v678_v30 = vpop.xlane.xlu1 %677 }
 0x2d6   : > { %1696 = vrcp.f32 %v678_v30 }
 0x2d7   : > { %v676_v31 = vpop.xlane.xlu0 %675 }
 0x2d8   : > { %1698 = vrcp.f32 %v676_v31  ;;  %v2272_v31 = vld [vmem:[%s1981_s28 + $0x8] sm:$0xff] }
 0x2d9   : > { %v682_v12 = vpop.xlane.xlu1 %681 }
 0x2da   : > { %1700 = vrcp.f32 %v682_v12 }
 0x2db   : > { %v680_v33 = vpop.xlane.xlu0 %679 }
 0x2dc   : > { %1702 = vrcp.f32 %v680_v33 }
 0x2dd   : > { %v686_v34 = vpop.xlane.xlu1 %685 }
 0x2de   : > { %1704 = vrcp.f32 %v686_v34 }
 0x2df   : > { %v684_v35 = vpop.xlane.xlu0 %683  ;;  %v1693_v36 = vpop.eup %1692 }
 0x2e0   : > { %1706 = vrcp.f32 %v684_v35  ;;  %v720_v16 = vmul.f32 %v1693_v36, %v2147_v48  ;;  %v2280_v35 = vld [vmem:[%s1981_s28 + $0x10] sm:$0xff] }
 0x2e1   : > { %v1695_v13 = vpop.eup %1694  ;;  %v690_v38 = vpop.xlane.xlu1 %689 }
 0x2e2   : > { %v719_v39 = vmul.f32 %v1695_v13, %v2150_v52  ;;  %1708 = vrcp.f32 %v690_v38  ;;  %v2286_v13 = vld [vmem:[%s1981_s28 + $0x18] sm:$0xff] }
 0x2e3   : > { %v688_v37 = vpop.xlane.xlu0 %687  ;;  %v1697_v42 = vpop.eup %1696 }
 0x2e4   : > { %1710 = vrcp.f32 %v688_v37  ;;  %1508 = vmatprep.mubr.f32.mxu1 %v719_v39  ;;  %v722_v44 = vmul.f32 %v1697_v42, %v2154_v56 }
 0x2e5   : > { %v1699_v43 = vpop.eup %1698  ;;  %v694_v46 = vpop.xlane.xlu1 %693  ;;  %1509 = vmatmul.mubr.f32.vlgmr.msra.gmra.mxu1 %v720_v16  ;;  %v2294_v16 = vld [vmem:[%s1981_s28 + $0x20] sm:$0xff] }
 0x2e6   : > { %v721_v41 = vmul.f32 %v1699_v43, %v2158_v60  ;;  %1533 = vmatpush3.msra.mxu1 %v911_v23  ;;  %1712 = vrcp.f32 %v694_v46 }
 0x2e7   : > { %v692_v17 = vpop.xlane.xlu0 %691  ;;  %1534 = vmatprep.subr.mxu1 %v910_v40  ;;  %v1701_v50 = vpop.eup %1700 }
 0x2e8   : > { %1714 = vrcp.f32 %v692_v17  ;;  %1511 = vmatprep.mubr.f32.mxu1 %v721_v41  ;;  %1535 = vmatpush3.msra.mxu1 %v910_v40  ;;  %v724_v52 = vmul.f32 %v1701_v50, %v2162_v21  ;;  %v2300_v40 = vld [vmem:[%s1981_s28 + $0x28] sm:$0xff] }
 0x2e9   : > { %v1703_v51 = vpop.eup %1702  ;;  %v698_v48 = vpop.xlane.xlu1 %697  ;;  %1512 = vmatmul.mubr.f32.gmra.mxu1 %v722_v44  ;;  %1536 = vmatprep.subr.mxu1 %v909_v47  ;;  %v2314_v44 = vld [vmem:[%s1981_s28 + $0x38] sm:$0xff] }
 0x2ea   : > { %v723_v32 = vmul.f32 %v1703_v51, %v2166_v24  ;;  %1537 = vmatpush3.msra.mxu1 %v909_v47  ;;  %1716 = vrcp.f32 %v698_v48  ;;  %v902_v24 = vld [vmem:[%s2458_s2 + $0x30] sm:$0xff]  ;;  %v2322_v48 = vld [vmem:[%s1981_s28 + $0x40] sm:$0xff] }
 0x2eb   : > { %v696_v54 = vpop.xlane.xlu0 %695  ;;  %1538 = vmatprep.subr.mxu1 %v908_v45  ;;  %v1705_v0 = vpop.eup %1704  ;;  %v2308_v47 = vld [vmem:[%s1981_s28 + $0x30] sm:$0xff] }
 0x2ec   : > { %1718 = vrcp.f32 %v696_v54  ;;  %1514 = vmatprep.mubr.f32.mxu1 %v723_v32  ;;  %1539 = vmatpush3.msra.mxu1 %v908_v45  ;;  %v726_v60 = vmul.f32 %v1705_v0, %v2170_v7 }
 0x2ed   : > { %v1707_v55 = vpop.eup %1706  ;;  %v702_v56 = vpop.xlane.xlu1 %701  ;;  %1515 = vmatmul.mubr.f32.gmra.mxu1 %v724_v52  ;;  %1540 = vmatprep.subr.mxu1 %v907_v49 }
 0x2ee   : > { %v725_v20 = vmul.f32 %v1707_v55, %v2174_v11  ;;  %1541 = vmatpush3.msra.mxu1 %v907_v49  ;;  %1720 = vrcp.f32 %v702_v56  ;;  %v2328_v49 = vld [vmem:[%s1981_s28 + $0x48] sm:$0xff]  ;;  %v2342_v56 = vld [vmem:[%s1981_s28 + $0x58] sm:$0xff] }
 0x2ef   : > { %v700_v58 = vpop.xlane.xlu0 %699  ;;  %1542 = vmatprep.subr.mxu1 %v906_v53  ;;  %v1709_v61 = vpop.eup %1708 }
 0x2f0   : > { %1722 = vrcp.f32 %v700_v58  ;;  %1517 = vmatprep.mubr.f32.mxu1 %v725_v20  ;;  %1543 = vmatpush3.msra.mxu1 %v906_v53  ;;  %v728_v2 = vmul.f32 %v1709_v61, %v2177_v8  ;;  %v2336_v53 = vld [vmem:[%s1981_s28 + $0x50] sm:$0xff] }
 0x2f1   : > { %v1711_v62 = vpop.eup %1710  ;;  %1518 = vmatmul.mubr.f32.gmra.mxu1 %v726_v60  ;;  %1544 = vmatprep.subr.mxu1 %v905_v57  ;;  %v2350_v60 = vld [vmem:[%s1981_s28 + $0x60] sm:$0xff] }
 0x2f2   : > { %v727_v21 = vmul.f32 %v1711_v62, %v2180_v15  ;;  %1545 = vmatpush3.msra.mxu1 %v905_v57 }
 0x2f3   : > { %1546 = vmatprep.subr.mxu1 %v904_v59  ;;  %v1713_v63 = vpop.eup %1712 }
 0x2f4   : > { %1520 = vmatprep.mubr.f32.mxu1 %v727_v21  ;;  %1547 = vmatpush3.msra.mxu1 %v904_v59  ;;  %v730_v7 = vmul.f32 %v1713_v63, %v2183_v28  ;;  %v898_v28 = vld [vmem:[%s2458_s2 + $0x10] sm:$0xff]  ;;  %v2356_v59 = vld [vmem:[%s1981_s28 + $0x68] sm:$0xff] }
 0x2f5   : > { %v1715_v3 = vpop.eup %1714  ;;  %1521 = vmatmul.mubr.f32.gmra.mxu1 %v728_v2  ;;  %1548 = vmatprep.subr.mxu1 %v903_v1  ;;  %v2364_v2 = vld [vmem:[%s1981_s28 + $0x70] sm:$0xff] }
 0x2f6   : > { %v729_v4 = vmul.f32 %v1715_v3, %v2186_v18  ;;  %1549 = vmatpush3.msra.mxu1 %v903_v1 }
 0x2f7   : > { %1550 = vmatprep.subr.mxu1 %v902_v24  ;;  %v1717_v5 = vpop.eup %1716 }
 0x2f8   : > { %1523 = vmatprep.mubr.f32.mxu1 %v729_v4  ;;  %1551 = vmatpush3.msra.mxu1 %v902_v24  ;;  %v732_v8 = vmul.f32 %v1717_v5, %v2189_v19  ;;  %v897_v19 = vld [vmem:[%s2458_s2 + $0x8] sm:$0xff]  ;;  %v2370_v24 = vld [vmem:[%s1981_s28 + $0x78] sm:$0xff]  ;;  %v2380_v4 = vld [vmem:[%s2459_s3] ss:$0 sm:$0xff] }
 0x2f9   : > { %v1719_v10 = vpop.eup %1718  ;;  %1524 = vmatmul.mubr.f32.gmra.mxu1 %v730_v7  ;;  %1552 = vmatprep.subr.mxu1 %v901_v6 }
 0x2fa   : > { %v731_v11 = vmul.f32 %v1719_v10, %v2192_v22  ;;  %1553 = vmatpush3.msra.mxu1 %v901_v6 }
 0x2fb   : > { %1554 = vmatprep.subr.mxu1 %v900_v25  ;;  %v1721_v15 = vpop.eup %1720 }
 0x2fc   : > { %1526 = vmatprep.mubr.f32.mxu1 %v731_v11  ;;  %1555 = vmatpush3.msra.mxu1 %v900_v25  ;;  %v734_v23 = vmul.f32 %v1721_v15, %v2195_v9 }
 0x2fd   : > { %v1723_v18 = vpop.eup %1722  ;;  %1527 = vmatmul.mubr.f32.gmra.mxu1 %v732_v8  ;;  %1556 = vmatprep.subr.mxu1 %v899_v14 }
 0x2fe   : > { %v733_v22 = vmul.f32 %v1723_v18, %v2198_v29  ;;  %1557 = vmatpush3.msra.mxu1 %v899_v14  ;;  %v896_v29 = vld [vmem:[%s2458_s2] sm:$0xff] }
 0x2ff   : > { %1558 = vmatprep.subr.mxu1 %v898_v28 }
 0x300   : > { %1529 = vmatprep.mubr.f32.mxu1 %v733_v22  ;;  %1559 = vmatpush3.msra.mxu1 %v898_v28 }
 0x301   : > { %1530 = vmatmul.mubr.f32.gmra.mxu1 %v734_v23  ;;  %1560 = vmatprep.subr.mxu1 %v897_v19 }
 0x302   : > { %1561 = vmatpush3.msra.mxu1 %v897_v19 }
 0x303   : > { %1562 = vmatprep.subr.mxu1 %v896_v29 }
 0x304   : > { %1563 = vmatpush3.msra.mxu1 %v896_v29 }
 0x3a5   : > { %v1510_v26 = vpop.f32.mrf.mxu1 }
 0x3a6   : > { %v2275_v12 = vsub.f32 %v2272_v31, %v1510_v26 }
 0x3a7   : > { %v801_v9 = vpop.f32.mrf.mxu1 }
 0x3a8   : > { %v2269_v30 = vsub.f32 %v2266_v27, %v801_v9 }
 0x3a9   : > { %v1513_v33 = vpop.f32.mrf.mxu1 }
 0x3aa   : > { %1564 = vmatprep.mubr.f32.mxu1 %v2269_v30  ;;  %v2289_v38 = vsub.f32 %v2286_v13, %v1513_v33 }
 0x3ab   : > { %v811_v34 = vpop.f32.mrf.mxu1  ;;  %1565 = vmatmul.mubr.f32.vlgmr.msra.gmra.mxu1 %v2275_v12 }
 0x3ac   : > { %v2283_v36 = vsub.f32 %v2280_v35, %v811_v34 }
 0x3ad   : > { %v1516_v39 = vpop.f32.mrf.mxu1 }
 0x3ae   : > { %1567 = vmatprep.mubr.f32.mxu1 %v2283_v36  ;;  %v2303_v43 = vsub.f32 %v2300_v40, %v1516_v39 }
 0x3af   : > { %v821_v37 = vpop.f32.mrf.mxu1  ;;  %1568 = vmatmul.mubr.f32.gmra.mxu1 %v2289_v38 }
 0x3b0   : > { %v2297_v42 = vsub.f32 %v2294_v16, %v821_v37 }
 0x3b1   : > { %v1519_v46 = vpop.f32.mrf.mxu1 }
 0x3b2   : > { %1570 = vmatprep.mubr.f32.mxu1 %v2297_v42  ;;  %v2317_v50 = vsub.f32 %v2314_v44, %v1519_v46 }
 0x3b3   : > { %v831_v41 = vpop.f32.mrf.mxu1  ;;  %1571 = vmatmul.mubr.f32.gmra.mxu1 %v2303_v43 }
 0x3b4   : > { %v2311_v17 = vsub.f32 %v2308_v47, %v831_v41 }
 0x3b5   : > { %v1522_v45 = vpop.f32.mrf.mxu1 }
 0x3b6   : > { %1573 = vmatprep.mubr.f32.mxu1 %v2311_v17  ;;  %v2331_v54 = vsub.f32 %v2328_v49, %v1522_v45 }
 0x3b7   : > { %v841_v51 = vpop.f32.mrf.mxu1  ;;  %1574 = vmatmul.mubr.f32.gmra.mxu1 %v2317_v50 }
 0x3b8   : > { %v2325_v32 = vsub.f32 %v2322_v48, %v841_v51 }
 0x3b9   : > { %v1525_v52 = vpop.f32.mrf.mxu1 }
 0x3ba   : > { %1576 = vmatprep.mubr.f32.mxu1 %v2325_v32  ;;  %v2345_v20 = vsub.f32 %v2342_v56, %v1525_v52 }
 0x3bb   : > { %v851_v0 = vpop.f32.mrf.mxu1  ;;  %1577 = vmatmul.mubr.f32.gmra.mxu1 %v2331_v54 }
 0x3bc   : > { %v2339_v55 = vsub.f32 %v2336_v53, %v851_v0 }
 0x3bd   : > { %v1528_v57 = vpop.f32.mrf.mxu1 }
 0x3be   : > { %1579 = vmatprep.mubr.f32.mxu1 %v2339_v55  ;;  %v2359_v62 = vsub.f32 %v2356_v59, %v1528_v57 }
 0x3bf   : > { %v861_v58 = vpop.f32.mrf.mxu1  ;;  %1580 = vmatmul.mubr.f32.gmra.mxu1 %v2345_v20 }
 0x3c0   : > { %v2353_v61 = vsub.f32 %v2350_v60, %v861_v58 }
 0x3c1   : > { %v1531_v21 = vpop.f32.mrf.mxu1 }
 0x3c2   : > { %1582 = vmatprep.mubr.f32.mxu1 %v2353_v61  ;;  %v2373_v3 = vsub.f32 %v2370_v24, %v1531_v21 }
 0x3c3   : > { %v871_v1 = vpop.f32.mrf.mxu1  ;;  %1583 = vmatmul.mubr.f32.gmra.mxu1 %v2359_v62 }
 0x3c4   : > { %v2367_v63 = vsub.f32 %v2364_v2, %v871_v1 }
 0x3c6   : > { %1585 = vmatprep.mubr.f32.mxu1 %v2367_v63 }
 0x3c7   : > { %1586 = vmatmul.mubr.f32.gmra.mxu1 %v2373_v3 }
 0x46b   : > { %v1566_v6 = vpop.f32.mrf.mxu1 }
 0x46c   : > { %v991_v7 = vadd.f32 %v1566_v6, %v2380_v4 }
 0x46d   : > { %v985_v5 = vpop.f32.mrf.mxu1 }
 0x46e   : > { %v1307_v25 = vmul.f32 -1.442695, %v991_v7  ;;  %v986_v10 = vadd.f32 %v2380_v4, %v985_v5 }
 0x46f   : > { %v1569_v11 = vpop.f32.mrf.mxu1 }
 0x470   : > { %1724 = vpow2.f32 %v1307_v25  ;;  %v1306_v14 = vmul.f32 -1.442695, %v986_v10  ;;  %v1001_v8 = vadd.f32 %v1569_v11, %v2380_v4 }
 0x471   : > { %v995_v15 = vpop.f32.mrf.mxu1 }
 0x472   : > { %1726 = vpow2.f32 %v1306_v14  ;;  %v1309_v28 = vmul.f32 -1.442695, %v1001_v8  ;;  %v996_v18 = vadd.f32 %v2380_v4, %v995_v15 }
 0x473   : > { %v1572_v22 = vpop.f32.mrf.mxu1 }
 0x474   : > { %1728 = vpow2.f32 %v1309_v28  ;;  %v1308_v23 = vmul.f32 -1.442695, %v996_v18  ;;  %v1011_v19 = vadd.f32 %v1572_v22, %v2380_v4 }
 0x475   : > { %v1005_v29 = vpop.f32.mrf.mxu1 }
 0x476   : > { %1730 = vpow2.f32 %v1308_v23  ;;  %v1311_v26 = vmul.f32 -1.442695, %v1011_v19  ;;  %v1006_v9 = vadd.f32 %v2380_v4, %v1005_v29 }
 0x477   : > { %v1575_v33 = vpop.f32.mrf.mxu1 }
 0x478   : > { %1732 = vpow2.f32 %v1311_v26  ;;  %v1310_v34 = vmul.f32 -1.442695, %v1006_v9  ;;  %v1021_v39 = vadd.f32 %v1575_v33, %v2380_v4 }
 0x479   : > { %v1015_v37 = vpop.f32.mrf.mxu1 }
 0x47a   : > { %1734 = vpow2.f32 %v1310_v34  ;;  %v1313_v46 = vmul.f32 -1.442695, %v1021_v39  ;;  %v1016_v41 = vadd.f32 %v2380_v4, %v1015_v37 }
 0x47b   : > { %v1578_v45 = vpop.f32.mrf.mxu1 }
 0x47c   : > { %1736 = vpow2.f32 %v1313_v46  ;;  %v1312_v51 = vmul.f32 -1.442695, %v1016_v41  ;;  %v1031_v52 = vadd.f32 %v1578_v45, %v2380_v4 }
 0x47d   : > { %v1725_v0 = vpop.eup %1724  ;;  %v1025_v57 = vpop.f32.mrf.mxu1 }
 0x47e   : > { %v1113_v58 = vadd.f32 1.0, %v1725_v0  ;;  %1738 = vpow2.f32 %v1312_v51  ;;  %v1315_v21 = vmul.f32 -1.442695, %v1031_v52  ;;  %v1026_v1 = vadd.f32 %v2380_v4, %v1025_v57 }
 0x47f   : > { %v1727_v6 = vpop.eup %1726  ;;  %v1581_v7 = vpop.f32.mrf.mxu1 }
 0x480   : > { %1740 = vrcp.f32 %v1113_v58  ;;  %v1112_v5 = vadd.f32 1.0, %v1727_v6  ;;  %v1314_v25 = vmul.f32 -1.442695, %v1026_v1  ;;  %v1041_v10 = vadd.f32 %v1581_v7, %v2380_v4 }
 0x481   : > { %v1729_v11 = vpop.eup %1728  ;;  %1742 = vpow2.f32 %v1315_v21  ;;  %v1035_v14 = vpop.f32.mrf.mxu1 }
 0x482   : > { %1744 = vrcp.f32 %v1112_v5  ;;  %v1115_v8 = vadd.f32 1.0, %v1729_v11  ;;  %v1317_v15 = vmul.f32 -1.442695, %v1041_v10  ;;  %v1036_v28 = vadd.f32 %v2380_v4, %v1035_v14 }
 0x483   : > { %v1731_v18 = vpop.eup %1730  ;;  %1746 = vpow2.f32 %v1314_v25  ;;  %v1584_v22 = vpop.f32.mrf.mxu1 }
 0x484   : > { %1748 = vrcp.f32 %v1115_v8  ;;  %v1114_v23 = vadd.f32 1.0, %v1731_v18  ;;  %v1316_v19 = vmul.f32 -1.442695, %v1036_v28  ;;  %v1051_v29 = vadd.f32 %v1584_v22, %v2380_v4 }
 0x485   : > { %v1733_v26 = vpop.eup %1732  ;;  %1750 = vpow2.f32 %v1317_v15  ;;  %v1045_v9 = vpop.f32.mrf.mxu1 }
 0x486   : > { %1752 = vrcp.f32 %v1114_v23  ;;  %v1117_v33 = vadd.f32 1.0, %v1733_v26  ;;  %v1319_v34 = vmul.f32 -1.442695, %v1051_v29  ;;  %v1046_v39 = vadd.f32 %v2380_v4, %v1045_v9 }
 0x487   : > { %v1735_v37 = vpop.eup %1734  ;;  %1754 = vpow2.f32 %v1316_v19  ;;  %v1587_v46 = vpop.f32.mrf.mxu1 }
 0x488   : > { %1756 = vrcp.f32 %v1117_v33  ;;  %v1116_v41 = vadd.f32 1.0, %v1735_v37  ;;  %v1318_v45 = vmul.f32 -1.442695, %v1046_v39  ;;  %v1061_v51 = vadd.f32 %v1587_v46, %v2380_v4 }
 0x489   : > { %v1737_v52 = vpop.eup %1736  ;;  %1758 = vpow2.f32 %v1319_v34  ;;  %v1055_v0 = vpop.f32.mrf.mxu1 }
 0x48a   : > { %1760 = vrcp.f32 %v1116_v41  ;;  %v1119_v57 = vadd.f32 1.0, %v1737_v52  ;;  %v1321_v58 = vmul.f32 -1.442695, %v1061_v51  ;;  %v1056_v21 = vadd.f32 %v2380_v4, %v1055_v0 }
 0x48b   : > { %v1739_v1 = vpop.eup %1738  ;;  %1762 = vpow2.f32 %v1318_v45 }
 0x48c   : > { %1764 = vrcp.f32 %v1119_v57  ;;  %v1118_v6 = vadd.f32 1.0, %v1739_v1  ;;  %v1320_v7 = vmul.f32 -1.442695, %v1056_v21 }
 0x48d   : > { %v1741_v5 = vpop.eup %1740  ;;  %1766 = vpow2.f32 %v1321_v58 }
 0x48e   : > { %v1743_v25 = vpop.eup %1742  ;;  %v1177_v10 = vsub.f32 1.0, %v1741_v5  ;;  %1768 = vrcp.f32 %v1118_v6  ;;  %v1161_v15 = vmul.f32 %v2272_v31, %v1741_v5 }
 0x48f   : > { %v1745_v11 = vpop.eup %1744  ;;  %v1121_v14 = vadd.f32 1.0, %v1743_v25  ;;  %1770 = vpow2.f32 %v1320_v7 }
 0x490   : > { %v1747_v8 = vpop.eup %1746  ;;  %v1193_v28 = vmul.f32 %v1177_v10, %v2275_v12  ;;  %v1176_v4 = vsub.f32 1.0, %v1745_v11  ;;  %v1160_v29 = vmul.f32 %v2266_v27, %v1745_v11 }
 0x491   : > { %v1749_v18 = vpop.eup %1748  ;;  %1772 = vrcp.f32 %v1121_v14  ;;  %v1120_v22 = vadd.f32 1.0, %v1747_v8 }
 0x492   : > { %v1751_v23 = vpop.eup %1750  ;;  %v1209_v19 = vadd.f32 %v1193_v28, %v1161_v15  ;;  %v1192_v31 = vmul.f32 %v1176_v4, %v2269_v30  ;;  %v1179_v26 = vsub.f32 1.0, %v1749_v18  ;;  %v1163_v39 = vmul.f32 %v2286_v13, %v1749_v18 }
 0x493   : > { %v1753_v12 = vpop.eup %1752  ;;  %1774 = vrcp.f32 %v1120_v22  ;;  %v1123_v9 = vadd.f32 1.0, %v1751_v23 }
 0x494   : > { %v1755_v33 = vpop.eup %1754  ;;  %1225 = vst [vmem:[%s2405_s18 + $0x8] sm:$0xff] %v1209_v19  ;;  %v1208_v34 = vadd.f32 %v1192_v31, %v1160_v29  ;;  %v1195_v37 = vmul.f32 %v1179_v26, %v2289_v38  ;;  %v1178_v46 = vsub.f32 1.0, %v1753_v12  ;;  %v1162_v30 = vmul.f32 %v2280_v35, %v1753_v12 }
 0x495   : > { %v1757_v41 = vpop.eup %1756  ;;  %1776 = vrcp.f32 %v1123_v9  ;;  %v1122_v45 = vadd.f32 1.0, %v1755_v33 }
 0x496   : > { %v1759_v27 = vpop.eup %1758  ;;  %1224 = vst [vmem:[%s2405_s18] sm:$0xff] %v1208_v34  ;;  %v1211_v51 = vadd.f32 %v1195_v37, %v1163_v39  ;;  %v1194_v52 = vmul.f32 %v1178_v46, %v2283_v36  ;;  %v1181_v0 = vsub.f32 1.0, %v1757_v41  ;;  %v1165_v38 = vmul.f32 %v2300_v40, %v1757_v41 }
 0x497   : > { %v1761_v57 = vpop.eup %1760  ;;  %1778 = vrcp.f32 %v1122_v45  ;;  %v1125_v58 = vadd.f32 1.0, %v1759_v27 }
 0x498   : > { %v1763_v13 = vpop.eup %1762  ;;  %1227 = vst [vmem:[%s2405_s18 + $0x18] sm:$0xff] %v1211_v51  ;;  %v1210_v21 = vadd.f32 %v1194_v52, %v1162_v30  ;;  %v1197_v1 = vmul.f32 %v1181_v0, %v2303_v43  ;;  %v1180_v6 = vsub.f32 1.0, %v1761_v57  ;;  %v1164_v36 = vmul.f32 %v2294_v16, %v1761_v57 }
 0x499   : > { %v1765_v7 = vpop.eup %1764  ;;  %1780 = vrcp.f32 %v1125_v58  ;;  %v1124_v5 = vadd.f32 1.0, %v1763_v13 }
 0x49a   : > { %v1767_v35 = vpop.eup %1766  ;;  %1226 = vst [vmem:[%s2405_s18 + $0x10] sm:$0xff] %v1210_v21  ;;  %v1213_v25 = vadd.f32 %v1197_v1, %v1165_v38  ;;  %v1196_v10 = vmul.f32 %v1180_v6, %v2297_v42  ;;  %v1183_v11 = vsub.f32 1.0, %v1765_v7  ;;  %v1167_v15 = vmul.f32 %v2314_v44, %v1765_v7 }
 0x49b   : > { %v1769_v14 = vpop.eup %1768  ;;  %1782 = vrcp.f32 %v1124_v5  ;;  %v1127_v8 = vadd.f32 1.0, %v1767_v35 }
 0x49c   : > { %v1771_v40 = vpop.eup %1770  ;;  %1229 = vst [vmem:[%s2405_s18 + $0x28] sm:$0xff] %v1213_v25  ;;  %v1212_v43 = vadd.f32 %v1196_v10, %v1164_v36  ;;  %v1199_v28 = vmul.f32 %v1183_v11, %v2317_v50  ;;  %v1182_v4 = vsub.f32 1.0, %v1769_v14  ;;  %v1166_v42 = vmul.f32 %v2308_v47, %v1769_v14 }
 0x49d   : > { %1784 = vrcp.f32 %v1127_v8  ;;  %v1126_v18 = vadd.f32 1.0, %v1771_v40 }
 0x49e   : > { %v1773_v22 = vpop.eup %1772  ;;  %1228 = vst [vmem:[%s2405_s18 + $0x20] sm:$0xff] %v1212_v43  ;;  %v1215_v16 = vadd.f32 %v1199_v28, %v1167_v15  ;;  %v1198_v23 = vmul.f32 %v1182_v4, %v2311_v17 }
 0x49f   : > { %v1185_v19 = vsub.f32 1.0, %v1773_v22  ;;  %1786 = vrcp.f32 %v1126_v18  ;;  %v1169_v44 = vmul.f32 %v2328_v49, %v1773_v22 }
 0x4a0   : > { %v1775_v29 = vpop.eup %1774  ;;  %1231 = vst [vmem:[%s2405_s18 + $0x38] sm:$0xff] %v1215_v16  ;;  %v1214_v31 = vadd.f32 %v1198_v23, %v1166_v42 }
 0x4a1   : > { %v1201_v50 = vmul.f32 %v1185_v19, %v2331_v54  ;;  %v1184_v26 = vsub.f32 1.0, %v1775_v29  ;;  %v1168_v33 = vmul.f32 %v2322_v48, %v1775_v29 }
 0x4a2   : > { %v1777_v12 = vpop.eup %1776  ;;  %1230 = vst [vmem:[%s2405_s18 + $0x30] sm:$0xff] %v1214_v31 }
 0x4a3   : > { %v1217_v9 = vadd.f32 %v1201_v50, %v1169_v44  ;;  %v1200_v47 = vmul.f32 %v1184_v26, %v2325_v32  ;;  %v1187_v17 = vsub.f32 1.0, %v1777_v12  ;;  %v1171_v37 = vmul.f32 %v2342_v56, %v1777_v12 }
 0x4a4   : > { %v1779_v34 = vpop.eup %1778 }
 0x4a5   : > { %1233 = vst [vmem:[%s2405_s18 + $0x48] sm:$0xff] %v1217_v9  ;;  %v1216_v39 = vadd.f32 %v1200_v47, %v1168_v33  ;;  %v1203_v49 = vmul.f32 %v1187_v17, %v2345_v20  ;;  %v1186_v46 = vsub.f32 1.0, %v1779_v34  ;;  %v1170_v45 = vmul.f32 %v2336_v53, %v1779_v34 }
 0x4a6   : > { %v1781_v54 = vpop.eup %1780 }
 0x4a7   : > { %1232 = vst [vmem:[%s2405_s18 + $0x40] sm:$0xff] %v1216_v39  ;;  %v1219_v41 = vadd.f32 %v1203_v49, %v1171_v37  ;;  %v1202_v48 = vmul.f32 %v1186_v46, %v2339_v55  ;;  %v1189_v27 = vsub.f32 1.0, %v1781_v54  ;;  %v1173_v30 = vmul.f32 %v2356_v59, %v1781_v54 }
 0x4a8   : > { %v1783_v32 = vpop.eup %1782 }
 0x4a9   : > { %1235 = vst [vmem:[%s2405_s18 + $0x58] sm:$0xff] %v1219_v41  ;;  %v1218_v51 = vadd.f32 %v1202_v48, %v1170_v45  ;;  %v1205_v56 = vmul.f32 %v1189_v27, %v2359_v62  ;;  %v1188_v52 = vsub.f32 1.0, %v1783_v32  ;;  %v1172_v53 = vmul.f32 %v2350_v60, %v1783_v32 }
 0x4aa   : > { %v1785_v20 = vpop.eup %1784 }
 0x4ab   : > { %1234 = vst [vmem:[%s2405_s18 + $0x50] sm:$0xff] %v1218_v51  ;;  %v1221_v0 = vadd.f32 %v1205_v56, %v1173_v30  ;;  %v1204_v57 = vmul.f32 %v1188_v52, %v2353_v61  ;;  %v1191_v55 = vsub.f32 1.0, %v1785_v20  ;;  %v1175_v21 = vmul.f32 %v2370_v24, %v1785_v20 }
 0x4ac   : > { %v1787_v58 = vpop.eup %1786 }
 0x4ad   : > { %1237 = vst [vmem:[%s2405_s18 + $0x68] sm:$0xff] %v1221_v0  ;;  %v1220_v13 = vadd.f32 %v1204_v57, %v1172_v53  ;;  %v1207_v59 = vmul.f32 %v1191_v55, %v2373_v3  ;;  %v1190_v38 = vsub.f32 1.0, %v1787_v58  ;;  %v1174_v1 = vmul.f32 %v2364_v2, %v1787_v58 }
 0x4af   : > { %1236 = vst [vmem:[%s2405_s18 + $0x60] sm:$0xff] %v1220_v13  ;;  %v1223_v62 = vadd.f32 %v1207_v59, %v1175_v21  ;;  %v1206_v6 = vmul.f32 %v1190_v38, %v2367_v63 }
 0x4b1   : > { %1239 = vst [vmem:[%s2405_s18 + $0x78] sm:$0xff] %v1223_v62  ;;  %v1222_v7 = vadd.f32 %v1206_v6, %v1174_v1 }
 0x4b3   : > { %1238 = vst [vmem:[%s2405_s18 + $0x70] sm:$0xff] %v1222_v7 }
 0x4b4 PF: > { %s14_s15 = sadd.s32 1, %s1810_s15  }
 0x4b5   : > { %p11_p4 = scmp.ge.s32.totalorder %s14_s15, 4  }
 0x4b7   :  { %13 = sbr.rel (!%p11_p4) target bundleno = 1 (0x1), region = 66 }

</bundles_post_ra>
